<compile_context>
chip_gen: v7x
topology: tpu7x:2x2x1
jax: 0.10.0
libtpu: 0.0.40
codegen_flags: <defaults>
</compile_context>

<pallas_src>
import functools

import jax
import jax.numpy as jnp
from jax.experimental import pallas as pl
from jax.experimental.pallas import tpu as pltpu


def _lstm_stack_kernel(x_ref, wih_ref, whh_ref, b_ref, h0_ref, c0_ref,
                       out_ref, hN_ref, cN_ref, h_scr, c_scr,
                       *, hidden_size, num_layers, chunk, batch):
    """All LSTM layers fused; grid axis 0 = time chunks (sequential).

    x_ref   : (B, TT, H)   current time-chunk of layer-0 inputs (batch-first)
    wih_ref : (L, H, 4H)   input->gates weights (transposed), VMEM-resident
    whh_ref : (L, H, 4H)   hidden->gates weights (transposed), VMEM-resident
    b_ref   : (L, 1, 4H)   combined bias b_ih + b_hh (f32), resident
    h0/c0   : (L, B, H)    initial states (f32)
    out_ref : (B, TT, H)   current time-chunk of last-layer outputs
    hN/cN   : (L, B, H)    final states (f32), written on the last chunk only
    h_scr/c_scr : VMEM (L, B, H) f32 carries (persist across grid iterations)
    """
    H, L, TT, B = hidden_size, num_layers, chunk, batch
    t_blk = pl.program_id(0)
    mm_dtype = wih_ref.dtype          # matmul-input dtype (f32 or bf16)

    @pl.when(t_blk == 0)
    def _():
        h_scr[...] = h0_ref[...].astype(jnp.float32)
        c_scr[...] = c0_ref[...].astype(jnp.float32)

    # Layer-0 input chunk, kept in the matmul dtype.
    layer_in = x_ref[...].astype(mm_dtype)             # (B, TT, H)

    for layer in range(L):
        w_ih = wih_ref[layer]                           # (H, 4H)
        w_hh = whh_ref[layer]                           # (H, 4H)
        bias = b_ref[layer].astype(jnp.float32)         # (1, 4H)

        # Hoisted input projection: one MXU GEMM over the whole chunk
        # (M = B*TT) instead of TT tiny M=B matmuls on the serial path.
        xp = jax.lax.dot_general(
            layer_in, w_ih,
            dimension_numbers=(((2,), (0,)), ((), ())),
            preferred_element_type=jnp.float32)         # (B, TT, 4H) f32
        xp = xp + bias                                  # broadcast (1, 4H)

        h = h_scr[layer]                                # (B, H) f32
        c = c_scr[layer]                                # (B, H) f32
        outs = []
        for i in range(TT):                             # unrolled recurrence
            gates = xp[:, i, :] + jnp.dot(
                h.astype(mm_dtype), w_hh,
                preferred_element_type=jnp.float32)     # (B, 4H) f32
            # PyTorch gate order: i, f, g, o.  Elementwise math stays f32.
            i_g = jax.nn.sigmoid(gates[:, 0 * H:1 * H])
            f_g = jax.nn.sigmoid(gates[:, 1 * H:2 * H])
            g_g = jnp.tanh(gates[:, 2 * H:3 * H])
            o_g = jax.nn.sigmoid(gates[:, 3 * H:4 * H])
            c = f_g * c + i_g * g_g
            h = o_g * jnp.tanh(c)
            outs.append(h)

        h_scr[layer] = h
        c_scr[layer] = c
        # Next layer's input chunk — stays on-chip, no HBM round trip.
        layer_in = jnp.stack(outs, axis=1).astype(mm_dtype)   # (B, TT, H)

    # One dense store of the whole chunk of last-layer outputs.
    out_ref[...] = layer_in.astype(out_ref.dtype)

    @pl.when(t_blk == pl.num_programs(0) - 1)
    def _():
        hN_ref[...] = h_scr[...].astype(hN_ref.dtype)
        cN_ref[...] = c_scr[...].astype(cN_ref.dtype)


def _pick_chunk(T, target=8):
    """Largest chunk <= target that divides T."""
    c = min(target, T)
    while T % c:
        c -= 1
    return c


def lstm_stack_pallas(x_bth, w_ih_all, w_hh_all, bias_all, h0, c0, *,
                      chunk=None):
    """Fused multi-layer LSTM over a batch-first sequence.

    x_bth    : (B, T, H)   activation dtype (f32 or bf16)
    w_ih_all : (L, H, 4H)  already transposed, same dtype as x_bth
    w_hh_all : (L, H, 4H)
    bias_all : (L, 1, 4H)  f32 (b_ih + b_hh)
    h0, c0   : (L, B, H)   f32
    Returns (out (B, T, H), h_n (L, B, H) f32, c_n (L, B, H) f32).
    """
    B, T, H = x_bth.shape
    L = w_ih_all.shape[0]
    if chunk is None:
        chunk = _pick_chunk(T)
    assert T % chunk == 0, "sequence length must be a multiple of the chunk"

    kernel = functools.partial(
        _lstm_stack_kernel, hidden_size=H, num_layers=L, chunk=chunk, batch=B)

    # TODO(synk): on v7x, add a leading batch grid axis marked "parallel" to
    # shard the recurrence across the two TensorCores once B is large enough
    # for (8,128)-aligned batch tiles.
    grid_spec = pltpu.PrefetchScalarGridSpec(
        num_scalar_prefetch=0,
        grid=(T // chunk,),
        in_specs=[
            pl.BlockSpec((B, chunk, H), lambda t: (0, t, 0)),      # x chunk
            pl.BlockSpec((L, H, 4 * H), lambda t: (0, 0, 0)),      # W_ih^T
            pl.BlockSpec((L, H, 4 * H), lambda t: (0, 0, 0)),      # W_hh^T
            pl.BlockSpec((L, 1, 4 * H), lambda t: (0, 0, 0)),      # bias
            pl.BlockSpec((L, B, H), lambda t: (0, 0, 0)),          # h0
            pl.BlockSpec((L, B, H), lambda t: (0, 0, 0)),          # c0
        ],
        out_specs=[
            pl.BlockSpec((B, chunk, H), lambda t: (0, t, 0)),      # out chunk
            pl.BlockSpec((L, B, H), lambda t: (0, 0, 0)),          # final h
            pl.BlockSpec((L, B, H), lambda t: (0, 0, 0)),          # final c
        ],
        scratch_shapes=[
            pltpu.VMEM((L, B, H), jnp.float32),                    # h carry
            pltpu.VMEM((L, B, H), jnp.float32),                    # c carry
        ],
    )

    out, hN, cN = pl.pallas_call(
        kernel,
        out_shape=(
            jax.ShapeDtypeStruct((B, T, H), x_bth.dtype),
            jax.ShapeDtypeStruct((L, B, H), jnp.float32),
            jax.ShapeDtypeStruct((L, B, H), jnp.float32),
        ),
        grid_spec=grid_spec,
        compiler_params=pltpu.CompilerParams(
            dimension_semantics=("arbitrary",),     # time axis is sequential
            vmem_limit_bytes=32 * 1024 * 1024,
        ),
    )(x_bth, w_ih_all, w_hh_all, bias_all, h0, c0)
    return out, hN, cN


def decoder_exp3_forward(params, input_ids, hidden_states=None, *,
                         dtype=jnp.float32, chunk=None):
    """Pallas equivalent of Decoder_exp3.forward.

    input_ids     : (B, T) int32
    hidden_states : (h0, c0) each (num_layers, B, H), or None for zeros
    dtype         : storage dtype for weights/activations (f32 or bf16);
                    accumulation / cell state / gate math is always f32.
    Returns (out (B, T, H) in `dtype`, (h_n, c_n) each (L, B, H) f32).
    """
    embed_table = params["embed"]                    # (num_labels, H)
    H = embed_table.shape[1]
    B, _ = input_ids.shape
    L = len(params["lstm"])

    if hidden_states is None:
        h0 = jnp.zeros((L, B, H), jnp.float32)
        c0 = jnp.zeros((L, B, H), jnp.float32)
    else:
        h0, c0 = hidden_states
        h0 = jnp.asarray(h0, jnp.float32)
        c0 = jnp.asarray(c0, jnp.float32)

    # Embedding lookup (gather) — plain JAX glue; batch-first layout is kept,
    # so there is no (B,T,H) <-> (T,B,H) transpose round trip.
    x = jnp.take(embed_table, input_ids, axis=0).astype(dtype)   # (B, T, H)

    # Stack / transpose weights once, outside the time loop.
    w_ih_all = jnp.stack(
        [jnp.asarray(lp["w_ih"], jnp.float32).T for lp in params["lstm"]]
    ).astype(dtype)                                   # (L, H, 4H)
    w_hh_all = jnp.stack(
        [jnp.asarray(lp["w_hh"], jnp.float32).T for lp in params["lstm"]]
    ).astype(dtype)                                   # (L, H, 4H)
    bias_all = jnp.stack(
        [(jnp.asarray(lp["b_ih"], jnp.float32)
          + jnp.asarray(lp["b_hh"], jnp.float32)).reshape(1, 4 * H)
         for lp in params["lstm"]])                   # (L, 1, 4H) f32

    out, h_n, c_n = lstm_stack_pallas(
        x, w_ih_all, w_hh_all, bias_all, h0, c0, chunk=chunk)
    return out, (h_n, c_n)


def _reference_forward(params, input_ids, hidden_states):
    """Pure-JAX f32 reference (matches torch.nn.LSTM semantics)."""
    embed_table = params["embed"]
    h0_all, c0_all = hidden_states
    x = jnp.take(embed_table, input_ids, axis=0)      # (B, T, H)
    H = embed_table.shape[1]
    h_finals, c_finals = [], []
    for layer, lp in enumerate(params["lstm"]):
        w_ih, w_hh = lp["w_ih"], lp["w_hh"]
        b = lp["b_ih"] + lp["b_hh"]
        h = h0_all[layer]
        c = c0_all[layer]
        outs = []
        for t in range(x.shape[1]):
            gates = x[:, t] @ w_ih.T + h @ w_hh.T + b
            i = jax.nn.sigmoid(gates[:, 0 * H:1 * H])
            f = jax.nn.sigmoid(gates[:, 1 * H:2 * H])
            g = jnp.tanh(gates[:, 2 * H:3 * H])
            o = jax.nn.sigmoid(gates[:, 3 * H:4 * H])
            c = f * c + i * g
            h = o * jnp.tanh(c)
            outs.append(h)
        x = jnp.stack(outs, axis=1)
        h_finals.append(h)
        c_finals.append(c)
    return x, (jnp.stack(h_finals), jnp.stack(c_finals))


def init_params(key, num_labels, hidden_size, layer_nums):
    """Deterministic parameter init mimicking PyTorch shapes/scale."""
    keys = jax.random.split(key, 1 + 4 * layer_nums)
    scale = 1.0 / jnp.sqrt(jnp.float32(hidden_size))
    params = {
        "embed": jax.random.normal(keys[0], (num_labels, hidden_size),
                                   jnp.float32),
        "lstm": [],
    }
    for layer in range(layer_nums):
        k0, k1, k2, k3 = keys[1 + 4 * layer: 5 + 4 * layer]
        params["lstm"].append({
            "w_ih": jax.random.uniform(k0, (4 * hidden_size, hidden_size),
                                       jnp.float32, -scale, scale),
            "w_hh": jax.random.uniform(k1, (4 * hidden_size, hidden_size),
                                       jnp.float32, -scale, scale),
            "b_ih": jax.random.uniform(k2, (4 * hidden_size,),
                                       jnp.float32, -scale, scale),
            "b_hh": jax.random.uniform(k3, (4 * hidden_size,),
                                       jnp.float32, -scale, scale),
        })
    return params


if __name__ == "__main__":
    # Small config consistent with the module: Embedding(num_labels, H),
    # LSTM(H, H, num_layers=layer_nums, batch_first=True).
    num_labels = 16
    hidden_size = 32
    layer_nums = 2
    batch = 2
    seq = 16            # 2 time-chunks of 8 -> exercises the carry across grid steps

    root = jax.random.PRNGKey(0)
    k_params, k_ids, k_h, k_c = jax.random.split(root, 4)

    params = init_params(k_params, num_labels, hidden_size, layer_nums)
    input_ids = jax.random.randint(k_ids, (batch, seq), 0, num_labels,
                                   dtype=jnp.int32)
    h0 = jax.random.normal(k_h, (layer_nums, batch, hidden_size), jnp.float32)
    c0 = jax.random.normal(k_c, (layer_nums, batch, hidden_size), jnp.float32)

    ref_out, (ref_h, ref_c) = _reference_forward(params, input_ids, (h0, c0))

    # float32 path — tight check against the pure-JAX reference.
    out, (h_n, c_n) = decoder_exp3_forward(params, input_ids, (h0, c0),
                                           dtype=jnp.float32)
    jax.block_until_ready((out, h_n, c_n))
    assert out.shape == (batch, seq, hidden_size)
    assert h_n.shape == (layer_nums, batch, hidden_size)
    assert c_n.shape == (layer_nums, batch, hidden_size)
    assert jnp.allclose(out, ref_out, atol=1e-4, rtol=1e-4)
    assert jnp.allclose(h_n, ref_h, atol=1e-4, rtol=1e-4)
    assert jnp.allclose(c_n, ref_c, atol=1e-4, rtol=1e-4)

    # bfloat16 weights/activations path (f32 accumulation + f32 cell state) —
    # loose check against the f32 reference (bf16 storage rounding only).
    out_bf, (h_bf, c_bf) = decoder_exp3_forward(params, input_ids, (h0, c0),
                                                dtype=jnp.bfloat16)
    jax.block_until_ready((out_bf, h_bf, c_bf))
    assert out_bf.dtype == jnp.bfloat16
    assert float(jnp.max(jnp.abs(out_bf.astype(jnp.float32) - ref_out))) < 0.15
    assert float(jnp.max(jnp.abs(h_bf - ref_h))) < 0.15
    assert float(jnp.max(jnp.abs(c_bf - ref_c))) < 0.30

    print("KERNEL_OK")
</pallas_src>

<mosaic_0001>
module attributes {stable_mosaic.version = 11 : i64} {
  func.func @_lstm_stack_kernel(%arg0: i32, %arg1: memref<2x8x32xf32, #tpu.memory_space<vmem>>, %arg2: memref<2x32x128xf32, #tpu.memory_space<vmem>>, %arg3: memref<2x32x128xf32, #tpu.memory_space<vmem>>, %arg4: memref<2x1x128xf32, #tpu.memory_space<vmem>>, %arg5: memref<2x2x32xf32, #tpu.memory_space<vmem>>, %arg6: memref<2x2x32xf32, #tpu.memory_space<vmem>>, %arg7: memref<2x8x32xf32, #tpu.memory_space<vmem>>, %arg8: memref<2x2x32xf32, #tpu.memory_space<vmem>>, %arg9: memref<2x2x32xf32, #tpu.memory_space<vmem>>, %arg10: memref<2x2x32xf32, #tpu.memory_space<vmem>>, %arg11: memref<2x2x32xf32, #tpu.memory_space<vmem>>) attributes {dimension_semantics = [#tpu.dimension_semantics<arbitrary>], iteration_bounds = array<i64: 2>, scalar_prefetch = 0 : i64, scratch_operands = 2 : i64, tpu.core_type = #tpu.core_type<tc>, window_params = [{transform_indices = @transform_0, window_bounds = array<i64: 2, 8, 32>}, {pipeline_mode = #tpu.pipeline_mode<synchronous>, transform_indices = @transform_1, window_bounds = array<i64: 2, 32, 128>}, {pipeline_mode = #tpu.pipeline_mode<synchronous>, transform_indices = @transform_2, window_bounds = array<i64: 2, 32, 128>}, {pipeline_mode = #tpu.pipeline_mode<synchronous>, transform_indices = @transform_3, window_bounds = array<i64: 2, 1, 128>}, {pipeline_mode = #tpu.pipeline_mode<synchronous>, transform_indices = @transform_4, window_bounds = array<i64: 2, 2, 32>}, {pipeline_mode = #tpu.pipeline_mode<synchronous>, transform_indices = @transform_5, window_bounds = array<i64: 2, 2, 32>}, {transform_indices = @transform_6, window_bounds = array<i64: 2, 8, 32>}, {pipeline_mode = #tpu.pipeline_mode<synchronous>, transform_indices = @transform_7, window_bounds = array<i64: 2, 2, 32>}, {pipeline_mode = #tpu.pipeline_mode<synchronous>, transform_indices = @transform_8, window_bounds = array<i64: 2, 2, 32>}]} {
    %c0_i32 = arith.constant 0 : i32
    %0 = arith.cmpi eq, %arg0, %c0_i32 : i32
    %1 = arith.extui %0 : i1 to i32
    %c0_i32_0 = arith.constant 0 : i32
    %2 = arith.cmpi ne, %1, %c0_i32_0 : i32
    scf.if %2 {
      %c0_113 = arith.constant 0 : index
      %c0_114 = arith.constant 0 : index
      %c0_115 = arith.constant 0 : index
      %530 = vector.load %arg5[%c0_113, %c0_114, %c0_115] : memref<2x2x32xf32, #tpu.memory_space<vmem>>, vector<2x2x32xf32>
      %c0_116 = arith.constant 0 : index
      %c0_117 = arith.constant 0 : index
      %c0_118 = arith.constant 0 : index
      %531 = vector.load %arg10[%c0_116, %c0_117, %c0_118] : memref<2x2x32xf32, #tpu.memory_space<vmem>>, vector<2x2x32xf32>
      tpu.vector_store %arg10[%c0_116, %c0_117, %c0_118], %530 {strides = array<i32>} : memref<2x2x32xf32, #tpu.memory_space<vmem>>, vector<2x2x32xf32>,
      %c0_119 = arith.constant 0 : index
      %c0_120 = arith.constant 0 : index
      %c0_121 = arith.constant 0 : index
      %532 = vector.load %arg6[%c0_119, %c0_120, %c0_121] : memref<2x2x32xf32, #tpu.memory_space<vmem>>, vector<2x2x32xf32>
      %c0_122 = arith.constant 0 : index
      %c0_123 = arith.constant 0 : index
      %c0_124 = arith.constant 0 : index
      %533 = vector.load %arg11[%c0_122, %c0_123, %c0_124] : memref<2x2x32xf32, #tpu.memory_space<vmem>>, vector<2x2x32xf32>
      tpu.vector_store %arg11[%c0_122, %c0_123, %c0_124], %532 {strides = array<i32>} : memref<2x2x32xf32, #tpu.memory_space<vmem>>, vector<2x2x32xf32>,
    } else {
    }
    %c0 = arith.constant 0 : index
    %c0_1 = arith.constant 0 : index
    %c0_2 = arith.constant 0 : index
    %3 = vector.load %arg1[%c0, %c0_1, %c0_2] : memref<2x8x32xf32, #tpu.memory_space<vmem>>, vector<2x8x32xf32>
    %c0_3 = arith.constant 0 : index
    %c0_4 = arith.constant 0 : index
    %c0_5 = arith.constant 0 : index
    %4 = vector.load %arg2[%c0_3, %c0_4, %c0_5] : memref<2x32x128xf32, #tpu.memory_space<vmem>>, vector<1x32x128xf32>
    %5 = vector.shape_cast %4 : vector<1x32x128xf32> to vector<32x128xf32>
    %c0_6 = arith.constant 0 : index
    %c0_7 = arith.constant 0 : index
    %c0_8 = arith.constant 0 : index
    %6 = vector.load %arg3[%c0_6, %c0_7, %c0_8] : memref<2x32x128xf32, #tpu.memory_space<vmem>>, vector<1x32x128xf32>
    %7 = vector.shape_cast %6 : vector<1x32x128xf32> to vector<32x128xf32>
    %c0_9 = arith.constant 0 : index
    %c0_10 = arith.constant 0 : index
    %c0_11 = arith.constant 0 : index
    %8 = vector.load %arg4[%c0_9, %c0_10, %c0_11] : memref<2x1x128xf32, #tpu.memory_space<vmem>>, vector<1x1x128xf32>
    %9 = vector.shape_cast %8 : vector<1x1x128xf32> to vector<1x128xf32>
    %cst = arith.constant dense<0.000000e+00> : vector<2x8x128xf32>
    %10 = tpu.matmul %3, %5, %cst {dimension_numbers = #tpu.dot_dimension_numbers<[2], [0], [0, 1], [1], [0, 0, 0, 1, 1, 1], [], []>} : vector<2x8x32xf32>, vector<32x128xf32>, vector<2x8x128xf32> -> vector<2x8x128xf32>
    %11 = vector.shape_cast %9 : vector<1x128xf32> to vector<1x1x128xf32>
    %12 = vector.broadcast %11 : vector<1x1x128xf32> to vector<2x8x128xf32>
    %13 = arith.addf %10, %12 : vector<2x8x128xf32>
    %c0_12 = arith.constant 0 : index
    %c0_13 = arith.constant 0 : index
    %c0_14 = arith.constant 0 : index
    %14 = vector.load %arg10[%c0_12, %c0_13, %c0_14] : memref<2x2x32xf32, #tpu.memory_space<vmem>>, vector<1x2x32xf32>
    %15 = vector.shape_cast %14 : vector<1x2x32xf32> to vector<2x32xf32>
    %c0_15 = arith.constant 0 : index
    %c0_16 = arith.constant 0 : index
    %c0_17 = arith.constant 0 : index
    %16 = vector.load %arg11[%c0_15, %c0_16, %c0_17] : memref<2x2x32xf32, #tpu.memory_space<vmem>>, vector<1x2x32xf32>
    %17 = vector.shape_cast %16 : vector<1x2x32xf32> to vector<2x32xf32>
    %18 = vector.extract_strided_slice %13 {offsets = [0, 0, 0], sizes = [2, 1, 128], strides = [1, 1, 1]} : vector<2x8x128xf32> to vector<2x1x128xf32>
    %19 = vector.shape_cast %18 : vector<2x1x128xf32> to vector<2x128xf32>
    %cst_18 = arith.constant dense<0.000000e+00> : vector<2x128xf32>
    %20 = tpu.matmul %15, %7, %cst_18 {dimension_numbers = #tpu.dot_dimension_numbers<[1], [0], [0], [1], [0, 0, 1, 1], [], []>} : vector<2x32xf32>, vector<32x128xf32>, vector<2x128xf32> -> vector<2x128xf32>
    %21 = arith.addf %19, %20 : vector<2x128xf32>
    %22 = vector.extract_strided_slice %21 {offsets = [0, 0], sizes = [2, 32], strides = [1, 1]} : vector<2x128xf32> to vector<2x32xf32>
    %23 = arith.negf %22 : vector<2x32xf32>
    %24 = math.exp %23 : vector<2x32xf32>
    %cst_19 = arith.constant 1.000000e+00 : f32
    %25 = vector.broadcast %cst_19 : f32 to vector<2x32xf32>
    %26 = arith.addf %25, %24 : vector<2x32xf32>
    %27 = arith.divf %25, %26 : vector<2x32xf32>
    %28 = vector.extract_strided_slice %21 {offsets = [0, 32], sizes = [2, 32], strides = [1, 1]} : vector<2x128xf32> to vector<2x32xf32>
    %29 = arith.negf %28 : vector<2x32xf32>
    %30 = math.exp %29 : vector<2x32xf32>
    %cst_20 = arith.constant 1.000000e+00 : f32
    %31 = vector.broadcast %cst_20 : f32 to vector<2x32xf32>
    %32 = arith.addf %31, %30 : vector<2x32xf32>
    %33 = arith.divf %31, %32 : vector<2x32xf32>
    %34 = vector.extract_strided_slice %21 {offsets = [0, 64], sizes = [2, 32], strides = [1, 1]} : vector<2x128xf32> to vector<2x32xf32>
    %35 = math.tanh %34 : vector<2x32xf32>
    %36 = vector.extract_strided_slice %21 {offsets = [0, 96], sizes = [2, 32], strides = [1, 1]} : vector<2x128xf32> to vector<2x32xf32>
    %37 = arith.negf %36 : vector<2x32xf32>
    %38 = math.exp %37 : vector<2x32xf32>
    %cst_21 = arith.constant 1.000000e+00 : f32
    %39 = vector.broadcast %cst_21 : f32 to vector<2x32xf32>
    %40 = arith.addf %39, %38 : vector<2x32xf32>
    %41 = arith.divf %39, %40 : vector<2x32xf32>
    %42 = arith.mulf %33, %17 : vector<2x32xf32>
    %43 = arith.mulf %27, %35 : vector<2x32xf32>
    %44 = arith.addf %42, %43 : vector<2x32xf32>
    %45 = math.tanh %44 : vector<2x32xf32>
    %46 = arith.mulf %41, %45 : vector<2x32xf32>
    %47 = vector.extract_strided_slice %13 {offsets = [0, 1, 0], sizes = [2, 1, 128], strides = [1, 1, 1]} : vector<2x8x128xf32> to vector<2x1x128xf32>
    %48 = vector.shape_cast %47 : vector<2x1x128xf32> to vector<2x128xf32>
    %cst_22 = arith.constant dense<0.000000e+00> : vector<2x128xf32>
    %49 = tpu.matmul %46, %7, %cst_22 {dimension_numbers = #tpu.dot_dimension_numbers<[1], [0], [0], [1], [0, 0, 1, 1], [], []>} : vector<2x32xf32>, vector<32x128xf32>, vector<2x128xf32> -> vector<2x128xf32>
    %50 = arith.addf %48, %49 : vector<2x128xf32>
    %51 = vector.extract_strided_slice %50 {offsets = [0, 0], sizes = [2, 32], strides = [1, 1]} : vector<2x128xf32> to vector<2x32xf32>
    %52 = arith.negf %51 : vector<2x32xf32>
    %53 = math.exp %52 : vector<2x32xf32>
    %cst_23 = arith.constant 1.000000e+00 : f32
    %54 = vector.broadcast %cst_23 : f32 to vector<2x32xf32>
    %55 = arith.addf %54, %53 : vector<2x32xf32>
    %56 = arith.divf %54, %55 : vector<2x32xf32>
    %57 = vector.extract_strided_slice %50 {offsets = [0, 32], sizes = [2, 32], strides = [1, 1]} : vector<2x128xf32> to vector<2x32xf32>
    %58 = arith.negf %57 : vector<2x32xf32>
    %59 = math.exp %58 : vector<2x32xf32>
    %cst_24 = arith.constant 1.000000e+00 : f32
    %60 = vector.broadcast %cst_24 : f32 to vector<2x32xf32>
    %61 = arith.addf %60, %59 : vector<2x32xf32>
    %62 = arith.divf %60, %61 : vector<2x32xf32>
    %63 = vector.extract_strided_slice %50 {offsets = [0, 64], sizes = [2, 32], strides = [1, 1]} : vector<2x128xf32> to vector<2x32xf32>
    %64 = math.tanh %63 : vector<2x32xf32>
    %65 = vector.extract_strided_slice %50 {offsets = [0, 96], sizes = [2, 32], strides = [1, 1]} : vector<2x128xf32> to vector<2x32xf32>
    %66 = arith.negf %65 : vector<2x32xf32>
    %67 = math.exp %66 : vector<2x32xf32>
    %cst_25 = arith.constant 1.000000e+00 : f32
    %68 = vector.broadcast %cst_25 : f32 to vector<2x32xf32>
    %69 = arith.addf %68, %67 : vector<2x32xf32>
    %70 = arith.divf %68, %69 : vector<2x32xf32>
    %71 = arith.mulf %62, %44 : vector<2x32xf32>
    %72 = arith.mulf %56, %64 : vector<2x32xf32>
    %73 = arith.addf %71, %72 : vector<2x32xf32>
    %74 = math.tanh %73 : vector<2x32xf32>
    %75 = arith.mulf %70, %74 : vector<2x32xf32>
    %76 = vector.extract_strided_slice %13 {offsets = [0, 2, 0], sizes = [2, 1, 128], strides = [1, 1, 1]} : vector<2x8x128xf32> to vector<2x1x128xf32>
    %77 = vector.shape_cast %76 : vector<2x1x128xf32> to vector<2x128xf32>
    %cst_26 = arith.constant dense<0.000000e+00> : vector<2x128xf32>
    %78 = tpu.matmul %75, %7, %cst_26 {dimension_numbers = #tpu.dot_dimension_numbers<[1], [0], [0], [1], [0, 0, 1, 1], [], []>} : vector<2x32xf32>, vector<32x128xf32>, vector<2x128xf32> -> vector<2x128xf32>
    %79 = arith.addf %77, %78 : vector<2x128xf32>
    %80 = vector.extract_strided_slice %79 {offsets = [0, 0], sizes = [2, 32], strides = [1, 1]} : vector<2x128xf32> to vector<2x32xf32>
    %81 = arith.negf %80 : vector<2x32xf32>
    %82 = math.exp %81 : vector<2x32xf32>
    %cst_27 = arith.constant 1.000000e+00 : f32
    %83 = vector.broadcast %cst_27 : f32 to vector<2x32xf32>
    %84 = arith.addf %83, %82 : vector<2x32xf32>
    %85 = arith.divf %83, %84 : vector<2x32xf32>
    %86 = vector.extract_strided_slice %79 {offsets = [0, 32], sizes = [2, 32], strides = [1, 1]} : vector<2x128xf32> to vector<2x32xf32>
    %87 = arith.negf %86 : vector<2x32xf32>
    %88 = math.exp %87 : vector<2x32xf32>
    %cst_28 = arith.constant 1.000000e+00 : f32
    %89 = vector.broadcast %cst_28 : f32 to vector<2x32xf32>
    %90 = arith.addf %89, %88 : vector<2x32xf32>
    %91 = arith.divf %89, %90 : vector<2x32xf32>
    %92 = vector.extract_strided_slice %79 {offsets = [0, 64], sizes = [2, 32], strides = [1, 1]} : vector<2x128xf32> to vector<2x32xf32>
    %93 = math.tanh %92 : vector<2x32xf32>
    %94 = vector.extract_strided_slice %79 {offsets = [0, 96], sizes = [2, 32], strides = [1, 1]} : vector<2x128xf32> to vector<2x32xf32>
    %95 = arith.negf %94 : vector<2x32xf32>
    %96 = math.exp %95 : vector<2x32xf32>
    %cst_29 = arith.constant 1.000000e+00 : f32
    %97 = vector.broadcast %cst_29 : f32 to vector<2x32xf32>
    %98 = arith.addf %97, %96 : vector<2x32xf32>
    %99 = arith.divf %97, %98 : vector<2x32xf32>
    %100 = arith.mulf %91, %73 : vector<2x32xf32>
    %101 = arith.mulf %85, %93 : vector<2x32xf32>
    %102 = arith.addf %100, %101 : vector<2x32xf32>
    %103 = math.tanh %102 : vector<2x32xf32>
    %104 = arith.mulf %99, %103 : vector<2x32xf32>
    %105 = vector.extract_strided_slice %13 {offsets = [0, 3, 0], sizes = [2, 1, 128], strides = [1, 1, 1]} : vector<2x8x128xf32> to vector<2x1x128xf32>
    %106 = vector.shape_cast %105 : vector<2x1x128xf32> to vector<2x128xf32>
    %cst_30 = arith.constant dense<0.000000e+00> : vector<2x128xf32>
    %107 = tpu.matmul %104, %7, %cst_30 {dimension_numbers = #tpu.dot_dimension_numbers<[1], [0], [0], [1], [0, 0, 1, 1], [], []>} : vector<2x32xf32>, vector<32x128xf32>, vector<2x128xf32> -> vector<2x128xf32>
    %108 = arith.addf %106, %107 : vector<2x128xf32>
    %109 = vector.extract_strided_slice %108 {offsets = [0, 0], sizes = [2, 32], strides = [1, 1]} : vector<2x128xf32> to vector<2x32xf32>
    %110 = arith.negf %109 : vector<2x32xf32>
    %111 = math.exp %110 : vector<2x32xf32>
    %cst_31 = arith.constant 1.000000e+00 : f32
    %112 = vector.broadcast %cst_31 : f32 to vector<2x32xf32>
    %113 = arith.addf %112, %111 : vector<2x32xf32>
    %114 = arith.divf %112, %113 : vector<2x32xf32>
    %115 = vector.extract_strided_slice %108 {offsets = [0, 32], sizes = [2, 32], strides = [1, 1]} : vector<2x128xf32> to vector<2x32xf32>
    %116 = arith.negf %115 : vector<2x32xf32>
    %117 = math.exp %116 : vector<2x32xf32>
    %cst_32 = arith.constant 1.000000e+00 : f32
    %118 = vector.broadcast %cst_32 : f32 to vector<2x32xf32>
    %119 = arith.addf %118, %117 : vector<2x32xf32>
    %120 = arith.divf %118, %119 : vector<2x32xf32>
    %121 = vector.extract_strided_slice %108 {offsets = [0, 64], sizes = [2, 32], strides = [1, 1]} : vector<2x128xf32> to vector<2x32xf32>
    %122 = math.tanh %121 : vector<2x32xf32>
    %123 = vector.extract_strided_slice %108 {offsets = [0, 96], sizes = [2, 32], strides = [1, 1]} : vector<2x128xf32> to vector<2x32xf32>
    %124 = arith.negf %123 : vector<2x32xf32>
    %125 = math.exp %124 : vector<2x32xf32>
    %cst_33 = arith.constant 1.000000e+00 : f32
    %126 = vector.broadcast %cst_33 : f32 to vector<2x32xf32>
    %127 = arith.addf %126, %125 : vector<2x32xf32>
    %128 = arith.divf %126, %127 : vector<2x32xf32>
    %129 = arith.mulf %120, %102 : vector<2x32xf32>
    %130 = arith.mulf %114, %122 : vector<2x32xf32>
    %131 = arith.addf %129, %130 : vector<2x32xf32>
    %132 = math.tanh %131 : vector<2x32xf32>
    %133 = arith.mulf %128, %132 : vector<2x32xf32>
    %134 = vector.extract_strided_slice %13 {offsets = [0, 4, 0], sizes = [2, 1, 128], strides = [1, 1, 1]} : vector<2x8x128xf32> to vector<2x1x128xf32>
    %135 = vector.shape_cast %134 : vector<2x1x128xf32> to vector<2x128xf32>
    %cst_34 = arith.constant dense<0.000000e+00> : vector<2x128xf32>
    %136 = tpu.matmul %133, %7, %cst_34 {dimension_numbers = #tpu.dot_dimension_numbers<[1], [0], [0], [1], [0, 0, 1, 1], [], []>} : vector<2x32xf32>, vector<32x128xf32>, vector<2x128xf32> -> vector<2x128xf32>
    %137 = arith.addf %135, %136 : vector<2x128xf32>
    %138 = vector.extract_strided_slice %137 {offsets = [0, 0], sizes = [2, 32], strides = [1, 1]} : vector<2x128xf32> to vector<2x32xf32>
    %139 = arith.negf %138 : vector<2x32xf32>
    %140 = math.exp %139 : vector<2x32xf32>
    %cst_35 = arith.constant 1.000000e+00 : f32
    %141 = vector.broadcast %cst_35 : f32 to vector<2x32xf32>
    %142 = arith.addf %141, %140 : vector<2x32xf32>
    %143 = arith.divf %141, %142 : vector<2x32xf32>
    %144 = vector.extract_strided_slice %137 {offsets = [0, 32], sizes = [2, 32], strides = [1, 1]} : vector<2x128xf32> to vector<2x32xf32>
    %145 = arith.negf %144 : vector<2x32xf32>
    %146 = math.exp %145 : vector<2x32xf32>
    %cst_36 = arith.constant 1.000000e+00 : f32
    %147 = vector.broadcast %cst_36 : f32 to vector<2x32xf32>
    %148 = arith.addf %147, %146 : vector<2x32xf32>
    %149 = arith.divf %147, %148 : vector<2x32xf32>
    %150 = vector.extract_strided_slice %137 {offsets = [0, 64], sizes = [2, 32], strides = [1, 1]} : vector<2x128xf32> to vector<2x32xf32>
    %151 = math.tanh %150 : vector<2x32xf32>
    %152 = vector.extract_strided_slice %137 {offsets = [0, 96], sizes = [2, 32], strides = [1, 1]} : vector<2x128xf32> to vector<2x32xf32>
    %153 = arith.negf %152 : vector<2x32xf32>
    %154 = math.exp %153 : vector<2x32xf32>
    %cst_37 = arith.constant 1.000000e+00 : f32
    %155 = vector.broadcast %cst_37 : f32 to vector<2x32xf32>
    %156 = arith.addf %155, %154 : vector<2x32xf32>
    %157 = arith.divf %155, %156 : vector<2x32xf32>
    %158 = arith.mulf %149, %131 : vector<2x32xf32>
    %159 = arith.mulf %143, %151 : vector<2x32xf32>
    %160 = arith.addf %158, %159 : vector<2x32xf32>
    %161 = math.tanh %160 : vector<2x32xf32>
    %162 = arith.mulf %157, %161 : vector<2x32xf32>
    %163 = vector.extract_strided_slice %13 {offsets = [0, 5, 0], sizes = [2, 1, 128], strides = [1, 1, 1]} : vector<2x8x128xf32> to vector<2x1x128xf32>
    %164 = vector.shape_cast %163 : vector<2x1x128xf32> to vector<2x128xf32>
    %cst_38 = arith.constant dense<0.000000e+00> : vector<2x128xf32>
    %165 = tpu.matmul %162, %7, %cst_38 {dimension_numbers = #tpu.dot_dimension_numbers<[1], [0], [0], [1], [0, 0, 1, 1], [], []>} : vector<2x32xf32>, vector<32x128xf32>, vector<2x128xf32> -> vector<2x128xf32>
    %166 = arith.addf %164, %165 : vector<2x128xf32>
    %167 = vector.extract_strided_slice %166 {offsets = [0, 0], sizes = [2, 32], strides = [1, 1]} : vector<2x128xf32> to vector<2x32xf32>
    %168 = arith.negf %167 : vector<2x32xf32>
    %169 = math.exp %168 : vector<2x32xf32>
    %cst_39 = arith.constant 1.000000e+00 : f32
    %170 = vector.broadcast %cst_39 : f32 to vector<2x32xf32>
    %171 = arith.addf %170, %169 : vector<2x32xf32>
    %172 = arith.divf %170, %171 : vector<2x32xf32>
    %173 = vector.extract_strided_slice %166 {offsets = [0, 32], sizes = [2, 32], strides = [1, 1]} : vector<2x128xf32> to vector<2x32xf32>
    %174 = arith.negf %173 : vector<2x32xf32>
    %175 = math.exp %174 : vector<2x32xf32>
    %cst_40 = arith.constant 1.000000e+00 : f32
    %176 = vector.broadcast %cst_40 : f32 to vector<2x32xf32>
    %177 = arith.addf %176, %175 : vector<2x32xf32>
    %178 = arith.divf %176, %177 : vector<2x32xf32>
    %179 = vector.extract_strided_slice %166 {offsets = [0, 64], sizes = [2, 32], strides = [1, 1]} : vector<2x128xf32> to vector<2x32xf32>
    %180 = math.tanh %179 : vector<2x32xf32>
    %181 = vector.extract_strided_slice %166 {offsets = [0, 96], sizes = [2, 32], strides = [1, 1]} : vector<2x128xf32> to vector<2x32xf32>
    %182 = arith.negf %181 : vector<2x32xf32>
    %183 = math.exp %182 : vector<2x32xf32>
    %cst_41 = arith.constant 1.000000e+00 : f32
    %184 = vector.broadcast %cst_41 : f32 to vector<2x32xf32>
    %185 = arith.addf %184, %183 : vector<2x32xf32>
    %186 = arith.divf %184, %185 : vector<2x32xf32>
    %187 = arith.mulf %178, %160 : vector<2x32xf32>
    %188 = arith.mulf %172, %180 : vector<2x32xf32>
    %189 = arith.addf %187, %188 : vector<2x32xf32>
    %190 = math.tanh %189 : vector<2x32xf32>
    %191 = arith.mulf %186, %190 : vector<2x32xf32>
    %192 = vector.extract_strided_slice %13 {offsets = [0, 6, 0], sizes = [2, 1, 128], strides = [1, 1, 1]} : vector<2x8x128xf32> to vector<2x1x128xf32>
    %193 = vector.shape_cast %192 : vector<2x1x128xf32> to vector<2x128xf32>
    %cst_42 = arith.constant dense<0.000000e+00> : vector<2x128xf32>
    %194 = tpu.matmul %191, %7, %cst_42 {dimension_numbers = #tpu.dot_dimension_numbers<[1], [0], [0], [1], [0, 0, 1, 1], [], []>} : vector<2x32xf32>, vector<32x128xf32>, vector<2x128xf32> -> vector<2x128xf32>
    %195 = arith.addf %193, %194 : vector<2x128xf32>
    %196 = vector.extract_strided_slice %195 {offsets = [0, 0], sizes = [2, 32], strides = [1, 1]} : vector<2x128xf32> to vector<2x32xf32>
    %197 = arith.negf %196 : vector<2x32xf32>
    %198 = math.exp %197 : vector<2x32xf32>
    %cst_43 = arith.constant 1.000000e+00 : f32
    %199 = vector.broadcast %cst_43 : f32 to vector<2x32xf32>
    %200 = arith.addf %199, %198 : vector<2x32xf32>
    %201 = arith.divf %199, %200 : vector<2x32xf32>
    %202 = vector.extract_strided_slice %195 {offsets = [0, 32], sizes = [2, 32], strides = [1, 1]} : vector<2x128xf32> to vector<2x32xf32>
    %203 = arith.negf %202 : vector<2x32xf32>
    %204 = math.exp %203 : vector<2x32xf32>
    %cst_44 = arith.constant 1.000000e+00 : f32
    %205 = vector.broadcast %cst_44 : f32 to vector<2x32xf32>
    %206 = arith.addf %205, %204 : vector<2x32xf32>
    %207 = arith.divf %205, %206 : vector<2x32xf32>
    %208 = vector.extract_strided_slice %195 {offsets = [0, 64], sizes = [2, 32], strides = [1, 1]} : vector<2x128xf32> to vector<2x32xf32>
    %209 = math.tanh %208 : vector<2x32xf32>
    %210 = vector.extract_strided_slice %195 {offsets = [0, 96], sizes = [2, 32], strides = [1, 1]} : vector<2x128xf32> to vector<2x32xf32>
    %211 = arith.negf %210 : vector<2x32xf32>
    %212 = math.exp %211 : vector<2x32xf32>
    %cst_45 = arith.constant 1.000000e+00 : f32
    %213 = vector.broadcast %cst_45 : f32 to vector<2x32xf32>
    %214 = arith.addf %213, %212 : vector<2x32xf32>
    %215 = arith.divf %213, %214 : vector<2x32xf32>
    %216 = arith.mulf %207, %189 : vector<2x32xf32>
    %217 = arith.mulf %201, %209 : vector<2x32xf32>
    %218 = arith.addf %216, %217 : vector<2x32xf32>
    %219 = math.tanh %218 : vector<2x32xf32>
    %220 = arith.mulf %215, %219 : vector<2x32xf32>
    %221 = vector.extract_strided_slice %13 {offsets = [0, 7, 0], sizes = [2, 1, 128], strides = [1, 1, 1]} : vector<2x8x128xf32> to vector<2x1x128xf32>
    %222 = vector.shape_cast %221 : vector<2x1x128xf32> to vector<2x128xf32>
    %cst_46 = arith.constant dense<0.000000e+00> : vector<2x128xf32>
    %223 = tpu.matmul %220, %7, %cst_46 {dimension_numbers = #tpu.dot_dimension_numbers<[1], [0], [0], [1], [0, 0, 1, 1], [], []>} : vector<2x32xf32>, vector<32x128xf32>, vector<2x128xf32> -> vector<2x128xf32>
    %224 = arith.addf %222, %223 : vector<2x128xf32>
    %225 = vector.extract_strided_slice %224 {offsets = [0, 0], sizes = [2, 32], strides = [1, 1]} : vector<2x128xf32> to vector<2x32xf32>
    %226 = arith.negf %225 : vector<2x32xf32>
    %227 = math.exp %226 : vector<2x32xf32>
    %cst_47 = arith.constant 1.000000e+00 : f32
    %228 = vector.broadcast %cst_47 : f32 to vector<2x32xf32>
    %229 = arith.addf %228, %227 : vector<2x32xf32>
    %230 = arith.divf %228, %229 : vector<2x32xf32>
    %231 = vector.extract_strided_slice %224 {offsets = [0, 32], sizes = [2, 32], strides = [1, 1]} : vector<2x128xf32> to vector<2x32xf32>
    %232 = arith.negf %231 : vector<2x32xf32>
    %233 = math.exp %232 : vector<2x32xf32>
    %cst_48 = arith.constant 1.000000e+00 : f32
    %234 = vector.broadcast %cst_48 : f32 to vector<2x32xf32>
    %235 = arith.addf %234, %233 : vector<2x32xf32>
    %236 = arith.divf %234, %235 : vector<2x32xf32>
    %237 = vector.extract_strided_slice %224 {offsets = [0, 64], sizes = [2, 32], strides = [1, 1]} : vector<2x128xf32> to vector<2x32xf32>
    %238 = math.tanh %237 : vector<2x32xf32>
    %239 = vector.extract_strided_slice %224 {offsets = [0, 96], sizes = [2, 32], strides = [1, 1]} : vector<2x128xf32> to vector<2x32xf32>
    %240 = arith.negf %239 : vector<2x32xf32>
    %241 = math.exp %240 : vector<2x32xf32>
    %cst_49 = arith.constant 1.000000e+00 : f32
    %242 = vector.broadcast %cst_49 : f32 to vector<2x32xf32>
    %243 = arith.addf %242, %241 : vector<2x32xf32>
    %244 = arith.divf %242, %243 : vector<2x32xf32>
    %245 = arith.mulf %236, %218 : vector<2x32xf32>
    %246 = arith.mulf %230, %238 : vector<2x32xf32>
    %247 = arith.addf %245, %246 : vector<2x32xf32>
    %248 = math.tanh %247 : vector<2x32xf32>
    %249 = arith.mulf %244, %248 : vector<2x32xf32>
    %c0_50 = arith.constant 0 : index
    %c0_51 = arith.constant 0 : index
    %c0_52 = arith.constant 0 : index
    %250 = vector.load %arg10[%c0_50, %c0_51, %c0_52] : memref<2x2x32xf32, #tpu.memory_space<vmem>>, vector<1x2x32xf32>
    %251 = vector.shape_cast %250 : vector<1x2x32xf32> to vector<2x32xf32>
    %252 = vector.shape_cast %249 : vector<2x32xf32> to vector<1x2x32xf32>
    tpu.vector_store %arg10[%c0_50, %c0_51, %c0_52], %252 {strides = array<i32>} : memref<2x2x32xf32, #tpu.memory_space<vmem>>, vector<1x2x32xf32>,
    %c0_53 = arith.constant 0 : index
    %c0_54 = arith.constant 0 : index
    %c0_55 = arith.constant 0 : index
    %253 = vector.load %arg11[%c0_53, %c0_54, %c0_55] : memref<2x2x32xf32, #tpu.memory_space<vmem>>, vector<1x2x32xf32>
    %254 = vector.shape_cast %253 : vector<1x2x32xf32> to vector<2x32xf32>
    %255 = vector.shape_cast %247 : vector<2x32xf32> to vector<1x2x32xf32>
    tpu.vector_store %arg11[%c0_53, %c0_54, %c0_55], %255 {strides = array<i32>} : memref<2x2x32xf32, #tpu.memory_space<vmem>>, vector<1x2x32xf32>,
    %256 = vector.shape_cast %46 : vector<2x32xf32> to vector<2x1x32xf32>
    %257 = vector.shape_cast %75 : vector<2x32xf32> to vector<2x1x32xf32>
    %258 = vector.shape_cast %104 : vector<2x32xf32> to vector<2x1x32xf32>
    %259 = vector.shape_cast %133 : vector<2x32xf32> to vector<2x1x32xf32>
    %260 = vector.shape_cast %162 : vector<2x32xf32> to vector<2x1x32xf32>
    %261 = vector.shape_cast %191 : vector<2x32xf32> to vector<2x1x32xf32>
    %262 = vector.shape_cast %220 : vector<2x32xf32> to vector<2x1x32xf32>
    %263 = vector.shape_cast %249 : vector<2x32xf32> to vector<2x1x32xf32>
    %264 = tpu.concatenate %256, %257, %258, %259, %260, %261, %262, %263 in 1 : vector<2x1x32xf32>, vector<2x1x32xf32>, vector<2x1x32xf32>, vector<2x1x32xf32>, vector<2x1x32xf32>, vector<2x1x32xf32>, vector<2x1x32xf32>, vector<2x1x32xf32> -> vector<2x8x32xf32>
    %c1 = arith.constant 1 : index
    %c0_56 = arith.constant 0 : index
    %c0_57 = arith.constant 0 : index
    %265 = vector.load %arg2[%c1, %c0_56, %c0_57] : memref<2x32x128xf32, #tpu.memory_space<vmem>>, vector<1x32x128xf32>
    %266 = vector.shape_cast %265 : vector<1x32x128xf32> to vector<32x128xf32>
    %c1_58 = arith.constant 1 : index
    %c0_59 = arith.constant 0 : index
    %c0_60 = arith.constant 0 : index
    %267 = vector.load %arg3[%c1_58, %c0_59, %c0_60] : memref<2x32x128xf32, #tpu.memory_space<vmem>>, vector<1x32x128xf32>
    %268 = vector.shape_cast %267 : vector<1x32x128xf32> to vector<32x128xf32>
    %c1_61 = arith.constant 1 : index
    %c0_62 = arith.constant 0 : index
    %c0_63 = arith.constant 0 : index
    %269 = vector.load %arg4[%c1_61, %c0_62, %c0_63] : memref<2x1x128xf32, #tpu.memory_space<vmem>>, vector<1x1x128xf32>
    %270 = vector.shape_cast %269 : vector<1x1x128xf32> to vector<1x128xf32>
    %cst_64 = arith.constant dense<0.000000e+00> : vector<2x8x128xf32>
    %271 = tpu.matmul %264, %266, %cst_64 {dimension_numbers = #tpu.dot_dimension_numbers<[2], [0], [0, 1], [1], [0, 0, 0, 1, 1, 1], [], []>} : vector<2x8x32xf32>, vector<32x128xf32>, vector<2x8x128xf32> -> vector<2x8x128xf32>
    %272 = vector.shape_cast %270 : vector<1x128xf32> to vector<1x1x128xf32>
    %273 = vector.broadcast %272 : vector<1x1x128xf32> to vector<2x8x128xf32>
    %274 = arith.addf %271, %273 : vector<2x8x128xf32>
    %c1_65 = arith.constant 1 : index
    %c0_66 = arith.constant 0 : index
    %c0_67 = arith.constant 0 : index
    %275 = vector.load %arg10[%c1_65, %c0_66, %c0_67] : memref<2x2x32xf32, #tpu.memory_space<vmem>>, vector<1x2x32xf32>
    %276 = vector.shape_cast %275 : vector<1x2x32xf32> to vector<2x32xf32>
    %c1_68 = arith.constant 1 : index
    %c0_69 = arith.constant 0 : index
    %c0_70 = arith.constant 0 : index
    %277 = vector.load %arg11[%c1_68, %c0_69, %c0_70] : memref<2x2x32xf32, #tpu.memory_space<vmem>>, vector<1x2x32xf32>
    %278 = vector.shape_cast %277 : vector<1x2x32xf32> to vector<2x32xf32>
    %279 = vector.extract_strided_slice %274 {offsets = [0, 0, 0], sizes = [2, 1, 128], strides = [1, 1, 1]} : vector<2x8x128xf32> to vector<2x1x128xf32>
    %280 = vector.shape_cast %279 : vector<2x1x128xf32> to vector<2x128xf32>
    %cst_71 = arith.constant dense<0.000000e+00> : vector<2x128xf32>
    %281 = tpu.matmul %276, %268, %cst_71 {dimension_numbers = #tpu.dot_dimension_numbers<[1], [0], [0], [1], [0, 0, 1, 1], [], []>} : vector<2x32xf32>, vector<32x128xf32>, vector<2x128xf32> -> vector<2x128xf32>
    %282 = arith.addf %280, %281 : vector<2x128xf32>
    %283 = vector.extract_strided_slice %282 {offsets = [0, 0], sizes = [2, 32], strides = [1, 1]} : vector<2x128xf32> to vector<2x32xf32>
    %284 = arith.negf %283 : vector<2x32xf32>
    %285 = math.exp %284 : vector<2x32xf32>
    %cst_72 = arith.constant 1.000000e+00 : f32
    %286 = vector.broadcast %cst_72 : f32 to vector<2x32xf32>
    %287 = arith.addf %286, %285 : vector<2x32xf32>
    %288 = arith.divf %286, %287 : vector<2x32xf32>
    %289 = vector.extract_strided_slice %282 {offsets = [0, 32], sizes = [2, 32], strides = [1, 1]} : vector<2x128xf32> to vector<2x32xf32>
    %290 = arith.negf %289 : vector<2x32xf32>
    %291 = math.exp %290 : vector<2x32xf32>
    %cst_73 = arith.constant 1.000000e+00 : f32
    %292 = vector.broadcast %cst_73 : f32 to vector<2x32xf32>
    %293 = arith.addf %292, %291 : vector<2x32xf32>
    %294 = arith.divf %292, %293 : vector<2x32xf32>
    %295 = vector.extract_strided_slice %282 {offsets = [0, 64], sizes = [2, 32], strides = [1, 1]} : vector<2x128xf32> to vector<2x32xf32>
    %296 = math.tanh %295 : vector<2x32xf32>
    %297 = vector.extract_strided_slice %282 {offsets = [0, 96], sizes = [2, 32], strides = [1, 1]} : vector<2x128xf32> to vector<2x32xf32>
    %298 = arith.negf %297 : vector<2x32xf32>
    %299 = math.exp %298 : vector<2x32xf32>
    %cst_74 = arith.constant 1.000000e+00 : f32
    %300 = vector.broadcast %cst_74 : f32 to vector<2x32xf32>
    %301 = arith.addf %300, %299 : vector<2x32xf32>
    %302 = arith.divf %300, %301 : vector<2x32xf32>
    %303 = arith.mulf %294, %278 : vector<2x32xf32>
    %304 = arith.mulf %288, %296 : vector<2x32xf32>
    %305 = arith.addf %303, %304 : vector<2x32xf32>
    %306 = math.tanh %305 : vector<2x32xf32>
    %307 = arith.mulf %302, %306 : vector<2x32xf32>
    %308 = vector.extract_strided_slice %274 {offsets = [0, 1, 0], sizes = [2, 1, 128], strides = [1, 1, 1]} : vector<2x8x128xf32> to vector<2x1x128xf32>
    %309 = vector.shape_cast %308 : vector<2x1x128xf32> to vector<2x128xf32>
    %cst_75 = arith.constant dense<0.000000e+00> : vector<2x128xf32>
    %310 = tpu.matmul %307, %268, %cst_75 {dimension_numbers = #tpu.dot_dimension_numbers<[1], [0], [0], [1], [0, 0, 1, 1], [], []>} : vector<2x32xf32>, vector<32x128xf32>, vector<2x128xf32> -> vector<2x128xf32>
    %311 = arith.addf %309, %310 : vector<2x128xf32>
    %312 = vector.extract_strided_slice %311 {offsets = [0, 0], sizes = [2, 32], strides = [1, 1]} : vector<2x128xf32> to vector<2x32xf32>
    %313 = arith.negf %312 : vector<2x32xf32>
    %314 = math.exp %313 : vector<2x32xf32>
    %cst_76 = arith.constant 1.000000e+00 : f32
    %315 = vector.broadcast %cst_76 : f32 to vector<2x32xf32>
    %316 = arith.addf %315, %314 : vector<2x32xf32>
    %317 = arith.divf %315, %316 : vector<2x32xf32>
    %318 = vector.extract_strided_slice %311 {offsets = [0, 32], sizes = [2, 32], strides = [1, 1]} : vector<2x128xf32> to vector<2x32xf32>
    %319 = arith.negf %318 : vector<2x32xf32>
    %320 = math.exp %319 : vector<2x32xf32>
    %cst_77 = arith.constant 1.000000e+00 : f32
    %321 = vector.broadcast %cst_77 : f32 to vector<2x32xf32>
    %322 = arith.addf %321, %320 : vector<2x32xf32>
    %323 = arith.divf %321, %322 : vector<2x32xf32>
    %324 = vector.extract_strided_slice %311 {offsets = [0, 64], sizes = [2, 32], strides = [1, 1]} : vector<2x128xf32> to vector<2x32xf32>
    %325 = math.tanh %324 : vector<2x32xf32>
    %326 = vector.extract_strided_slice %311 {offsets = [0, 96], sizes = [2, 32], strides = [1, 1]} : vector<2x128xf32> to vector<2x32xf32>
    %327 = arith.negf %326 : vector<2x32xf32>
    %328 = math.exp %327 : vector<2x32xf32>
    %cst_78 = arith.constant 1.000000e+00 : f32
    %329 = vector.broadcast %cst_78 : f32 to vector<2x32xf32>
    %330 = arith.addf %329, %328 : vector<2x32xf32>
    %331 = arith.divf %329, %330 : vector<2x32xf32>
    %332 = arith.mulf %323, %305 : vector<2x32xf32>
    %333 = arith.mulf %317, %325 : vector<2x32xf32>
    %334 = arith.addf %332, %333 : vector<2x32xf32>
    %335 = math.tanh %334 : vector<2x32xf32>
    %336 = arith.mulf %331, %335 : vector<2x32xf32>
    %337 = vector.extract_strided_slice %274 {offsets = [0, 2, 0], sizes = [2, 1, 128], strides = [1, 1, 1]} : vector<2x8x128xf32> to vector<2x1x128xf32>
    %338 = vector.shape_cast %337 : vector<2x1x128xf32> to vector<2x128xf32>
    %cst_79 = arith.constant dense<0.000000e+00> : vector<2x128xf32>
    %339 = tpu.matmul %336, %268, %cst_79 {dimension_numbers = #tpu.dot_dimension_numbers<[1], [0], [0], [1], [0, 0, 1, 1], [], []>} : vector<2x32xf32>, vector<32x128xf32>, vector<2x128xf32> -> vector<2x128xf32>
    %340 = arith.addf %338, %339 : vector<2x128xf32>
    %341 = vector.extract_strided_slice %340 {offsets = [0, 0], sizes = [2, 32], strides = [1, 1]} : vector<2x128xf32> to vector<2x32xf32>
    %342 = arith.negf %341 : vector<2x32xf32>
    %343 = math.exp %342 : vector<2x32xf32>
    %cst_80 = arith.constant 1.000000e+00 : f32
    %344 = vector.broadcast %cst_80 : f32 to vector<2x32xf32>
    %345 = arith.addf %344, %343 : vector<2x32xf32>
    %346 = arith.divf %344, %345 : vector<2x32xf32>
    %347 = vector.extract_strided_slice %340 {offsets = [0, 32], sizes = [2, 32], strides = [1, 1]} : vector<2x128xf32> to vector<2x32xf32>
    %348 = arith.negf %347 : vector<2x32xf32>
    %349 = math.exp %348 : vector<2x32xf32>
    %cst_81 = arith.constant 1.000000e+00 : f32
    %350 = vector.broadcast %cst_81 : f32 to vector<2x32xf32>
    %351 = arith.addf %350, %349 : vector<2x32xf32>
    %352 = arith.divf %350, %351 : vector<2x32xf32>
    %353 = vector.extract_strided_slice %340 {offsets = [0, 64], sizes = [2, 32], strides = [1, 1]} : vector<2x128xf32> to vector<2x32xf32>
    %354 = math.tanh %353 : vector<2x32xf32>
    %355 = vector.extract_strided_slice %340 {offsets = [0, 96], sizes = [2, 32], strides = [1, 1]} : vector<2x128xf32> to vector<2x32xf32>
    %356 = arith.negf %355 : vector<2x32xf32>
    %357 = math.exp %356 : vector<2x32xf32>
    %cst_82 = arith.constant 1.000000e+00 : f32
    %358 = vector.broadcast %cst_82 : f32 to vector<2x32xf32>
    %359 = arith.addf %358, %357 : vector<2x32xf32>
    %360 = arith.divf %358, %359 : vector<2x32xf32>
    %361 = arith.mulf %352, %334 : vector<2x32xf32>
    %362 = arith.mulf %346, %354 : vector<2x32xf32>
    %363 = arith.addf %361, %362 : vector<2x32xf32>
    %364 = math.tanh %363 : vector<2x32xf32>
    %365 = arith.mulf %360, %364 : vector<2x32xf32>
    %366 = vector.extract_strided_slice %274 {offsets = [0, 3, 0], sizes = [2, 1, 128], strides = [1, 1, 1]} : vector<2x8x128xf32> to vector<2x1x128xf32>
    %367 = vector.shape_cast %366 : vector<2x1x128xf32> to vector<2x128xf32>
    %cst_83 = arith.constant dense<0.000000e+00> : vector<2x128xf32>
    %368 = tpu.matmul %365, %268, %cst_83 {dimension_numbers = #tpu.dot_dimension_numbers<[1], [0], [0], [1], [0, 0, 1, 1], [], []>} : vector<2x32xf32>, vector<32x128xf32>, vector<2x128xf32> -> vector<2x128xf32>
    %369 = arith.addf %367, %368 : vector<2x128xf32>
    %370 = vector.extract_strided_slice %369 {offsets = [0, 0], sizes = [2, 32], strides = [1, 1]} : vector<2x128xf32> to vector<2x32xf32>
    %371 = arith.negf %370 : vector<2x32xf32>
    %372 = math.exp %371 : vector<2x32xf32>
    %cst_84 = arith.constant 1.000000e+00 : f32
    %373 = vector.broadcast %cst_84 : f32 to vector<2x32xf32>
    %374 = arith.addf %373, %372 : vector<2x32xf32>
    %375 = arith.divf %373, %374 : vector<2x32xf32>
    %376 = vector.extract_strided_slice %369 {offsets = [0, 32], sizes = [2, 32], strides = [1, 1]} : vector<2x128xf32> to vector<2x32xf32>
    %377 = arith.negf %376 : vector<2x32xf32>
    %378 = math.exp %377 : vector<2x32xf32>
    %cst_85 = arith.constant 1.000000e+00 : f32
    %379 = vector.broadcast %cst_85 : f32 to vector<2x32xf32>
    %380 = arith.addf %379, %378 : vector<2x32xf32>
    %381 = arith.divf %379, %380 : vector<2x32xf32>
    %382 = vector.extract_strided_slice %369 {offsets = [0, 64], sizes = [2, 32], strides = [1, 1]} : vector<2x128xf32> to vector<2x32xf32>
    %383 = math.tanh %382 : vector<2x32xf32>
    %384 = vector.extract_strided_slice %369 {offsets = [0, 96], sizes = [2, 32], strides = [1, 1]} : vector<2x128xf32> to vector<2x32xf32>
    %385 = arith.negf %384 : vector<2x32xf32>
    %386 = math.exp %385 : vector<2x32xf32>
    %cst_86 = arith.constant 1.000000e+00 : f32
    %387 = vector.broadcast %cst_86 : f32 to vector<2x32xf32>
    %388 = arith.addf %387, %386 : vector<2x32xf32>
    %389 = arith.divf %387, %388 : vector<2x32xf32>
    %390 = arith.mulf %381, %363 : vector<2x32xf32>
    %391 = arith.mulf %375, %383 : vector<2x32xf32>
    %392 = arith.addf %390, %391 : vector<2x32xf32>
    %393 = math.tanh %392 : vector<2x32xf32>
    %394 = arith.mulf %389, %393 : vector<2x32xf32>
    %395 = vector.extract_strided_slice %274 {offsets = [0, 4, 0], sizes = [2, 1, 128], strides = [1, 1, 1]} : vector<2x8x128xf32> to vector<2x1x128xf32>
    %396 = vector.shape_cast %395 : vector<2x1x128xf32> to vector<2x128xf32>
    %cst_87 = arith.constant dense<0.000000e+00> : vector<2x128xf32>
    %397 = tpu.matmul %394, %268, %cst_87 {dimension_numbers = #tpu.dot_dimension_numbers<[1], [0], [0], [1], [0, 0, 1, 1], [], []>} : vector<2x32xf32>, vector<32x128xf32>, vector<2x128xf32> -> vector<2x128xf32>
    %398 = arith.addf %396, %397 : vector<2x128xf32>
    %399 = vector.extract_strided_slice %398 {offsets = [0, 0], sizes = [2, 32], strides = [1, 1]} : vector<2x128xf32> to vector<2x32xf32>
    %400 = arith.negf %399 : vector<2x32xf32>
    %401 = math.exp %400 : vector<2x32xf32>
    %cst_88 = arith.constant 1.000000e+00 : f32
    %402 = vector.broadcast %cst_88 : f32 to vector<2x32xf32>
    %403 = arith.addf %402, %401 : vector<2x32xf32>
    %404 = arith.divf %402, %403 : vector<2x32xf32>
    %405 = vector.extract_strided_slice %398 {offsets = [0, 32], sizes = [2, 32], strides = [1, 1]} : vector<2x128xf32> to vector<2x32xf32>
    %406 = arith.negf %405 : vector<2x32xf32>
    %407 = math.exp %406 : vector<2x32xf32>
    %cst_89 = arith.constant 1.000000e+00 : f32
    %408 = vector.broadcast %cst_89 : f32 to vector<2x32xf32>
    %409 = arith.addf %408, %407 : vector<2x32xf32>
    %410 = arith.divf %408, %409 : vector<2x32xf32>
    %411 = vector.extract_strided_slice %398 {offsets = [0, 64], sizes = [2, 32], strides = [1, 1]} : vector<2x128xf32> to vector<2x32xf32>
    %412 = math.tanh %411 : vector<2x32xf32>
    %413 = vector.extract_strided_slice %398 {offsets = [0, 96], sizes = [2, 32], strides = [1, 1]} : vector<2x128xf32> to vector<2x32xf32>
    %414 = arith.negf %413 : vector<2x32xf32>
    %415 = math.exp %414 : vector<2x32xf32>
    %cst_90 = arith.constant 1.000000e+00 : f32
    %416 = vector.broadcast %cst_90 : f32 to vector<2x32xf32>
    %417 = arith.addf %416, %415 : vector<2x32xf32>
    %418 = arith.divf %416, %417 : vector<2x32xf32>
    %419 = arith.mulf %410, %392 : vector<2x32xf32>
    %420 = arith.mulf %404, %412 : vector<2x32xf32>
    %421 = arith.addf %419, %420 : vector<2x32xf32>
    %422 = math.tanh %421 : vector<2x32xf32>
    %423 = arith.mulf %418, %422 : vector<2x32xf32>
    %424 = vector.extract_strided_slice %274 {offsets = [0, 5, 0], sizes = [2, 1, 128], strides = [1, 1, 1]} : vector<2x8x128xf32> to vector<2x1x128xf32>
    %425 = vector.shape_cast %424 : vector<2x1x128xf32> to vector<2x128xf32>
    %cst_91 = arith.constant dense<0.000000e+00> : vector<2x128xf32>
    %426 = tpu.matmul %423, %268, %cst_91 {dimension_numbers = #tpu.dot_dimension_numbers<[1], [0], [0], [1], [0, 0, 1, 1], [], []>} : vector<2x32xf32>, vector<32x128xf32>, vector<2x128xf32> -> vector<2x128xf32>
    %427 = arith.addf %425, %426 : vector<2x128xf32>
    %428 = vector.extract_strided_slice %427 {offsets = [0, 0], sizes = [2, 32], strides = [1, 1]} : vector<2x128xf32> to vector<2x32xf32>
    %429 = arith.negf %428 : vector<2x32xf32>
    %430 = math.exp %429 : vector<2x32xf32>
    %cst_92 = arith.constant 1.000000e+00 : f32
    %431 = vector.broadcast %cst_92 : f32 to vector<2x32xf32>
    %432 = arith.addf %431, %430 : vector<2x32xf32>
    %433 = arith.divf %431, %432 : vector<2x32xf32>
    %434 = vector.extract_strided_slice %427 {offsets = [0, 32], sizes = [2, 32], strides = [1, 1]} : vector<2x128xf32> to vector<2x32xf32>
    %435 = arith.negf %434 : vector<2x32xf32>
    %436 = math.exp %435 : vector<2x32xf32>
    %cst_93 = arith.constant 1.000000e+00 : f32
    %437 = vector.broadcast %cst_93 : f32 to vector<2x32xf32>
    %438 = arith.addf %437, %436 : vector<2x32xf32>
    %439 = arith.divf %437, %438 : vector<2x32xf32>
    %440 = vector.extract_strided_slice %427 {offsets = [0, 64], sizes = [2, 32], strides = [1, 1]} : vector<2x128xf32> to vector<2x32xf32>
    %441 = math.tanh %440 : vector<2x32xf32>
    %442 = vector.extract_strided_slice %427 {offsets = [0, 96], sizes = [2, 32], strides = [1, 1]} : vector<2x128xf32> to vector<2x32xf32>
    %443 = arith.negf %442 : vector<2x32xf32>
    %444 = math.exp %443 : vector<2x32xf32>
    %cst_94 = arith.constant 1.000000e+00 : f32
    %445 = vector.broadcast %cst_94 : f32 to vector<2x32xf32>
    %446 = arith.addf %445, %444 : vector<2x32xf32>
    %447 = arith.divf %445, %446 : vector<2x32xf32>
    %448 = arith.mulf %439, %421 : vector<2x32xf32>
    %449 = arith.mulf %433, %441 : vector<2x32xf32>
    %450 = arith.addf %448, %449 : vector<2x32xf32>
    %451 = math.tanh %450 : vector<2x32xf32>
    %452 = arith.mulf %447, %451 : vector<2x32xf32>
    %453 = vector.extract_strided_slice %274 {offsets = [0, 6, 0], sizes = [2, 1, 128], strides = [1, 1, 1]} : vector<2x8x128xf32> to vector<2x1x128xf32>
    %454 = vector.shape_cast %453 : vector<2x1x128xf32> to vector<2x128xf32>
    %cst_95 = arith.constant dense<0.000000e+00> : vector<2x128xf32>
    %455 = tpu.matmul %452, %268, %cst_95 {dimension_numbers = #tpu.dot_dimension_numbers<[1], [0], [0], [1], [0, 0, 1, 1], [], []>} : vector<2x32xf32>, vector<32x128xf32>, vector<2x128xf32> -> vector<2x128xf32>
    %456 = arith.addf %454, %455 : vector<2x128xf32>
    %457 = vector.extract_strided_slice %456 {offsets = [0, 0], sizes = [2, 32], strides = [1, 1]} : vector<2x128xf32> to vector<2x32xf32>
    %458 = arith.negf %457 : vector<2x32xf32>
    %459 = math.exp %458 : vector<2x32xf32>
    %cst_96 = arith.constant 1.000000e+00 : f32
    %460 = vector.broadcast %cst_96 : f32 to vector<2x32xf32>
    %461 = arith.addf %460, %459 : vector<2x32xf32>
    %462 = arith.divf %460, %461 : vector<2x32xf32>
    %463 = vector.extract_strided_slice %456 {offsets = [0, 32], sizes = [2, 32], strides = [1, 1]} : vector<2x128xf32> to vector<2x32xf32>
    %464 = arith.negf %463 : vector<2x32xf32>
    %465 = math.exp %464 : vector<2x32xf32>
    %cst_97 = arith.constant 1.000000e+00 : f32
    %466 = vector.broadcast %cst_97 : f32 to vector<2x32xf32>
    %467 = arith.addf %466, %465 : vector<2x32xf32>
    %468 = arith.divf %466, %467 : vector<2x32xf32>
    %469 = vector.extract_strided_slice %456 {offsets = [0, 64], sizes = [2, 32], strides = [1, 1]} : vector<2x128xf32> to vector<2x32xf32>
    %470 = math.tanh %469 : vector<2x32xf32>
    %471 = vector.extract_strided_slice %456 {offsets = [0, 96], sizes = [2, 32], strides = [1, 1]} : vector<2x128xf32> to vector<2x32xf32>
    %472 = arith.negf %471 : vector<2x32xf32>
    %473 = math.exp %472 : vector<2x32xf32>
    %cst_98 = arith.constant 1.000000e+00 : f32
    %474 = vector.broadcast %cst_98 : f32 to vector<2x32xf32>
    %475 = arith.addf %474, %473 : vector<2x32xf32>
    %476 = arith.divf %474, %475 : vector<2x32xf32>
    %477 = arith.mulf %468, %450 : vector<2x32xf32>
    %478 = arith.mulf %462, %470 : vector<2x32xf32>
    %479 = arith.addf %477, %478 : vector<2x32xf32>
    %480 = math.tanh %479 : vector<2x32xf32>
    %481 = arith.mulf %476, %480 : vector<2x32xf32>
    %482 = vector.extract_strided_slice %274 {offsets = [0, 7, 0], sizes = [2, 1, 128], strides = [1, 1, 1]} : vector<2x8x128xf32> to vector<2x1x128xf32>
    %483 = vector.shape_cast %482 : vector<2x1x128xf32> to vector<2x128xf32>
    %cst_99 = arith.constant dense<0.000000e+00> : vector<2x128xf32>
    %484 = tpu.matmul %481, %268, %cst_99 {dimension_numbers = #tpu.dot_dimension_numbers<[1], [0], [0], [1], [0, 0, 1, 1], [], []>} : vector<2x32xf32>, vector<32x128xf32>, vector<2x128xf32> -> vector<2x128xf32>
    %485 = arith.addf %483, %484 : vector<2x128xf32>
    %486 = vector.extract_strided_slice %485 {offsets = [0, 0], sizes = [2, 32], strides = [1, 1]} : vector<2x128xf32> to vector<2x32xf32>
    %487 = arith.negf %486 : vector<2x32xf32>
    %488 = math.exp %487 : vector<2x32xf32>
    %cst_100 = arith.constant 1.000000e+00 : f32
    %489 = vector.broadcast %cst_100 : f32 to vector<2x32xf32>
    %490 = arith.addf %489, %488 : vector<2x32xf32>
    %491 = arith.divf %489, %490 : vector<2x32xf32>
    %492 = vector.extract_strided_slice %485 {offsets = [0, 32], sizes = [2, 32], strides = [1, 1]} : vector<2x128xf32> to vector<2x32xf32>
    %493 = arith.negf %492 : vector<2x32xf32>
    %494 = math.exp %493 : vector<2x32xf32>
    %cst_101 = arith.constant 1.000000e+00 : f32
    %495 = vector.broadcast %cst_101 : f32 to vector<2x32xf32>
    %496 = arith.addf %495, %494 : vector<2x32xf32>
    %497 = arith.divf %495, %496 : vector<2x32xf32>
    %498 = vector.extract_strided_slice %485 {offsets = [0, 64], sizes = [2, 32], strides = [1, 1]} : vector<2x128xf32> to vector<2x32xf32>
    %499 = math.tanh %498 : vector<2x32xf32>
    %500 = vector.extract_strided_slice %485 {offsets = [0, 96], sizes = [2, 32], strides = [1, 1]} : vector<2x128xf32> to vector<2x32xf32>
    %501 = arith.negf %500 : vector<2x32xf32>
    %502 = math.exp %501 : vector<2x32xf32>
    %cst_102 = arith.constant 1.000000e+00 : f32
    %503 = vector.broadcast %cst_102 : f32 to vector<2x32xf32>
    %504 = arith.addf %503, %502 : vector<2x32xf32>
    %505 = arith.divf %503, %504 : vector<2x32xf32>
    %506 = arith.mulf %497, %479 : vector<2x32xf32>
    %507 = arith.mulf %491, %499 : vector<2x32xf32>
    %508 = arith.addf %506, %507 : vector<2x32xf32>
    %509 = math.tanh %508 : vector<2x32xf32>
    %510 = arith.mulf %505, %509 : vector<2x32xf32>
    %c1_103 = arith.constant 1 : index
    %c0_104 = arith.constant 0 : index
    %c0_105 = arith.constant 0 : index
    %511 = vector.load %arg10[%c1_103, %c0_104, %c0_105] : memref<2x2x32xf32, #tpu.memory_space<vmem>>, vector<1x2x32xf32>
    %512 = vector.shape_cast %511 : vector<1x2x32xf32> to vector<2x32xf32>
    %513 = vector.shape_cast %510 : vector<2x32xf32> to vector<1x2x32xf32>
    tpu.vector_store %arg10[%c1_103, %c0_104, %c0_105], %513 {strides = array<i32>} : memref<2x2x32xf32, #tpu.memory_space<vmem>>, vector<1x2x32xf32>,
    %c1_106 = arith.constant 1 : index
    %c0_107 = arith.constant 0 : index
    %c0_108 = arith.constant 0 : index
    %514 = vector.load %arg11[%c1_106, %c0_107, %c0_108] : memref<2x2x32xf32, #tpu.memory_space<vmem>>, vector<1x2x32xf32>
    %515 = vector.shape_cast %514 : vector<1x2x32xf32> to vector<2x32xf32>
    %516 = vector.shape_cast %508 : vector<2x32xf32> to vector<1x2x32xf32>
    tpu.vector_store %arg11[%c1_106, %c0_107, %c0_108], %516 {strides = array<i32>} : memref<2x2x32xf32, #tpu.memory_space<vmem>>, vector<1x2x32xf32>,
    %517 = vector.shape_cast %307 : vector<2x32xf32> to vector<2x1x32xf32>
    %518 = vector.shape_cast %336 : vector<2x32xf32> to vector<2x1x32xf32>
    %519 = vector.shape_cast %365 : vector<2x32xf32> to vector<2x1x32xf32>
    %520 = vector.shape_cast %394 : vector<2x32xf32> to vector<2x1x32xf32>
    %521 = vector.shape_cast %423 : vector<2x32xf32> to vector<2x1x32xf32>
    %522 = vector.shape_cast %452 : vector<2x32xf32> to vector<2x1x32xf32>
    %523 = vector.shape_cast %481 : vector<2x32xf32> to vector<2x1x32xf32>
    %524 = vector.shape_cast %510 : vector<2x32xf32> to vector<2x1x32xf32>
    %525 = tpu.concatenate %517, %518, %519, %520, %521, %522, %523, %524 in 1 : vector<2x1x32xf32>, vector<2x1x32xf32>, vector<2x1x32xf32>, vector<2x1x32xf32>, vector<2x1x32xf32>, vector<2x1x32xf32>, vector<2x1x32xf32>, vector<2x1x32xf32> -> vector<2x8x32xf32>
    %c0_109 = arith.constant 0 : index
    %c0_110 = arith.constant 0 : index
    %c0_111 = arith.constant 0 : index
    %526 = vector.load %arg7[%c0_109, %c0_110, %c0_111] : memref<2x8x32xf32, #tpu.memory_space<vmem>>, vector<2x8x32xf32>
    tpu.vector_store %arg7[%c0_109, %c0_110, %c0_111], %525 {strides = array<i32>} : memref<2x8x32xf32, #tpu.memory_space<vmem>>, vector<2x8x32xf32>,
    %c1_i32 = arith.constant 1 : i32
    %527 = arith.cmpi eq, %arg0, %c1_i32 : i32
    %528 = arith.extui %527 : i1 to i32
    %c0_i32_112 = arith.constant 0 : i32
    %529 = arith.cmpi ne, %528, %c0_i32_112 : i32
    scf.if %529 {
      %c0_113 = arith.constant 0 : index
      %c0_114 = arith.constant 0 : index
      %c0_115 = arith.constant 0 : index
      %530 = vector.load %arg10[%c0_113, %c0_114, %c0_115] : memref<2x2x32xf32, #tpu.memory_space<vmem>>, vector<2x2x32xf32>
      %c0_116 = arith.constant 0 : index
      %c0_117 = arith.constant 0 : index
      %c0_118 = arith.constant 0 : index
      %531 = vector.load %arg8[%c0_116, %c0_117, %c0_118] : memref<2x2x32xf32, #tpu.memory_space<vmem>>, vector<2x2x32xf32>
      tpu.vector_store %arg8[%c0_116, %c0_117, %c0_118], %530 {strides = array<i32>} : memref<2x2x32xf32, #tpu.memory_space<vmem>>, vector<2x2x32xf32>,
      %c0_119 = arith.constant 0 : index
      %c0_120 = arith.constant 0 : index
      %c0_121 = arith.constant 0 : index
      %532 = vector.load %arg11[%c0_119, %c0_120, %c0_121] : memref<2x2x32xf32, #tpu.memory_space<vmem>>, vector<2x2x32xf32>
      %c0_122 = arith.constant 0 : index
      %c0_123 = arith.constant 0 : index
      %c0_124 = arith.constant 0 : index
      %533 = vector.load %arg9[%c0_122, %c0_123, %c0_124] : memref<2x2x32xf32, #tpu.memory_space<vmem>>, vector<2x2x32xf32>
      tpu.vector_store %arg9[%c0_122, %c0_123, %c0_124], %532 {strides = array<i32>} : memref<2x2x32xf32, #tpu.memory_space<vmem>>, vector<2x2x32xf32>,
    } else {
    }
    return
  }
  func.func @transform_0(%arg0: i32) -> (i32, i32, i32) {
    %c0_i32 = arith.constant 0 : i32
    %c0_i32_0 = arith.constant 0 : i32
    %c0_i32_1 = arith.constant 0 : i32
    return %c0_i32, %arg0, %c0_i32_0 : i32, i32, i32
  }
  func.func @transform_1(%arg0: i32) -> (i32, i32, i32) {
    %c0_i32 = arith.constant 0 : i32
    %c0_i32_0 = arith.constant 0 : i32
    %c0_i32_1 = arith.constant 0 : i32
    %c0_i32_2 = arith.constant 0 : i32
    return %c0_i32, %c0_i32_0, %c0_i32_1 : i32, i32, i32
  }
  func.func @transform_2(%arg0: i32) -> (i32, i32, i32) {
    %c0_i32 = arith.constant 0 : i32
    %c0_i32_0 = arith.constant 0 : i32
    %c0_i32_1 = arith.constant 0 : i32
    %c0_i32_2 = arith.constant 0 : i32
    return %c0_i32, %c0_i32_0, %c0_i32_1 : i32, i32, i32
  }
  func.func @transform_3(%arg0: i32) -> (i32, i32, i32) {
    %c0_i32 = arith.constant 0 : i32
    %c0_i32_0 = arith.constant 0 : i32
    %c0_i32_1 = arith.constant 0 : i32
    %c0_i32_2 = arith.constant 0 : i32
    return %c0_i32, %c0_i32_0, %c0_i32_1 : i32, i32, i32
  }
  func.func @transform_4(%arg0: i32) -> (i32, i32, i32) {
    %c0_i32 = arith.constant 0 : i32
    %c0_i32_0 = arith.constant 0 : i32
    %c0_i32_1 = arith.constant 0 : i32
    %c0_i32_2 = arith.constant 0 : i32
    return %c0_i32, %c0_i32_0, %c0_i32_1 : i32, i32, i32
  }
  func.func @transform_5(%arg0: i32) -> (i32, i32, i32) {
    %c0_i32 = arith.constant 0 : i32
    %c0_i32_0 = arith.constant 0 : i32
    %c0_i32_1 = arith.constant 0 : i32
    %c0_i32_2 = arith.constant 0 : i32
    return %c0_i32, %c0_i32_0, %c0_i32_1 : i32, i32, i32
  }
  func.func @transform_6(%arg0: i32) -> (i32, i32, i32) {
    %c0_i32 = arith.constant 0 : i32
    %c0_i32_0 = arith.constant 0 : i32
    %c0_i32_1 = arith.constant 0 : i32
    return %c0_i32, %arg0, %c0_i32_0 : i32, i32, i32
  }
  func.func @transform_7(%arg0: i32) -> (i32, i32, i32) {
    %c0_i32 = arith.constant 0 : i32
    %c0_i32_0 = arith.constant 0 : i32
    %c0_i32_1 = arith.constant 0 : i32
    %c0_i32_2 = arith.constant 0 : i32
    return %c0_i32, %c0_i32_0, %c0_i32_1 : i32, i32, i32
  }
  func.func @transform_8(%arg0: i32) -> (i32, i32, i32) {
    %c0_i32 = arith.constant 0 : i32
    %c0_i32_0 = arith.constant 0 : i32
    %c0_i32_1 = arith.constant 0 : i32
    %c0_i32_2 = arith.constant 0 : i32
    return %c0_i32, %c0_i32_0, %c0_i32_1 : i32, i32, i32
  }
}

</mosaic_0001>

<bundles_post_ra>
// kernel: tpu_custom_call.1
= control target key start
LH: loop header
LB: loop body
LE: loop exit
PB: predicated region body
PF: predicated region fallthrough
CT: control target
= control target key end

     0   :  { %14 = vsyncpa [#allocation5], 0  ;;  %s4868_s0 = inlined_call_operand.hbm [shape: f32[2,16,32], index: 0, kind: input, shape index: {}]   ;;  %s4869_s1 = inlined_call_operand.hbm [shape: f32[2,32,128], index: 1, kind: input, shape index: {}]   ;;  %s4870_s2 = inlined_call_operand.hbm [shape: f32[2,32,128], index: 2, kind: input, shape index: {}]   ;;  %s4871_s3 = inlined_call_operand.vmem [shape: f32[2,1,128], index: 3, kind: input, shape index: {}]   ;;  %s4872_s4 = inlined_call_operand.vmem [shape: f32[2,2,32], index: 4, kind: input, shape index: {}]   ;;  %s4873_s5 = inlined_call_operand.vmem [shape: f32[2,2,32], index: 5, kind: input, shape index: {}]   ;;  %s4874_s6 = inlined_call_operand.hbm [shape: f32[2,16,32], index: 6, kind: output, shape index: {0}]   ;;  %s4875_s7 = inlined_call_operand.hbm [shape: f32[2,2,32], index: 7, kind: output, shape index: {1}]   ;;  %s4876_s8 = inlined_call_operand.hbm [shape: f32[2,2,32], index: 8, kind: output, shape index: {2}]  }
   0x1   :  { %16 = vsyncpa [#allocation5 + $0x1], 0 }
   0x2   :  { %17 = vsyncpa [#allocation8], 0 }
   0x3   :  { %18 = vsyncpa [#allocation6], 0 }
   0x4   :  { %20 = vsyncpa [#allocation6 + $0x1], 0 }
   0x5   :  { %21 = vsyncpa [#allocation12], 0  ;;  %s4157_s27 = smov 0   ;;  %s4159_s28 = smov 0  }
   0x6   :  { %s4161_s29 = smov 0   ;;  %s4163_s30 = smov 0  }
   0x7 LB: > { %s4178_s9 = sadd.s32 4294967295, %s4091_s30   ;;  %s3050_s10 = sadd.s32 4294967294, %s4091_s30   ;;  %s4091_s30 = sphi %s4163_s30, %s4918_s30   ;;  %s4087_s29 = sphi %s4161_s29, %s4922_s29   ;;  %s4083_s28 = sphi %s4159_s28, %s4921_s28   ;;  %s4079_s27 = sphi %s4157_s27, %s4920_s27  }
   0x8   : > { %s4182_s11 = sadd.s32 1, %s4091_s30   ;;  %s34_s12 = sadd.s32 1, %s4087_s29 }
   0x9   : > { %4887 = sst [smem:[#allocation18_spill]] %s4182_s11  ;;  %s31_s13 = ssub.s32 %s4091_s30, %s4182_s11 }
   0xa   : > { %p41_p0 = scmp.ne.s32.totalorder %s4087_s29, %s4083_s28  ;;  %p32_p1 = scmp.eq.s32.totalorder %s31_s13, 0 }
   0xb   : > { %p42_p2 = scmp.eq.s32.totalorder %s4091_s30, 0  ;;  %p47_p3 = scmp.ne.s32.totalorder %s4083_s28, %s4079_s27 }
   0xc   : > { %p4878_p4 = scmp.eq.s32.totalorder %s4178_s9, 0  ;;  %p4877_p7 = scmp.eq.s32.totalorder %s4178_s9, 1 }
   0xd   : > { %s4194_s14 = scalar_select %p32_p1, %s4087_s29, %s34_s12  }
   0xe   : > { %p4196_p5 = por %p42_p2, %p41_p0  ;;  %p4202_p6 = por %p4878_p4, %p47_p3 }
   0xf   : > { %4888 = sst [smem:[#allocation19_spill]] %s4194_s14  ;;  %p182_p8 = scmp.eq.s32.totalorder %s3050_s10, 1 }
  0x10   : > { %s4889_s15 = scalar_select %p4196_p5, 1, 0 }
  0x11   : > { %s4890_s16 = scalar_select %p4202_p6, 1, 0 }
  0x12   : > { %p3051_p9 = scmp.ge.s32.totalorder %s4091_s30, 1  ;;  %p231_p10 = scmp.lt.s32.totalorder %s4091_s30, 3 }
  0x13   : > { %p4211_p11 = por %p4877_p7, %p41_p0  ;;  %p4215_p12 = por %p182_p8, %p47_p3 }
  0x14   : > { %p4219_p13 = pnand %p3051_p9, %p231_p10  ;;  %s4093_s20 = smov [#allocation7]  }
  0x15   : > { %s4891_s17 = scalar_select %p4211_p11, 1, 0 }
  0x16   : > { %s4892_s18 = scalar_select %p4215_p12, 1, 0 }
  0x17   : > { %s4894_s19 = scalar_select %p4219_p13, 1, 0 }
  0x18   : > { %4893 = sst [smem:[#allocation20_spill]] %s4892_s18  ;;  %p3549_p2 = pneg %p4219_p13 }
  0x19   : > { %s243_s21 = sshll.u32 %s4093_s20, 4  ;;  %s4094_s23 = smov [#allocation9]   ;;  %s244_s21 = int_to_ptr.vmem [resolvable:$true] %s243_s21 }
  0x1a   : > { %p4228_p0 = pnand %p3549_p2, %p4878_p4  ;;  %s256_s24 = sshll.u32 %s4094_s23, 4  ;;  %s257_s24 = int_to_ptr.vmem [resolvable:$true] %s256_s24 }
  0x1b   : > { %s3879_s10 = scalar_lea.hbm %s4869_s1, 1024 }
  0x1c   : > { %p3880_p9 = scmp.ne.s32.totalorder %s4869_s1, %s3879_s10  ;;  %p3881_p10 = pneg %p4228_p0 }
  0x1d   : > { %p3886_p3 = scmp.lt.u32.totalorder %s3879_s10, %s4869_s1 }
  0x1e   : > { %p3882_p2 = pnand %p3881_p10, %p3880_p9 }
  0x20   : > { %p3883_p7 = pneg %p3882_p2 }
  0x22   : > { %p3888_p1 = pnand %p3886_p3, %p3883_p7 }
  0x24   : > { %3891 = shalt.err (!%p3888_p1)
}
  0x25   : > { %s3892_s23 = scalar_lea.vmem %s244_s21, 1024  ;;  %p3900_p11 = scmp.lt.s32.totalorder %s244_s21, %s244_s21 }
  0x26   : > { %p3893_p4 = scmp.ne.s32.totalorder %s244_s21, %s3892_s23  ;;  %p3901_p6 = scmp.lt.s32.totalorder %s3892_s23, %s3892_s23 }
  0x28   : > { %p3895_p8 = pnand %p3893_p4, %p3881_p10  ;;  %p3902_p13 = por %p3901_p6, %p3900_p11 }
  0x2a   : > { %p3896_p12 = pneg %p3895_p8 }
  0x2c   : > { %p3903_p5 = pnand %p3902_p13, %p3896_p12 }
  0x2e   : > { %3906 = shalt.err (!%p3903_p5)
}
  0x2f   : > { %s4886_s25 = smov 128   ;;  %s4096_s14 = smov 8  }
  0x30   : > { %3552 = dma.hbm_to_vmem [thread:$0]  (!%p4228_p0), %s4869_s1, 1024, %s244_s21, [#allocation8], %s4886_s25, %s4886_s25, %s4096_s14  }
  0x31   : > { %p4896_p4 = scmp.ne.s32.totalorder %s4889_s15, 0  ;;  %p4897_p7 = scmp.lt.s32.totalorder %s4091_s30, 2 }
  0x32   : > { %s3907_s23 = scalar_lea.hbm %s4870_s2, 1024 }
  0x33   : > { %p4263_p1 = pnand %p4897_p7, %p4896_p4  ;;  %p3908_p5 = scmp.ne.s32.totalorder %s4870_s2, %s3907_s23 }
  0x34   : > { %p3914_p12 = scmp.lt.u32.totalorder %s3907_s23, %s4870_s2 }
  0x35   : > { %s4898_s12 = scalar_select %p4263_p1, 1, 0 }
  0x36   : > { %p3910_p6 = pnand %p3908_p5, %p3881_p10 }
  0x38   : > { %p3911_p11 = pneg %p3910_p6 }
  0x3a   : > { %p3916_p13 = pnand %p3914_p12, %p3911_p11 }
  0x3c   : > { %3919 = shalt.err (!%p3916_p13)
}
  0x3d   : > { %s3920_s26 = scalar_lea.vmem %s257_s24, 1024  ;;  %p3928_p2 = scmp.lt.s32.totalorder %s257_s24, %s257_s24 }
  0x3e   : > { %p3921_p3 = scmp.ne.s32.totalorder %s257_s24, %s3920_s26  ;;  %p3929_p4 = scmp.lt.s32.totalorder %s3920_s26, %s3920_s26 }
  0x40   : > { %p3923_p8 = pnand %p3921_p3, %p3881_p10  ;;  %p3930_p7 = por %p3929_p4, %p3928_p2 }
  0x42   : > { %p3924_p9 = pneg %p3923_p8 }
  0x44   : > { %p3931_p1 = pnand %p3930_p7, %p3924_p9 }
  0x46   : > { %3934 = shalt.err (!%p3931_p1)
}
  0x47   : > { %3555 = dma.hbm_to_vmem [thread:$0]  (!%p4228_p0), %s4870_s2, 1024, %s257_s24, [#allocation8], %s4886_s25, %s4886_s25, %s4096_s14  }
  0x48   : > { %s279_s10 = sand.u32 1, %s4087_s29   ;;  %s3056_s20 = sshll.u32 %s4091_s30, 7 }
  0x49   : > { %s3055_s13 = sshll.u32 %s279_s10, 4  ;;  %s4295_s15 = scalar_lea.hbm %s4868_s0, %s3056_s20 }
  0x4a   : > { %s283_s22 = scalar_lea.vmem [#allocation4], %s3055_s13  ;;  %s4299_s11 = scalar_lea.sflag [#allocation5], %s279_s10 }
  0x4b   : > { %s289_s26 = sshll.u32 %s283_s22, 4  ;;  %s3935_s18 = scalar_lea.hbm %s4295_s15, 256  ;;  %s4297_s26 = int_to_ptr.vmem [resolvable:$true] %s289_s26 }
  0x4c   : > { %p3936_p0 = scmp.ne.s32.totalorder %s4295_s15, %s3935_s18  ;;  %p4899_p10 = scmp.ne.s32.totalorder %s4898_s12, 0 }
  0x4d   : > { %s3940_s23 = scalar_lea.hbm %s4868_s0, 512  ;;  %p3941_p11 = scmp.lt.u32.totalorder %s4295_s15, %s4868_s0 }
  0x4e   : > { %p3937_p1 = pneg %p4899_p10  ;;  %p3942_p12 = scmp.lt.u32.totalorder %s3940_s23, %s3935_s18 }
  0x4f   : > { %p3944_p3 = scmp.lt.u32.totalorder %s3935_s18, %s4295_s15 }
  0x50   : > { %p3938_p5 = pnand %p3937_p1, %p3936_p0  ;;  %p3943_p13 = por %p3942_p12, %p3941_p11 }
  0x52   : > { %p3939_p6 = pneg %p3938_p5  ;;  %p3945_p8 = por %p3944_p3, %p3943_p13 }
  0x54   : > { %p3946_p9 = pnand %p3945_p8, %p3939_p6 }
  0x56   : > { %3949 = shalt.err (!%p3946_p9)
}
  0x57   : > { %s3950_s10 = scalar_lea.vmem %s4297_s26, 256  ;;  %s4097_s13 = smov [#allocation4]  }
  0x58   : > { %p3951_p2 = scmp.ne.s32.totalorder %s4297_s26, %s3950_s10  ;;  %s3955_s22 = sshll.u32 %s4097_s13, 4  ;;  %s3956_s22 = int_to_ptr.vmem [resolvable:$false] %s3955_s22 }
  0x59   : > { %s3957_s25 = scalar_lea.vmem %s3956_s22, 512  ;;  %p3958_p0 = scmp.lt.s32.totalorder %s4297_s26, %s3956_s22 }
  0x5a   : > { %p3953_p4 = pnand %p3951_p2, %p3937_p1  ;;  %p3959_p5 = scmp.lt.s32.totalorder %s3957_s25, %s3950_s10 }
  0x5c   : > { %p3954_p7 = pneg %p3953_p4  ;;  %p3960_p11 = por %p3959_p5, %p3958_p0 }
  0x5e   : > { %p3961_p12 = pnand %p3960_p11, %p3954_p7 }
  0x60   : > { %3964 = shalt.err (!%p3961_p12)
}
  0x61   : > { %s4098_s18 = smov 256   ;;  %s4900_s24 = smov 128  }
  0x62   : > { %3559 = dma.hbm_to_vmem [thread:$0]  (!%p4899_p10), %s4295_s15, 256, %s4297_s26, %s4299_s11, %s4098_s18, %s4900_s24, %s4096_s14  }
  0x63   : > { %p4901_p1 = scmp.ne.s32.totalorder %s4894_s19, 0 }
  0x64   : > { %s4332_s20 = sand.u32 (!%p4901_p1), 1, %s4083_s28   ;;  %p4902_p6 = scmp.ne.s32.totalorder (!%p4901_p1), %s4890_s16, 0 }
  0x65   : > { %301 = sbr.rel (%p4901_p1) target bundleno = 11544 (0x2d18), region = 44  ;;  %s3058_s23 = sshll.u32 (!%p4901_p1), %s4332_s20, 4 }
  0x66   : > { %s304_s21 = scalar_lea.sflag (!%p4901_p1), [#allocation5], %s4332_s20  ;;  %s4336_s10 = scalar_lea.vmem (!%p4901_p1), [#allocation4], %s3058_s23 }
  0x6c   : > { %4062 = dma.done.wait (%p4902_p6), %s304_s21, 256  }
  0x6d   : > { %4064 = vsyncadd (%p4902_p6), %s304_s21, 4294967040  ;;  %p4903_p10 = scmp.eq.s32.totalorder %s4178_s9, 0 }
  0x6f   : > { %4066 = dma.done.wait (%p4903_p10), [#allocation8], 2048   ;;  %p4904_p13 = pmov %p4903_p10 }
  0x70   : > { %s4346_s19 = scalar_lea.vmem [#allocation10], %s3058_s23  ;;  %p4905_p3 = scmp.ne.s32.totalorder %s4178_s9, 0 }
  0x71   : > { %4068 = vsyncadd (%p4904_p13), [#allocation8], 4294965248  ;;  %v352_v0 = vld [vmem:[%s4872_s4] sm:$0x3] (!%p4905_p3)  ;;  %vm354_vm0 = vcmask (!%p4905_p3), 254976  }
  0x72   : > { %351 = sbr.rel (%p4905_p3) target bundleno = 121 (0x79), region = 60  ;;  %v353_v1 = vld [vmem:[%s4872_s4 + $0x2] sm:$0x3] (!%p4905_p3)  ;;  %355 = vst.msk [vmem:[#allocation2] sm:$0x3] (!%p4905_p3), %vm354_vm0, %v352_v0 }
  0x73   : > { %356 = vst.msk [vmem:[#allocation2 + $0x2] sm:$0x3] (!%p4905_p3), %vm354_vm0, %v353_v1  ;;  %v357_v2 = vld [vmem:[%s4873_s5] sm:$0x3] (!%p4905_p3)  ;;  %v358_v3 = vld [vmem:[%s4873_s5 + $0x2] sm:$0x3] (!%p4905_p3) }
  0x74   : > { %359 = vst.msk [vmem:[#allocation3] sm:$0x3] (!%p4905_p3), %vm354_vm0, %v357_v2  ;;  %360 = vst.msk [vmem:[#allocation3 + $0x2] sm:$0x3] (!%p4905_p3), %vm354_vm0, %v358_v3 }
  0x79 PF: > { %v363_v4 = vld [vmem:[#allocation7] sm:$0xff]  ;;  %v364_v5 = vld [vmem:[#allocation7 + $0x8] sm:$0xff]  ;;  %v4099_v7 = vmov 0.0|0.0   ;;  %v365_v10 = vld [vmem:[#allocation7 + $0x10] sm:$0xff]  ;;  %vm4100_vm1 = vmmov 0   ;;  %v4101_v12 = vmov 0.0  }
  0x7a   : > { %v367_v6 = vld [vmem:[#allocation9] sm:$0xff]  ;;  %3425 = vmatprep.subr.bf16.mxu1 %v4099_v7  ;;  %v3417_v8 = vpack.c.bf16 %v364_v5, %v363_v4  ;;  %v368_v9 = vld [vmem:[#allocation9 + $0x8] sm:$0xff]  ;;  %v366_v11 = vld [vmem:[#allocation7 + $0x18] sm:$0xff]  ;;  %3238 = vmatprep.mubr.msk.f32.mxu1 %vm4100_vm1, %v4101_v12  ;;  %vm378_vm2 = vcmask 261120   ;;  %s4102_s25 = smov 32   ;;  %s4103_s23 = smov 64  }
  0x7b   : > { %v4365_v13 = vpack.c.bf16 %v368_v9, %v367_v6  ;;  %v3421_v14 = vpack.c.bf16 %v366_v11, %v365_v10  ;;  %v369_v15 = vld [vmem:[#allocation9 + $0x10] sm:$0xff]  ;;  %v370_v16 = vld [vmem:[#allocation9 + $0x18] sm:$0xff]  ;;  %vm600_vm3 = vcmask 1041409   ;;  %vm1599_vm4 = vcmask 1040384   ;;  %s4104_s14 = smov 96   ;;  %p3118_p8 = scmp.ne.s32.totalorder %s4178_s9, 1 }
  0x7c   : > { %v361_v17 = vld [vmem:[%s4336_s10] sm:$0xff]  ;;  %3418 = vmatprep.subr.bf16.mxu0 %v3417_v8  ;;  %v461_v18 = vld [vmem:[#allocation3] sm:$0x3]  ;;  %v4370_v19 = vpack.c.bf16 %v370_v16, %v369_v15  ;;  %v460_v21 = vld [vmem:[#allocation2] sm:$0x3]  ;;  %vm1602_vm5 = vcmask 1041408  }
  0x7d   : > { %3227 = vmatprep.mubr.msk.f32.mxu0 %vm378_vm2, %v361_v17  ;;  %3427 = vmatpush3.bf16.msra.mxu1 %v4365_v13  ;;  %v556_v20 = vrot.slane %v461_v18, 1  ;;  %v362_v22 = vld [vmem:[%s4336_s10 + $0x8] sm:$0xff]  ;;  %vm1605_vm6 = vcmask 1042432   ;;  %vm1608_vm7 = vcmask 1043456   ;;  %vm1611_vm8 = vcmask 1044480  }
  0x7e   : > { %3420 = vmatpush3.bf16.msra.mxu0 %v3417_v8  ;;  %3428 = vmatprep.subr.bf16.mxu1 %v4099_v7  ;;  %v3063_v23 = vld [vmem:[%s4871_s3] ss:$0 sm:$0xff]  ;;  %vm1614_vm9 = vcmask 1045504   ;;  %vm1617_vm10 = vcmask 1046528   ;;  %vm1586_vm11 = vcmask 253952   ;;  %vm1584_vm12 = vcmask 261127  }
  0x7f   : > { %3422 = vmatprep.subr.bf16.mxu0 %v3421_v14  ;;  %559 = vrot.lane.b32.xlu1 %v556_v20, %s4102_s25  ;;  %vm2891_vm13 = vcmask (!%p3118_p8), 254976  }
  0x81   : > { %3430 = vmatpush3.bf16.msra.mxu1 %v4370_v19 }
  0x82   : > { %3424 = vmatpush3.bf16.msra.mxu0 %v3421_v14  ;;  %3437 = vmatprep.subr.bf16.mxu1 %v4099_v7 }
  0x83   : > { %3431 = vmatprep.subr.bf16.mxu0 %v4099_v7  ;;  %557 = vrot.lane.b32.xlu1 %v461_v18, %s4102_s25 }
  0x84   : > { %3239 = vmatmul.mubr.msk.f32.vlgmr.msra.gmra.mrb[0].mxu1 %vm378_vm2, %v460_v21 }
  0x85   : > { %3228 = vmatmul.mubr.msk.f32.vlgmr.msra.gmra.mrb[0].mxu0 %vm378_vm2, %v362_v22  ;;  %3439 = vmatpush3.bf16.msra.mxu1 %v4365_v13 }
  0x86   : > { %3433 = vmatpush3.bf16.msra.mxu0 %v4365_v13  ;;  %3249 = vmatprep.mubr.msk.f32.mxu0 %vm4100_vm1, %v4101_v12 }
  0x87   : > { %3434 = vmatprep.subr.bf16.mxu0 %v4099_v7  ;;  %3440 = vmatprep.subr.bf16.mxu1 %v4099_v7 }
  0x88   : > { %3260 = vmatprep.mubr.msk.f32.mxu1 %vm4100_vm1, %v4101_v12 }
  0x89   : > { %3442 = vmatpush3.bf16.msra.mxu1 %v4370_v19 }
  0x8a   : > { %3436 = vmatpush3.bf16.msra.mxu0 %v4370_v19  ;;  %3449 = vmatprep.subr.bf16.mxu1 %v4099_v7 }
  0x8b   : > { %3443 = vmatprep.subr.bf16.mxu0 %v4099_v7 }
  0xf1   : > { %v560_v47 = vpop.permute.xlu1 %559 }
  0xf5   : > { %v558_v49 = vpop.permute.xlu1 %557 }
 0x157   : > { %v531_v24 = vpop.f32.mrb[0].mxu1 }
 0x158   : > { %v3229_v25 = vpop.f32.mrb[0].mxu0  ;;  %v536_v26 = vrot.slane %v531_v24, 1  ;;  %v3240_v28 = vpop.f32.mrb[1].mxu1 }
 0x159   : > { %v4396_v27 = vadd.f32 %v3229_v25, %v3063_v23  ;;  %v451_v29 = vpop.f32.mrb[1].mxu0 }
 0x15a   : > { %v4398_v30 = vadd.f32 %v3063_v23, %v451_v29 }
 0x15b   : > { %v540_v31 = vadd.f32 %v536_v26, %v4396_v27 }
 0x15c   : > { %v539_v32 = vadd.f32 %v531_v24, %v4398_v30 }
 0x15d   : > { %3623 = vtanh.f32 %v540_v31  ;;  %v3068_v35 = vmul.f32 -1.442695, %v540_v31 }
 0x15e   : > { %3625 = vtanh.f32 %v539_v32  ;;  %v3067_v36 = vmul.f32 -1.442695, %v539_v32 }
 0x15f   : > { %3627 = vpow2.f32 %v3068_v35 }
 0x160   : > { %3629 = vpow2.f32 %v3067_v36 }
 0x167   : > { %v3624_v33 = vpop.eup %3623 }
 0x168   : > { %569 = vrot.lane.b32.xlu0 %v3624_v33, %s4103_s23  ;;  %v3626_v34 = vpop.eup %3625 }
 0x169   : > { %v3628_v37 = vpop.eup %3627 }
 0x16a   : > { %v548_v38 = vadd.f32 1.0, %v3628_v37  ;;  %v3630_v39 = vpop.eup %3629 }
 0x16b   : > { %v547_v40 = vadd.f32 1.0, %v3630_v39 }
 0x16c   : > { %567 = vrot.lane.b32.xlu0 %v3626_v34, %s4103_s23  ;;  %3631 = vrcp.f32 %v548_v38 }
 0x16d   : > { %3633 = vrcp.f32 %v547_v40 }
 0x176   : > { %v3632_v41 = vpop.eup %3631 }
 0x177   : > { %v3634_v44 = vpop.eup %3633  ;;  %v564_v48 = vmul.f32 %v3632_v41, %v560_v47 }
 0x178   : > { %v563_v52 = vmul.f32 %v3634_v44, %v558_v49 }
 0x1da   : > { %v570_v42 = vpop.permute.xlu0 %569 }
 0x1db   : > { %v574_v43 = vmul.f32 %v3632_v41, %v570_v42 }
 0x1dd   : > { %579 = vrot.lane.b32.xlu0 %v574_v43, %s4102_s25 }
 0x1de   : > { %v568_v45 = vpop.permute.xlu0 %567 }
 0x1df   : > { %v573_v46 = vmul.f32 %v3634_v44, %v568_v45 }
 0x1e1   : > { %577 = vrot.lane.b32.xlu1 %v573_v46, %s4102_s25 }
 0x24f   : > { %v580_v50 = vpop.permute.xlu0 %579 }
 0x250   : > { %v584_v51 = vadd.f32 %v580_v50, %v564_v48 }
 0x252   : > { %3635 = vtanh.f32 %v584_v51  ;;  %v699_v23 = vrot.slane %v584_v51, 7 }
 0x253   : > { %v578_v53 = vpop.permute.xlu1 %577 }
 0x254   : > { %v583_v54 = vadd.f32 %v578_v53, %v563_v52 }
 0x256   : > { %3637 = vtanh.f32 %v583_v54  ;;  %v698_v25 = vrot.slane %v583_v54, 7 }
 0x25c   : > { %v3636_v55 = vpop.eup %3635 }
 0x25d   : > { %591 = vrot.lane.b32.xlu0 %v3636_v55, %s4103_s23 }
 0x260   : > { %v3638_v56 = vpop.eup %3637 }
 0x261   : > { %589 = vrot.lane.b32.xlu1 %v3638_v56, %s4103_s23 }
 0x2cf   : > { %v592_v57 = vpop.permute.xlu0 %591 }
 0x2d0   : > { %v4408_v58 = vmul.f32 %v3632_v41, %v592_v57 }
 0x2d2   : > { %v599_v60 = vrot.slane %v4408_v58, 7 }
 0x2d3   : > { %v590_v59 = vpop.permute.xlu1 %589 }
 0x2d4   : > { %v4411_v61 = vmul.f32 %v3634_v44, %v590_v59 }
 0x2d6   : > { %v601_v62 = vsel %vm600_vm3, %v599_v60, %v4411_v61 }
 0x2d7   : > { %602 = vrot.lane.b32.xlu0 %v601_v62, %s4102_s25 }
 0x349   : > { %v603_v63 = vpop.permute.xlu0 %602 }
 0x34a   : > { %3250 = vmatmul.mubr.msk.f32.vlgmr.msra.gmra.mrb[2].mxu0 %vm378_vm2, %v603_v63 }
 0x34b   : > { %3445 = vmatpush3.bf16.msra.mxu0 %v4365_v13  ;;  %3271 = vmatprep.mubr.msk.f32.mxu0 %vm4100_vm1, %v4101_v12 }
 0x34c   : > { %3446 = vmatprep.subr.bf16.mxu0 %v4099_v7 }
 0x34f   : > { %3448 = vmatpush3.bf16.msra.mxu0 %v4370_v19 }
 0x350   : > { %3455 = vmatprep.subr.bf16.mxu0 %v4099_v7 }
 0x41d   : > { %v672_v0 = vpop.f32.mrb[2].mxu0 }
 0x41e   : > { %v677_v1 = vrot.slane %v672_v0, 7  ;;  %v681_v2 = vadd.f32 %v672_v0, %v4396_v27  ;;  %v3251_v3 = vpop.f32.mrb[3].mxu0 }
 0x420   : > { %v680_v4 = vadd.f32 %v677_v1, %v4398_v30  ;;  %3639 = vtanh.f32 %v681_v2  ;;  %v3071_v8 = vmul.f32 -1.442695, %v681_v2 }
 0x422   : > { %3641 = vtanh.f32 %v680_v4  ;;  %v3070_v9 = vmul.f32 -1.442695, %v680_v4 }
 0x423   : > { %3643 = vpow2.f32 %v3071_v8 }
 0x424   : > { %3645 = vpow2.f32 %v3070_v9 }
 0x42a   : > { %v3640_v5 = vpop.eup %3639 }
 0x42b   : > { %708 = vrot.lane.b32.xlu0 %v3640_v5, %s4103_s23 }
 0x42c   : > { %v3642_v6 = vpop.eup %3641 }
 0x42d   : > { %706 = vrot.lane.b32.xlu1 %v3642_v6, %s4103_s23  ;;  %v3644_v10 = vpop.eup %3643 }
 0x42e   : > { %v3646_v11 = vpop.eup %3645  ;;  %v689_v14 = vadd.f32 1.0, %v3644_v10 }
 0x42f   : > { %v688_v15 = vadd.f32 1.0, %v3646_v11 }
 0x430   : > { %3647 = vrcp.f32 %v689_v14 }
 0x431   : > { %3649 = vrcp.f32 %v688_v15 }
 0x43a   : > { %v3648_v16 = vpop.eup %3647 }
 0x43b   : > { %v3650_v20 = vpop.eup %3649  ;;  %v703_v24 = vmul.f32 %v3648_v16, %v699_v23 }
 0x43c   : > { %v702_v29 = vmul.f32 %v3650_v20, %v698_v25 }
 0x49d   : > { %v709_v17 = vpop.permute.xlu0 %708 }
 0x49e   : > { %v713_v18 = vmul.f32 %v3648_v16, %v709_v17 }
 0x49f   : > { %v707_v21 = vpop.permute.xlu1 %706 }
 0x4a0   : > { %718 = vrot.lane.b32.xlu0 %v713_v18, %s4102_s25  ;;  %v712_v22 = vmul.f32 %v3650_v20, %v707_v21 }
 0x4a2   : > { %716 = vrot.lane.b32.xlu1 %v712_v22, %s4102_s25 }
 0x512   : > { %v719_v26 = vpop.permute.xlu0 %718 }
 0x513   : > { %v723_v28 = vadd.f32 %v719_v26, %v703_v24 }
 0x514   : > { %v717_v31 = vpop.permute.xlu1 %716 }
 0x515   : > { %3651 = vtanh.f32 %v723_v28  ;;  %v722_v32 = vadd.f32 %v717_v31, %v702_v29  ;;  %v838_v1 = vrot.slane %v723_v28, 7 }
 0x517   : > { %3653 = vtanh.f32 %v722_v32  ;;  %v837_v0 = vrot.slane %v722_v32, 7 }
 0x51f   : > { %v3652_v33 = vpop.eup %3651 }
 0x520   : > { %730 = vrot.lane.b32.xlu0 %v3652_v33, %s4103_s23 }
 0x521   : > { %v3654_v34 = vpop.eup %3653 }
 0x522   : > { %728 = vrot.lane.b32.xlu1 %v3654_v34, %s4103_s23 }
 0x592   : > { %v731_v35 = vpop.permute.xlu0 %730 }
 0x593   : > { %v4431_v38 = vmul.f32 %v3648_v16, %v731_v35 }
 0x594   : > { %v729_v36 = vpop.permute.xlu1 %728 }
 0x595   : > { %v734_v37 = vmul.f32 %v3650_v20, %v729_v36  ;;  %v1601_v18 = vsel %vm1599_vm4, %v4408_v58, %v4431_v38 }
 0x597   : > { %v738_v39 = vrot.slane %v734_v37, 1  ;;  %v1600_v16 = vsel %vm1599_vm4, %v4411_v61, %v734_v37 }
 0x599   : > { %v739_v40 = vsel %vm600_vm3, %v4431_v38, %v738_v39 }
 0x59a   : > { %740 = vrot.lane.b32.xlu1 %v739_v40, %s4102_s25 }
 0x60c   : > { %v741_v41 = vpop.permute.xlu1 %740 }
 0x60d   : > { %3261 = vmatmul.mubr.msk.f32.vlgmr.msra.gmra.mrb[2].mxu1 %vm378_vm2, %v741_v41 }
 0x60e   : > { %3451 = vmatpush3.bf16.msra.mxu1 %v4365_v13  ;;  %3282 = vmatprep.mubr.msk.f32.mxu1 %vm4100_vm1, %v4101_v12 }
 0x60f   : > { %3452 = vmatprep.subr.bf16.mxu1 %v4099_v7 }
 0x612   : > { %3454 = vmatpush3.bf16.msra.mxu1 %v4370_v19 }
 0x613   : > { %3461 = vmatprep.subr.bf16.mxu1 %v4099_v7 }
 0x6e0   : > { %v810_v42 = vpop.f32.mrb[2].mxu1 }
 0x6e1   : > { %v815_v43 = vrot.slane %v810_v42, 6  ;;  %v816_v44 = vrot.slane %v810_v42, 7  ;;  %v3262_v45 = vpop.f32.mrb[3].mxu1 }
 0x6e3   : > { %v819_v46 = vadd.f32 %v815_v43, %v4398_v30  ;;  %v820_v47 = vadd.f32 %v816_v44, %v4396_v27 }
 0x6e5   : > { %3655 = vtanh.f32 %v819_v46  ;;  %v3073_v50 = vmul.f32 -1.442695, %v819_v46  ;;  %v3074_v51 = vmul.f32 -1.442695, %v820_v47 }
 0x6e6   : > { %3657 = vtanh.f32 %v820_v47 }
 0x6e7   : > { %3659 = vpow2.f32 %v3073_v50 }
 0x6e8   : > { %3661 = vpow2.f32 %v3074_v51 }
 0x6ef   : > { %v3656_v48 = vpop.eup %3655 }
 0x6f0   : > { %v3658_v49 = vpop.eup %3657  ;;  %845 = vrot.lane.b32.xlu0 %v3656_v48, %s4103_s23 }
 0x6f1   : > { %847 = vrot.lane.b32.xlu1 %v3658_v49, %s4103_s23  ;;  %v3660_v52 = vpop.eup %3659 }
 0x6f2   : > { %v3662_v53 = vpop.eup %3661  ;;  %v827_v54 = vadd.f32 1.0, %v3660_v52 }
 0x6f3   : > { %v828_v55 = vadd.f32 1.0, %v3662_v53 }
 0x6f4   : > { %3663 = vrcp.f32 %v827_v54 }
 0x6f5   : > { %3665 = vrcp.f32 %v828_v55 }
 0x6fe   : > { %v3664_v56 = vpop.eup %3663 }
 0x6ff   : > { %v3666_v59 = vpop.eup %3665  ;;  %v841_v2 = vmul.f32 %v3664_v56, %v837_v0 }
 0x700   : > { %v842_v3 = vmul.f32 %v3666_v59, %v838_v1 }
 0x762   : > { %v846_v57 = vpop.permute.xlu0 %845 }
 0x763   : > { %v848_v60 = vpop.permute.xlu1 %847  ;;  %v851_v62 = vmul.f32 %v3664_v56, %v846_v57 }
 0x764   : > { %v852_v63 = vmul.f32 %v3666_v59, %v848_v60 }
 0x765   : > { %855 = vrot.lane.b32.xlu0 %v851_v62, %s4102_s25 }
 0x766   : > { %857 = vrot.lane.b32.xlu1 %v852_v63, %s4102_s25 }
 0x7d7   : > { %v856_v4 = vpop.permute.xlu0 %855 }
 0x7d8   : > { %v858_v5 = vpop.permute.xlu1 %857  ;;  %v861_v6 = vadd.f32 %v856_v4, %v841_v2 }
 0x7d9   : > { %v862_v8 = vadd.f32 %v858_v5, %v842_v3 }
 0x7da   : > { %3667 = vtanh.f32 %v861_v6  ;;  %v977_v46 = vrot.slane %v861_v6, 7 }
 0x7db   : > { %3669 = vtanh.f32 %v862_v8  ;;  %v978_v47 = vrot.slane %v862_v8, 7 }
 0x7e4   : > { %v3668_v9 = vpop.eup %3667 }
 0x7e5   : > { %v3670_v10 = vpop.eup %3669  ;;  %867 = vrot.lane.b32.xlu0 %v3668_v9, %s4103_s23 }
 0x7e6   : > { %869 = vrot.lane.b32.xlu1 %v3670_v10, %s4103_s23 }
 0x857   : > { %v868_v11 = vpop.permute.xlu0 %867 }
 0x858   : > { %v870_v14 = vpop.permute.xlu1 %869  ;;  %v873_v15 = vmul.f32 %v3664_v56, %v868_v11 }
 0x859   : > { %v874_v17 = vmul.f32 %v3666_v59, %v870_v14 }
 0x85a   : > { %v877_v20 = vrot.slane %v873_v15, 2  ;;  %v4457_v21 = vsel %vm1602_vm5, %v1600_v16, %v873_v15 }
 0x85b   : > { %v878_v22 = vrot.slane %v874_v17, 1  ;;  %v4460_v23 = vsel %vm1602_vm5, %v1601_v18, %v874_v17 }
 0x85d   : > { %v879_v24 = vsel %vm600_vm3, %v878_v22, %v877_v20 }
 0x85e   : > { %880 = vrot.lane.b32.xlu0 %v879_v24, %s4102_s25 }
 0x8d0   : > { %v881_v25 = vpop.permute.xlu0 %880 }
 0x8d1   : > { %3272 = vmatmul.mubr.msk.f32.vlgmr.msra.gmra.mrb[4].mxu0 %vm378_vm2, %v881_v25 }
 0x8d2   : > { %3457 = vmatpush3.bf16.msra.mxu0 %v4365_v13  ;;  %3293 = vmatprep.mubr.msk.f32.mxu0 %vm4100_vm1, %v4101_v12 }
 0x8d3   : > { %3458 = vmatprep.subr.bf16.mxu0 %v4099_v7 }
 0x8d6   : > { %3460 = vmatpush3.bf16.msra.mxu0 %v4370_v19 }
 0x8d7   : > { %3467 = vmatprep.subr.bf16.mxu0 %v4099_v7 }
 0x9a4   : > { %v950_v58 = vpop.f32.mrb[4].mxu0 }
 0x9a5   : > { %v955_v61 = vrot.slane %v950_v58, 5  ;;  %v956_v26 = vrot.slane %v950_v58, 6  ;;  %v3273_v28 = vpop.f32.mrb[5].mxu0 }
 0x9a7   : > { %v959_v29 = vadd.f32 %v955_v61, %v4398_v30  ;;  %v960_v31 = vadd.f32 %v956_v26, %v4396_v27 }
 0x9a9   : > { %3671 = vtanh.f32 %v959_v29  ;;  %v3076_v34 = vmul.f32 -1.442695, %v959_v29  ;;  %v3077_v35 = vmul.f32 -1.442695, %v960_v31 }
 0x9aa   : > { %3673 = vtanh.f32 %v960_v31 }
 0x9ab   : > { %3675 = vpow2.f32 %v3076_v34 }
 0x9ac   : > { %3677 = vpow2.f32 %v3077_v35 }
 0x9b3   : > { %v3672_v32 = vpop.eup %3671 }
 0x9b4   : > { %v3674_v33 = vpop.eup %3673  ;;  %985 = vrot.lane.b32.xlu1 %v3672_v32, %s4103_s23 }
 0x9b5   : > { %987 = vrot.lane.b32.xlu0 %v3674_v33, %s4103_s23  ;;  %v3676_v36 = vpop.eup %3675 }
 0x9b6   : > { %v3678_v37 = vpop.eup %3677  ;;  %v967_v38 = vadd.f32 1.0, %v3676_v36 }
 0x9b7   : > { %v968_v39 = vadd.f32 1.0, %v3678_v37 }
 0x9b8   : > { %3679 = vrcp.f32 %v967_v38 }
 0x9b9   : > { %3681 = vrcp.f32 %v968_v39 }
 0x9c2   : > { %v3680_v40 = vpop.eup %3679 }
 0x9c3   : > { %v3682_v42 = vpop.eup %3681  ;;  %v981_v48 = vmul.f32 %v3680_v40, %v977_v46 }
 0x9c4   : > { %v982_v49 = vmul.f32 %v3682_v42, %v978_v47 }
 0xa26   : > { %v986_v41 = vpop.permute.xlu1 %985 }
 0xa27   : > { %v988_v43 = vpop.permute.xlu0 %987  ;;  %v991_v44 = vmul.f32 %v3680_v40, %v986_v41 }
 0xa28   : > { %v992_v45 = vmul.f32 %v3682_v42, %v988_v43 }
 0xa29   : > { %995 = vrot.lane.b32.xlu1 %v991_v44, %s4102_s25 }
 0xa2a   : > { %997 = vrot.lane.b32.xlu0 %v992_v45, %s4102_s25 }
 0xa9b   : > { %v996_v50 = vpop.permute.xlu1 %995 }
 0xa9c   : > { %v998_v51 = vpop.permute.xlu0 %997  ;;  %v1001_v52 = vadd.f32 %v996_v50, %v981_v48 }
 0xa9d   : > { %v1002_v53 = vadd.f32 %v998_v51, %v982_v49 }
 0xa9e   : > { %3683 = vtanh.f32 %v1001_v52  ;;  %v1117_v26 = vrot.slane %v1001_v52, 7 }
 0xa9f   : > { %3685 = vtanh.f32 %v1002_v53  ;;  %v1118_v28 = vrot.slane %v1002_v53, 7 }
 0xaa8   : > { %v3684_v54 = vpop.eup %3683 }
 0xaa9   : > { %v3686_v55 = vpop.eup %3685  ;;  %1007 = vrot.lane.b32.xlu1 %v3684_v54, %s4103_s23 }
 0xaaa   : > { %1009 = vrot.lane.b32.xlu0 %v3686_v55, %s4103_s23 }
 0xb1b   : > { %v1008_v56 = vpop.permute.xlu1 %1007 }
 0xb1c   : > { %v1010_v57 = vpop.permute.xlu0 %1009  ;;  %v1013_v59 = vmul.f32 %v3680_v40, %v1008_v56 }
 0xb1d   : > { %v1014_v60 = vmul.f32 %v3682_v42, %v1010_v57 }
 0xb1e   : > { %v1017_v62 = vrot.slane %v1013_v59, 3  ;;  %v1606_v63 = vsel %vm1605_vm6, %v4457_v21, %v1013_v59 }
 0xb1f   : > { %v1018_v0 = vrot.slane %v1014_v60, 2  ;;  %v1607_v1 = vsel %vm1605_vm6, %v4460_v23, %v1014_v60 }
 0xb21   : > { %v1019_v2 = vsel %vm600_vm3, %v1018_v0, %v1017_v62 }
 0xb22   : > { %1020 = vrot.lane.b32.xlu1 %v1019_v2, %s4102_s25 }
 0xb94   : > { %v1021_v3 = vpop.permute.xlu1 %1020 }
 0xb95   : > { %3283 = vmatmul.mubr.msk.f32.vlgmr.msra.gmra.mrb[4].mxu1 %vm378_vm2, %v1021_v3 }
 0xb96   : > { %3463 = vmatpush3.bf16.msra.mxu1 %v4365_v13  ;;  %3304 = vmatprep.mubr.msk.f32.mxu1 %vm4100_vm1, %v4101_v12 }
 0xb97   : > { %3464 = vmatprep.subr.bf16.mxu1 %v4099_v7 }
 0xb9a   : > { %3466 = vmatpush3.bf16.msra.mxu1 %v4370_v19 }
 0xc68   : > { %v1090_v4 = vpop.f32.mrb[4].mxu1 }
 0xc69   : > { %v1095_v5 = vrot.slane %v1090_v4, 4  ;;  %v1096_v6 = vrot.slane %v1090_v4, 5  ;;  %v3284_v8 = vpop.f32.mrb[5].mxu1 }
 0xc6b   : > { %v1099_v9 = vadd.f32 %v1095_v5, %v4398_v30  ;;  %v1100_v10 = vadd.f32 %v1096_v6, %v4396_v27 }
 0xc6d   : > { %3687 = vtanh.f32 %v1099_v9  ;;  %v3079_v15 = vmul.f32 -1.442695, %v1099_v9  ;;  %v3080_v16 = vmul.f32 -1.442695, %v1100_v10 }
 0xc6e   : > { %3689 = vtanh.f32 %v1100_v10 }
 0xc6f   : > { %3691 = vpow2.f32 %v3079_v15 }
 0xc70   : > { %3693 = vpow2.f32 %v3080_v16 }
 0xc77   : > { %v3688_v11 = vpop.eup %3687 }
 0xc78   : > { %v3690_v14 = vpop.eup %3689  ;;  %1125 = vrot.lane.b32.xlu0 %v3688_v11, %s4103_s23 }
 0xc79   : > { %1127 = vrot.lane.b32.xlu1 %v3690_v14, %s4103_s23  ;;  %v3692_v17 = vpop.eup %3691 }
 0xc7a   : > { %v3694_v18 = vpop.eup %3693  ;;  %v1107_v20 = vadd.f32 1.0, %v3692_v17 }
 0xc7b   : > { %v1108_v21 = vadd.f32 1.0, %v3694_v18 }
 0xc7c   : > { %3695 = vrcp.f32 %v1107_v20 }
 0xc7d   : > { %3697 = vrcp.f32 %v1108_v21 }
 0xc86   : > { %v3696_v22 = vpop.eup %3695 }
 0xc87   : > { %v3698_v24 = vpop.eup %3697  ;;  %v1121_v29 = vmul.f32 %v3696_v22, %v1117_v26 }
 0xc88   : > { %v1122_v31 = vmul.f32 %v3698_v24, %v1118_v28 }
 0xcea   : > { %v1126_v23 = vpop.permute.xlu0 %1125 }
 0xceb   : > { %v1128_v25 = vpop.permute.xlu1 %1127  ;;  %v1131_v58 = vmul.f32 %v3696_v22, %v1126_v23 }
 0xcec   : > { %v1132_v61 = vmul.f32 %v3698_v24, %v1128_v25 }
 0xced   : > { %1135 = vrot.lane.b32.xlu0 %v1131_v58, %s4102_s25 }
 0xcee   : > { %1137 = vrot.lane.b32.xlu1 %v1132_v61, %s4102_s25 }
 0xd5f   : > { %v1136_v32 = vpop.permute.xlu0 %1135 }
 0xd60   : > { %v1138_v33 = vpop.permute.xlu1 %1137  ;;  %v1141_v34 = vadd.f32 %v1136_v32, %v1121_v29 }
 0xd61   : > { %v1142_v35 = vadd.f32 %v1138_v33, %v1122_v31 }
 0xd62   : > { %3699 = vtanh.f32 %v1141_v34  ;;  %v1257_v4 = vrot.slane %v1141_v34, 7 }
 0xd63   : > { %3701 = vtanh.f32 %v1142_v35  ;;  %v1258_v5 = vrot.slane %v1142_v35, 7 }
 0xd6c   : > { %v3700_v36 = vpop.eup %3699 }
 0xd6d   : > { %v3702_v37 = vpop.eup %3701  ;;  %1147 = vrot.lane.b32.xlu0 %v3700_v36, %s4103_s23 }
 0xd6e   : > { %1149 = vrot.lane.b32.xlu1 %v3702_v37, %s4103_s23 }
 0xddf   : > { %v1148_v38 = vpop.permute.xlu0 %1147 }
 0xde0   : > { %v1150_v39 = vpop.permute.xlu1 %1149  ;;  %v1153_v40 = vmul.f32 %v3696_v22, %v1148_v38 }
 0xde1   : > { %v1154_v41 = vmul.f32 %v3698_v24, %v1150_v39 }
 0xde2   : > { %v1157_v42 = vrot.slane %v1153_v40, 4  ;;  %v4500_v43 = vsel %vm1608_vm7, %v1606_v63, %v1153_v40 }
 0xde3   : > { %v1158_v44 = vrot.slane %v1154_v41, 3  ;;  %v4503_v45 = vsel %vm1608_vm7, %v1607_v1, %v1154_v41 }
 0xde5   : > { %v1159_v46 = vsel %vm600_vm3, %v1158_v44, %v1157_v42 }
 0xde6   : > { %1160 = vrot.lane.b32.xlu0 %v1159_v46, %s4102_s25 }
 0xe58   : > { %v1161_v47 = vpop.permute.xlu0 %1160 }
 0xe59   : > { %3294 = vmatmul.mubr.msk.f32.vlgmr.msra.gmra.mrb[6].mxu0 %vm378_vm2, %v1161_v47 }
 0xe5a   : > { %3469 = vmatpush3.bf16.msra.mxu0 %v4365_v13  ;;  %3315 = vmatprep.mubr.msk.f32.mxu0 %vm4100_vm1, %v4101_v12 }
 0xe5b   : > { %3470 = vmatprep.subr.bf16.mxu0 %v4099_v7 }
 0xe5e   : > { %3472 = vmatpush3.bf16.msra.mxu0 %v4370_v19 }
 0xe5f   : > { %3481 = vmatprep.subr.bf16.mxu0 %v4099_v7 }
 0xf2c   : > { %v1230_v48 = vpop.f32.mrb[6].mxu0 }
 0xf2d   : > { %v1235_v49 = vrot.slane %v1230_v48, 3  ;;  %v1236_v50 = vrot.slane %v1230_v48, 4  ;;  %v3295_v51 = vpop.f32.mrb[7].mxu0 }
 0xf2f   : > { %v1239_v52 = vadd.f32 %v1235_v49, %v4398_v30  ;;  %v1240_v53 = vadd.f32 %v1236_v50, %v4396_v27 }
 0xf31   : > { %3703 = vtanh.f32 %v1239_v52  ;;  %v3082_v55 = vmul.f32 -1.442695, %v1239_v52  ;;  %v3083_v19 = vmul.f32 -1.442695, %v1240_v53 }
 0xf32   : > { %3705 = vtanh.f32 %v1240_v53 }
 0xf33   : > { %3707 = vpow2.f32 %v3082_v55 }
 0xf34   : > { %3709 = vpow2.f32 %v3083_v19 }
 0xf3b   : > { %v3704_v13 = vpop.eup %3703 }
 0xf3c   : > { %v3706_v54 = vpop.eup %3705  ;;  %1265 = vrot.lane.b32.xlu1 %v3704_v13, %s4103_s23 }
 0xf3d   : > { %1267 = vrot.lane.b32.xlu0 %v3706_v54, %s4103_s23  ;;  %v3708_v56 = vpop.eup %3707 }
 0xf3e   : > { %v3710_v57 = vpop.eup %3709  ;;  %v1247_v59 = vadd.f32 1.0, %v3708_v56 }
 0xf3f   : > { %v1248_v60 = vadd.f32 1.0, %v3710_v57 }
 0xf40   : > { %3711 = vrcp.f32 %v1247_v59 }
 0xf41   : > { %3713 = vrcp.f32 %v1248_v60 }
 0xf4a   : > { %v3712_v62 = vpop.eup %3711 }
 0xf4b   : > { %v3714_v0 = vpop.eup %3713  ;;  %v1261_v6 = vmul.f32 %v3712_v62, %v1257_v4 }
 0xf4c   : > { %v1262_v8 = vmul.f32 %v3714_v0, %v1258_v5 }
 0xfae   : > { %v1266_v63 = vpop.permute.xlu1 %1265 }
 0xfaf   : > { %v1268_v1 = vpop.permute.xlu0 %1267  ;;  %v1271_v2 = vmul.f32 %v3712_v62, %v1266_v63 }
 0xfb0   : > { %v1272_v3 = vmul.f32 %v3714_v0, %v1268_v1 }
 0xfb1   : > { %1275 = vrot.lane.b32.xlu1 %v1271_v2, %s4102_s25 }
 0xfb2   : > { %1277 = vrot.lane.b32.xlu0 %v1272_v3, %s4102_s25 }
0x1023   : > { %v1276_v9 = vpop.permute.xlu1 %1275 }
0x1024   : > { %v1278_v10 = vpop.permute.xlu0 %1277  ;;  %v1281_v11 = vadd.f32 %v1276_v9, %v1261_v6 }
0x1025   : > { %v1282_v14 = vadd.f32 %v1278_v10, %v1262_v8 }
0x1026   : > { %3715 = vtanh.f32 %v1281_v11  ;;  %v1397_v48 = vrot.slane %v1281_v11, 7 }
0x1027   : > { %3717 = vtanh.f32 %v1282_v14  ;;  %v1398_v49 = vrot.slane %v1282_v14, 7 }
0x1030   : > { %v3716_v15 = vpop.eup %3715 }
0x1031   : > { %v3718_v16 = vpop.eup %3717  ;;  %1287 = vrot.lane.b32.xlu1 %v3716_v15, %s4103_s23 }
0x1032   : > { %1289 = vrot.lane.b32.xlu0 %v3718_v16, %s4103_s23 }
0x10a3   : > { %v1288_v17 = vpop.permute.xlu1 %1287 }
0x10a4   : > { %v1290_v18 = vpop.permute.xlu0 %1289  ;;  %v1293_v20 = vmul.f32 %v3712_v62, %v1288_v17 }
0x10a5   : > { %v1294_v21 = vmul.f32 %v3714_v0, %v1290_v18 }
0x10a6   : > { %v1297_v22 = vrot.slane %v1293_v20, 5  ;;  %v1612_v23 = vsel %vm1611_vm8, %v4500_v43, %v1293_v20 }
0x10a7   : > { %v1298_v24 = vrot.slane %v1294_v21, 4  ;;  %v1613_v25 = vsel %vm1611_vm8, %v4503_v45, %v1294_v21 }
0x10a9   : > { %v1299_v58 = vsel %vm600_vm3, %v1298_v24, %v1297_v22 }
0x10aa   : > { %1300 = vrot.lane.b32.xlu1 %v1299_v58, %s4102_s25 }
0x111c   : > { %v1301_v61 = vpop.permute.xlu1 %1300 }
0x111d   : > { %3305 = vmatmul.mubr.msk.f32.vlgmr.msra.gmra.mrb[6].mxu1 %vm378_vm2, %v1301_v61 }
0x11f0   : > { %v1370_v26 = vpop.f32.mrb[6].mxu1 }
0x11f1   : > { %v1375_v28 = vrot.slane %v1370_v26, 2  ;;  %v1376_v29 = vrot.slane %v1370_v26, 3  ;;  %v3306_v31 = vpop.f32.mrb[7].mxu1 }
0x11f3   : > { %v1379_v32 = vadd.f32 %v1375_v28, %v4398_v30  ;;  %v1380_v33 = vadd.f32 %v1376_v29, %v4396_v27 }
0x11f5   : > { %3719 = vtanh.f32 %v1379_v32  ;;  %v3085_v36 = vmul.f32 -1.442695, %v1379_v32  ;;  %v3086_v37 = vmul.f32 -1.442695, %v1380_v33 }
0x11f6   : > { %3721 = vtanh.f32 %v1380_v33 }
0x11f7   : > { %3723 = vpow2.f32 %v3085_v36  ;;  %v1626_v36 = vld [vmem:[#allocation9 + $0x20] sm:$0xff] }
0x11f8   : > { %3725 = vpow2.f32 %v3086_v37 }
0x11ff   : > { %v3720_v34 = vpop.eup %3719 }
0x1200   : > { %v3722_v35 = vpop.eup %3721  ;;  %1405 = vrot.lane.b32.xlu0 %v3720_v34, %s4103_s23  ;;  %v1621_v34 = vld [vmem:[#allocation7 + $0x20] sm:$0xff] }
0x1201   : > { %1407 = vrot.lane.b32.xlu1 %v3722_v35, %s4103_s23  ;;  %v3724_v38 = vpop.eup %3723  ;;  %v1622_v35 = vld [vmem:[#allocation7 + $0x28] sm:$0xff] }
0x1202   : > { %v3726_v39 = vpop.eup %3725  ;;  %v1387_v40 = vadd.f32 1.0, %v3724_v38  ;;  %v3473_v37 = vpack.c.bf16 %v1622_v35, %v1621_v34  ;;  %v1627_v38 = vld [vmem:[#allocation9 + $0x28] sm:$0xff] }
0x1203   : > { %v1388_v41 = vadd.f32 1.0, %v3726_v39  ;;  %v1623_v39 = vld [vmem:[#allocation7 + $0x30] sm:$0xff] }
0x1204   : > { %3727 = vrcp.f32 %v1387_v40  ;;  %v1624_v40 = vld [vmem:[#allocation7 + $0x38] sm:$0xff]  ;;  %3474 = vmatprep.subr.bf16.mxu1 %v3473_v37 }
0x1205   : > { %3729 = vrcp.f32 %v1388_v41  ;;  %v4560_v41 = vpack.c.bf16 %v1627_v38, %v1626_v36  ;;  %3476 = vmatpush3.bf16.msra.mxu1 %v3473_v37 }
0x120e   : > { %v3728_v42 = vpop.eup %3727 }
0x120f   : > { %v3730_v44 = vpop.eup %3729  ;;  %v1401_v50 = vmul.f32 %v3728_v42, %v1397_v48  ;;  %v1724_v48 = vld [vmem:[#allocation2 + $0x2] sm:$0x3] }
0x1210   : > { %v1402_v51 = vmul.f32 %v3730_v44, %v1398_v49 }
0x1272   : > { %v1406_v43 = vpop.permute.xlu0 %1405 }
0x1273   : > { %v1408_v45 = vpop.permute.xlu1 %1407  ;;  %v1411_v46 = vmul.f32 %v3728_v42, %v1406_v43  ;;  %v1628_v43 = vld [vmem:[#allocation9 + $0x30] sm:$0xff] }
0x1274   : > { %v1412_v47 = vmul.f32 %v3730_v44, %v1408_v45 }
0x1275   : > { %1415 = vrot.lane.b32.xlu0 %v1411_v46, %s4102_s25 }
0x1276   : > { %1417 = vrot.lane.b32.xlu1 %v1412_v47, %s4102_s25 }
0x12e7   : > { %v1416_v52 = vpop.permute.xlu0 %1415 }
0x12e8   : > { %v1418_v53 = vpop.permute.xlu1 %1417  ;;  %v1421_v13 = vadd.f32 %v1416_v52, %v1401_v50 }
0x12e9   : > { %v1422_v54 = vadd.f32 %v1418_v53, %v1402_v51 }
0x12ea   : > { %3731 = vtanh.f32 %v1421_v13  ;;  %v1537_v58 = vrot.slane %v1421_v13, 7 }
0x12eb   : > { %3733 = vtanh.f32 %v1422_v54  ;;  %v1538_v61 = vrot.slane %v1422_v54, 7 }
0x12f4   : > { %v3732_v55 = vpop.eup %3731 }
0x12f5   : > { %v3734_v19 = vpop.eup %3733  ;;  %1427 = vrot.lane.b32.xlu0 %v3732_v55, %s4103_s23 }
0x12f6   : > { %1429 = vrot.lane.b32.xlu1 %v3734_v19, %s4103_s23 }
0x1367   : > { %v1428_v56 = vpop.permute.xlu0 %1427 }
0x1368   : > { %v1430_v57 = vpop.permute.xlu1 %1429  ;;  %v1433_v59 = vmul.f32 %v3728_v42, %v1428_v56  ;;  %v3477_v42 = vpack.c.bf16 %v1624_v40, %v1623_v39 }
0x1369   : > { %v1434_v60 = vmul.f32 %v3730_v44, %v1430_v57  ;;  %v1629_v44 = vld [vmem:[#allocation9 + $0x38] sm:$0xff] }
0x136a   : > { %v1437_v62 = vrot.slane %v1433_v59, 6  ;;  %v4538_v63 = vsel %vm1614_vm9, %v1612_v23, %v1433_v59  ;;  %v4563_v45 = vpack.c.bf16 %v1629_v44, %v1628_v43  ;;  %3478 = vmatprep.subr.bf16.mxu1 %v3477_v42  ;;  %v3091_v57 = vld [vmem:[%s4871_s3 + $0x1] ss:$0 sm:$0xff] }
0x136b   : > { %v1438_v0 = vrot.slane %v1434_v60, 5  ;;  %v4541_v1 = vsel %vm1614_vm9, %v1613_v25, %v1434_v60  ;;  %3480 = vmatpush3.bf16.msra.mxu1 %v3477_v42 }
0x136c   : > { %3487 = vmatprep.subr.bf16.mxu1 %v4099_v7 }
0x136d   : > { %v1439_v2 = vsel %vm600_vm3, %v1438_v0, %v1437_v62 }
0x136e   : > { %1440 = vrot.lane.b32.xlu0 %v1439_v2, %s4102_s25 }
0x13e0   : > { %v1441_v3 = vpop.permute.xlu0 %1440 }
0x13e1   : > { %3316 = vmatmul.mubr.msk.f32.vlgmr.msra.gmra.mrb[8].mxu0 %vm378_vm2, %v1441_v3  ;;  %v1726_v3 = vld [vmem:[#allocation3 + $0x2] sm:$0x3] }
0x13e2   : > { %3337 = vmatprep.mubr.msk.f32.mxu0 %vm4100_vm1, %v4101_v12  ;;  %3483 = vmatpush3.bf16.msra.mxu0 %v4560_v41 }
0x13e3   : > { %3484 = vmatprep.subr.bf16.mxu0 %v4099_v7 }
0x13e6   : > { %3486 = vmatpush3.bf16.msra.mxu0 %v4563_v45 }
0x13e7   : > { %3493 = vmatprep.subr.bf16.mxu0 %v4099_v7 }
0x13e9   : > { %3338 = vmatmul.mubr.msk.f32.vlgmr.msra.gmra.mrb[10].mxu0 %vm378_vm2, %v1724_v48 }
0x13ea   : > { %3495 = vmatpush3.bf16.msra.mxu0 %v4560_v41  ;;  %3359 = vmatprep.mubr.msk.f32.mxu0 %vm4100_vm1, %v4101_v12 }
0x13eb   : > { %3496 = vmatprep.subr.bf16.mxu0 %v4099_v7 }
0x13ee   : > { %3498 = vmatpush3.bf16.msra.mxu0 %v4563_v45 }
0x13ef   : > { %3505 = vmatprep.subr.bf16.mxu0 %v4099_v7 }
0x14b4   : > { %v1510_v4 = vpop.f32.mrb[8].mxu0 }
0x14b5   : > { %v1515_v5 = vrot.slane %v1510_v4, 1  ;;  %v1516_v6 = vrot.slane %v1510_v4, 2  ;;  %v3317_v8 = vpop.f32.mrb[9].mxu0 }
0x14b7   : > { %v1519_v9 = vadd.f32 %v1515_v5, %v4398_v30  ;;  %v1520_v10 = vadd.f32 %v1516_v6, %v4396_v27  ;;  %v1821_v6 = vrot.slane %v1726_v3, 1 }
0x14b9   : > { %3735 = vtanh.f32 %v1519_v9  ;;  %v3088_v15 = vmul.f32 -1.442695, %v1519_v9  ;;  %v3089_v16 = vmul.f32 -1.442695, %v1520_v10 }
0x14ba   : > { %3737 = vtanh.f32 %v1520_v10 }
0x14bb   : > { %3739 = vpow2.f32 %v3088_v15 }
0x14bc   : > { %3741 = vpow2.f32 %v3089_v16  ;;  %v1796_v19 = vpop.f32.mrb[10].mxu0 }
0x14bd   : > { %v3339_v56 = vpop.f32.mrb[11].mxu0  ;;  %v1801_v59 = vrot.slane %v1796_v19, 1 }
0x14c3   : > { %v3736_v11 = vpop.eup %3735 }
0x14c4   : > { %v3738_v14 = vpop.eup %3737  ;;  %1545 = vrot.lane.b32.xlu1 %v3736_v11, %s4103_s23 }
0x14c5   : > { %1547 = vrot.lane.b32.xlu0 %v3738_v14, %s4103_s23  ;;  %v3740_v17 = vpop.eup %3739 }
0x14c6   : > { %v3742_v18 = vpop.eup %3741  ;;  %v1527_v20 = vadd.f32 1.0, %v3740_v17 }
0x14c7   : > { %v1528_v21 = vadd.f32 1.0, %v3742_v18 }
0x14c8   : > { %3743 = vrcp.f32 %v1527_v20 }
0x14c9   : > { %3745 = vrcp.f32 %v1528_v21 }
0x14d2   : > { %v3744_v30 = vpop.eup %3743 }
0x14d3   : > { %v3746_v22 = vpop.eup %3745  ;;  %v1541_v26 = vmul.f32 %v3744_v30, %v1537_v58 }
0x14d4   : > { %v1542_v28 = vmul.f32 %v3746_v22, %v1538_v61 }
0x1536   : > { %v1546_v27 = vpop.permute.xlu1 %1545 }
0x1537   : > { %v1548_v23 = vpop.permute.xlu0 %1547  ;;  %v1551_v24 = vmul.f32 %v3744_v30, %v1546_v27 }
0x1538   : > { %v1552_v25 = vmul.f32 %v3746_v22, %v1548_v23 }
0x1539   : > { %1555 = vrot.lane.b32.xlu1 %v1551_v24, %s4102_s25 }
0x153a   : > { %1557 = vrot.lane.b32.xlu0 %v1552_v25, %s4102_s25 }
0x15ab   : > { %v1556_v29 = vpop.permute.xlu1 %1555 }
0x15ac   : > { %v1558_v31 = vpop.permute.xlu0 %1557  ;;  %v4554_v32 = vadd.f32 %v1556_v29, %v1541_v26 }
0x15ad   : > { %v4556_v33 = vadd.f32 %v1558_v31, %v1542_v28 }
0x15ae   : > { %3747 = vtanh.f32 %v4554_v32 }
0x15af   : > { %3749 = vtanh.f32 %v4556_v33 }
0x15b8   : > { %v3748_v46 = vpop.eup %3747 }
0x15b9   : > { %v3750_v47 = vpop.eup %3749  ;;  %1567 = vrot.lane.b32.xlu1 %v3748_v46, %s4103_s23 }
0x15ba   : > { %1569 = vrot.lane.b32.xlu0 %v3750_v47, %s4103_s23 }
0x162b   : > { %v1568_v49 = vpop.permute.xlu1 %1567 }
0x162c   : > { %v1570_v50 = vpop.permute.xlu0 %1569  ;;  %v4578_v51 = vmul.f32 %v3744_v30, %v1568_v49 }
0x162d   : > { %v4580_v52 = vmul.f32 %v3746_v22, %v1570_v50 }
0x162e   : > { %v1618_v53 = vsel %vm1617_vm10, %v4538_v63, %v4578_v51 }
0x162f   : > { %v1619_v13 = vsel %vm1617_vm10, %v4541_v1, %v4580_v52  ;;  %1640 = vrot.lane.b32.xlu1 %v1618_v53, %s4102_s25 }
0x1630   : > { %1642 = vrot.lane.b32.xlu0 %v1619_v13, %s4102_s25 }
0x16a1   : > { %v1641_v54 = vpop.permute.xlu1 %1640 }
0x16a2   : > { %v1643_v55 = vpop.permute.xlu0 %1642  ;;  %3326 = vmatprep.mubr.msk.f32.mxu1 %vm378_vm2, %v1641_v54 }
0x16a3   : > { %3327 = vmatmul.mubr.msk.f32.vlgmr.msra.gmra.mrb[8].mxu1 %vm378_vm2, %v1643_v55 }
0x16a4   : > { %3489 = vmatpush3.bf16.msra.mxu1 %v4560_v41  ;;  %3348 = vmatprep.mubr.msk.f32.mxu1 %vm4100_vm1, %v4101_v12 }
0x16a5   : > { %3490 = vmatprep.subr.bf16.mxu1 %v4099_v7 }
0x16a8   : > { %3492 = vmatpush3.bf16.msra.mxu1 %v4563_v45 }
0x16a9   : > { %3499 = vmatprep.subr.bf16.mxu1 %v4099_v7 }
0x1776   : > { %v3328_v60 = vpop.f32.mrb[8].mxu1 }
0x1777   : > { %v4601_v62 = vadd.f32 %v3328_v60, %v3091_v57  ;;  %v1714_v63 = vpop.f32.mrb[9].mxu1 }
0x1778   : > { %v4603_v0 = vadd.f32 %v3091_v57, %v1714_v63 }
0x1779   : > { %v1805_v1 = vadd.f32 %v1801_v59, %v4601_v62 }
0x177a   : > { %v1804_v2 = vadd.f32 %v1796_v19, %v4603_v0 }
0x177b   : > { %3751 = vtanh.f32 %v1805_v1  ;;  %v3096_v8 = vmul.f32 -1.442695, %v1805_v1 }
0x177c   : > { %3753 = vtanh.f32 %v1804_v2  ;;  %v3095_v9 = vmul.f32 -1.442695, %v1804_v2 }
0x177d   : > { %3755 = vpow2.f32 %v3096_v8 }
0x177e   : > { %3757 = vpow2.f32 %v3095_v9 }
0x1785   : > { %v3752_v4 = vpop.eup %3751 }
0x1786   : > { %v3754_v5 = vpop.eup %3753  ;;  %1834 = vrot.lane.b32.xlu1 %v3752_v4, %s4103_s23 }
0x1787   : > { %1832 = vrot.lane.b32.xlu0 %v3754_v5, %s4103_s23  ;;  %v3756_v10 = vpop.eup %3755 }
0x1788   : > { %v3758_v11 = vpop.eup %3757  ;;  %v1813_v14 = vadd.f32 1.0, %v3756_v10 }
0x1789   : > { %v1812_v15 = vadd.f32 1.0, %v3758_v11 }
0x178a   : > { %1824 = vrot.lane.b32.xlu1 %v1821_v6, %s4102_s25  ;;  %3759 = vrcp.f32 %v1813_v14 }
0x178b   : > { %1822 = vrot.lane.b32.xlu0 %v1726_v3, %s4102_s25  ;;  %3761 = vrcp.f32 %v1812_v15 }
0x1794   : > { %v3760_v16 = vpop.eup %3759 }
0x1795   : > { %v3762_v18 = vpop.eup %3761 }
0x17f8   : > { %v1835_v17 = vpop.permute.xlu1 %1834 }
0x17f9   : > { %v1839_v20 = vmul.f32 %v3760_v16, %v1835_v17  ;;  %v1833_v21 = vpop.permute.xlu0 %1832 }
0x17fa   : > { %v1838_v30 = vmul.f32 %v3762_v18, %v1833_v21 }
0x17fb   : > { %1844 = vrot.lane.b32.xlu1 %v1839_v20, %s4102_s25 }
0x17fc   : > { %1842 = vrot.lane.b32.xlu0 %v1838_v30, %s4102_s25  ;;  %v1825_v27 = vpop.permute.xlu1 %1824 }
0x17fd   : > { %v1823_v22 = vpop.permute.xlu0 %1822  ;;  %v1829_v23 = vmul.f32 %v3760_v16, %v1825_v27 }
0x17fe   : > { %v1828_v24 = vmul.f32 %v3762_v18, %v1823_v22 }
0x186d   : > { %v1845_v25 = vpop.permute.xlu1 %1844 }
0x186e   : > { %v1849_v58 = vadd.f32 %v1845_v25, %v1829_v23  ;;  %v1843_v61 = vpop.permute.xlu0 %1842 }
0x186f   : > { %v1848_v26 = vadd.f32 %v1843_v61, %v1828_v24 }
0x1870   : > { %3763 = vtanh.f32 %v1849_v58  ;;  %v1963_v1 = vrot.slane %v1849_v58, 7 }
0x1871   : > { %3765 = vtanh.f32 %v1848_v26  ;;  %v1962_v3 = vrot.slane %v1848_v26, 7 }
0x187a   : > { %v3764_v28 = vpop.eup %3763 }
0x187b   : > { %v3766_v29 = vpop.eup %3765  ;;  %1856 = vrot.lane.b32.xlu1 %v3764_v28, %s4103_s23 }
0x187c   : > { %1854 = vrot.lane.b32.xlu0 %v3766_v29, %s4103_s23 }
0x18ed   : > { %v1857_v31 = vpop.permute.xlu1 %1856 }
0x18ee   : > { %v4615_v34 = vmul.f32 %v3760_v16, %v1857_v31  ;;  %v1855_v35 = vpop.permute.xlu0 %1854 }
0x18ef   : > { %v4617_v36 = vmul.f32 %v3762_v18, %v1855_v35 }
0x18f0   : > { %v1864_v37 = vrot.slane %v4615_v34, 7 }
0x18f2   : > { %v1865_v38 = vsel %vm600_vm3, %v1864_v37, %v4617_v36 }
0x18f3   : > { %1866 = vrot.lane.b32.xlu1 %v1865_v38, %s4102_s25 }
0x1965   : > { %v1867_v39 = vpop.permute.xlu1 %1866 }
0x1966   : > { %3349 = vmatmul.mubr.msk.f32.vlgmr.msra.gmra.mrb[10].mxu1 %vm378_vm2, %v1867_v39 }
0x1967   : > { %3501 = vmatpush3.bf16.msra.mxu1 %v4560_v41  ;;  %3370 = vmatprep.mubr.msk.f32.mxu1 %vm4100_vm1, %v4101_v12 }
0x1968   : > { %3502 = vmatprep.subr.bf16.mxu1 %v4099_v7 }
0x196b   : > { %3504 = vmatpush3.bf16.msra.mxu1 %v4563_v45 }
0x196c   : > { %3511 = vmatprep.subr.bf16.mxu1 %v4099_v7 }
0x1a39   : > { %v1936_v40 = vpop.f32.mrb[10].mxu1 }
0x1a3a   : > { %v1941_v42 = vrot.slane %v1936_v40, 7  ;;  %v1945_v43 = vadd.f32 %v1936_v40, %v4601_v62  ;;  %v3350_v44 = vpop.f32.mrb[11].mxu1 }
0x1a3c   : > { %v1944_v46 = vadd.f32 %v1941_v42, %v4603_v0  ;;  %3767 = vtanh.f32 %v1945_v43  ;;  %v3099_v49 = vmul.f32 -1.442695, %v1945_v43 }
0x1a3e   : > { %3769 = vtanh.f32 %v1944_v46  ;;  %v3098_v50 = vmul.f32 -1.442695, %v1944_v46 }
0x1a3f   : > { %3771 = vpow2.f32 %v3099_v49 }
0x1a40   : > { %3773 = vpow2.f32 %v3098_v50 }
0x1a46   : > { %v3768_v47 = vpop.eup %3767 }
0x1a47   : > { %1972 = vrot.lane.b32.xlu1 %v3768_v47, %s4103_s23 }
0x1a48   : > { %v3770_v48 = vpop.eup %3769 }
0x1a49   : > { %1970 = vrot.lane.b32.xlu0 %v3770_v48, %s4103_s23  ;;  %v3772_v53 = vpop.eup %3771 }
0x1a4a   : > { %v3774_v13 = vpop.eup %3773  ;;  %v1953_v54 = vadd.f32 1.0, %v3772_v53 }
0x1a4b   : > { %v1952_v55 = vadd.f32 1.0, %v3774_v13 }
0x1a4c   : > { %3775 = vrcp.f32 %v1953_v54 }
0x1a4d   : > { %3777 = vrcp.f32 %v1952_v55 }
0x1a56   : > { %v3776_v19 = vpop.eup %3775 }
0x1a57   : > { %v3778_v59 = vpop.eup %3777  ;;  %v1967_v2 = vmul.f32 %v3776_v19, %v1963_v1 }
0x1a58   : > { %v1966_v6 = vmul.f32 %v3778_v59, %v1962_v3 }
0x1ab9   : > { %v1973_v56 = vpop.permute.xlu1 %1972 }
0x1aba   : > { %v1977_v57 = vmul.f32 %v3776_v19, %v1973_v56 }
0x1abb   : > { %v1971_v60 = vpop.permute.xlu0 %1970 }
0x1abc   : > { %1982 = vrot.lane.b32.xlu1 %v1977_v57, %s4102_s25  ;;  %v1976_v63 = vmul.f32 %v3778_v59, %v1971_v60 }
0x1abe   : > { %1980 = vrot.lane.b32.xlu0 %v1976_v63, %s4102_s25 }
0x1b2e   : > { %v1983_v4 = vpop.permute.xlu1 %1982 }
0x1b2f   : > { %v1987_v5 = vadd.f32 %v1983_v4, %v1967_v2 }
0x1b30   : > { %v1981_v8 = vpop.permute.xlu0 %1980 }
0x1b31   : > { %3779 = vtanh.f32 %v1987_v5  ;;  %v1986_v9 = vadd.f32 %v1981_v8, %v1966_v6  ;;  %v2102_v47 = vrot.slane %v1987_v5, 7 }
0x1b33   : > { %3781 = vtanh.f32 %v1986_v9  ;;  %v2101_v46 = vrot.slane %v1986_v9, 7 }
0x1b3b   : > { %v3780_v10 = vpop.eup %3779 }
0x1b3c   : > { %1994 = vrot.lane.b32.xlu1 %v3780_v10, %s4103_s23 }
0x1b3d   : > { %v3782_v11 = vpop.eup %3781 }
0x1b3e   : > { %1992 = vrot.lane.b32.xlu0 %v3782_v11, %s4103_s23 }
0x1bae   : > { %v1995_v14 = vpop.permute.xlu1 %1994 }
0x1baf   : > { %v1999_v17 = vmul.f32 %v3776_v19, %v1995_v14 }
0x1bb0   : > { %v1993_v15 = vpop.permute.xlu0 %1992 }
0x1bb1   : > { %v1998_v16 = vmul.f32 %v3778_v59, %v1993_v15  ;;  %v2862_v1 = vsel %vm1599_vm4, %v4615_v34, %v1999_v17 }
0x1bb3   : > { %v2002_v18 = vrot.slane %v1998_v16, 1  ;;  %v2861_v60 = vsel %vm1599_vm4, %v4617_v36, %v1998_v16 }
0x1bb5   : > { %v2003_v20 = vsel %vm600_vm3, %v1999_v17, %v2002_v18 }
0x1bb6   : > { %2004 = vrot.lane.b32.xlu0 %v2003_v20, %s4102_s25 }
0x1c28   : > { %v2005_v21 = vpop.permute.xlu0 %2004 }
0x1c29   : > { %3360 = vmatmul.mubr.msk.f32.vlgmr.msra.gmra.mrb[12].mxu0 %vm378_vm2, %v2005_v21 }
0x1c2a   : > { %3507 = vmatpush3.bf16.msra.mxu0 %v4560_v41  ;;  %3381 = vmatprep.mubr.msk.f32.mxu0 %vm4100_vm1, %v4101_v12 }
0x1c2b   : > { %3508 = vmatprep.subr.bf16.mxu0 %v4099_v7 }
0x1c2e   : > { %3510 = vmatpush3.bf16.msra.mxu0 %v4563_v45 }
0x1c2f   : > { %3517 = vmatprep.subr.bf16.mxu0 %v4099_v7 }
0x1cfc   : > { %v2074_v30 = vpop.f32.mrb[12].mxu0 }
0x1cfd   : > { %v2079_v27 = vrot.slane %v2074_v30, 6  ;;  %v2080_v22 = vrot.slane %v2074_v30, 7  ;;  %v3361_v23 = vpop.f32.mrb[13].mxu0 }
0x1cff   : > { %v2083_v24 = vadd.f32 %v2079_v27, %v4603_v0  ;;  %v2084_v25 = vadd.f32 %v2080_v22, %v4601_v62 }
0x1d01   : > { %3783 = vtanh.f32 %v2083_v24  ;;  %v3101_v26 = vmul.f32 -1.442695, %v2083_v24  ;;  %v3102_v28 = vmul.f32 -1.442695, %v2084_v25 }
0x1d02   : > { %3785 = vtanh.f32 %v2084_v25 }
0x1d03   : > { %3787 = vpow2.f32 %v3101_v26 }
0x1d04   : > { %3789 = vpow2.f32 %v3102_v28 }
0x1d0b   : > { %v3784_v58 = vpop.eup %3783 }
0x1d0c   : > { %v3786_v61 = vpop.eup %3785  ;;  %2109 = vrot.lane.b32.xlu1 %v3784_v58, %s4103_s23 }
0x1d0d   : > { %2111 = vrot.lane.b32.xlu0 %v3786_v61, %s4103_s23  ;;  %v3788_v29 = vpop.eup %3787 }
0x1d0e   : > { %v3790_v31 = vpop.eup %3789  ;;  %v2091_v35 = vadd.f32 1.0, %v3788_v29 }
0x1d0f   : > { %v2092_v37 = vadd.f32 1.0, %v3790_v31 }
0x1d10   : > { %3791 = vrcp.f32 %v2091_v35 }
0x1d11   : > { %3793 = vrcp.f32 %v2092_v37 }
0x1d1a   : > { %v3792_v38 = vpop.eup %3791 }
0x1d1b   : > { %v3794_v40 = vpop.eup %3793  ;;  %v2105_v48 = vmul.f32 %v3792_v38, %v2101_v46 }
0x1d1c   : > { %v2106_v49 = vmul.f32 %v3794_v40, %v2102_v47 }
0x1d7e   : > { %v2110_v39 = vpop.permute.xlu1 %2109 }
0x1d7f   : > { %v2112_v42 = vpop.permute.xlu0 %2111  ;;  %v2115_v43 = vmul.f32 %v3792_v38, %v2110_v39 }
0x1d80   : > { %v2116_v44 = vmul.f32 %v3794_v40, %v2112_v42 }
0x1d81   : > { %2119 = vrot.lane.b32.xlu1 %v2115_v43, %s4102_s25 }
0x1d82   : > { %2121 = vrot.lane.b32.xlu0 %v2116_v44, %s4102_s25 }
0x1df3   : > { %v2120_v50 = vpop.permute.xlu1 %2119 }
0x1df4   : > { %v2122_v53 = vpop.permute.xlu0 %2121  ;;  %v2125_v13 = vadd.f32 %v2120_v50, %v2105_v48 }
0x1df5   : > { %v2126_v54 = vadd.f32 %v2122_v53, %v2106_v49 }
0x1df6   : > { %3795 = vtanh.f32 %v2125_v13  ;;  %v2241_v26 = vrot.slane %v2125_v13, 7 }
0x1df7   : > { %3797 = vtanh.f32 %v2126_v54  ;;  %v2242_v28 = vrot.slane %v2126_v54, 7 }
0x1e00   : > { %v3796_v55 = vpop.eup %3795 }
0x1e01   : > { %v3798_v19 = vpop.eup %3797  ;;  %2131 = vrot.lane.b32.xlu1 %v3796_v55, %s4103_s23 }
0x1e02   : > { %2133 = vrot.lane.b32.xlu0 %v3798_v19, %s4103_s23 }
0x1e73   : > { %v2132_v56 = vpop.permute.xlu1 %2131 }
0x1e74   : > { %v2134_v57 = vpop.permute.xlu0 %2133  ;;  %v2137_v59 = vmul.f32 %v3792_v38, %v2132_v56 }
0x1e75   : > { %v2138_v63 = vmul.f32 %v3794_v40, %v2134_v57 }
0x1e76   : > { %v2141_v2 = vrot.slane %v2137_v59, 2  ;;  %v2863_v3 = vsel %vm1602_vm5, %v2861_v60, %v2137_v59 }
0x1e77   : > { %v2142_v4 = vrot.slane %v2138_v63, 1  ;;  %v2864_v5 = vsel %vm1602_vm5, %v2862_v1, %v2138_v63 }
0x1e79   : > { %v2143_v6 = vsel %vm600_vm3, %v2142_v4, %v2141_v2 }
0x1e7a   : > { %2144 = vrot.lane.b32.xlu1 %v2143_v6, %s4102_s25 }
0x1eec   : > { %v2145_v8 = vpop.permute.xlu1 %2144 }
0x1eed   : > { %3371 = vmatmul.mubr.msk.f32.vlgmr.msra.gmra.mrb[12].mxu1 %vm378_vm2, %v2145_v8 }
0x1eee   : > { %3513 = vmatpush3.bf16.msra.mxu1 %v4560_v41  ;;  %3392 = vmatprep.mubr.msk.f32.mxu1 %vm4100_vm1, %v4101_v12 }
0x1eef   : > { %3514 = vmatprep.subr.bf16.mxu1 %v4099_v7 }
0x1ef2   : > { %3516 = vmatpush3.bf16.msra.mxu1 %v4563_v45 }
0x1ef3   : > { %3523 = vmatprep.subr.bf16.mxu1 %v4099_v7 }
0x1fc0   : > { %v2214_v34 = vpop.f32.mrb[12].mxu1 }
0x1fc1   : > { %v2219_v36 = vrot.slane %v2214_v34, 5  ;;  %v2220_v9 = vrot.slane %v2214_v34, 6  ;;  %v3372_v10 = vpop.f32.mrb[13].mxu1 }
0x1fc3   : > { %v2223_v11 = vadd.f32 %v2219_v36, %v4603_v0  ;;  %v2224_v14 = vadd.f32 %v2220_v9, %v4601_v62 }
0x1fc5   : > { %3799 = vtanh.f32 %v2223_v11  ;;  %v3104_v17 = vmul.f32 -1.442695, %v2223_v11  ;;  %v3105_v18 = vmul.f32 -1.442695, %v2224_v14 }
0x1fc6   : > { %3801 = vtanh.f32 %v2224_v14 }
0x1fc7   : > { %3803 = vpow2.f32 %v3104_v17 }
0x1fc8   : > { %3805 = vpow2.f32 %v3105_v18 }
0x1fcf   : > { %v3800_v15 = vpop.eup %3799 }
0x1fd0   : > { %v3802_v16 = vpop.eup %3801  ;;  %2249 = vrot.lane.b32.xlu0 %v3800_v15, %s4103_s23 }
0x1fd1   : > { %2251 = vrot.lane.b32.xlu1 %v3802_v16, %s4103_s23  ;;  %v3804_v20 = vpop.eup %3803 }
0x1fd2   : > { %v3806_v21 = vpop.eup %3805  ;;  %v2231_v30 = vadd.f32 1.0, %v3804_v20 }
0x1fd3   : > { %v2232_v27 = vadd.f32 1.0, %v3806_v21 }
0x1fd4   : > { %3807 = vrcp.f32 %v2231_v30 }
0x1fd5   : > { %3809 = vrcp.f32 %v2232_v27 }
0x1fde   : > { %v3808_v22 = vpop.eup %3807 }
0x1fdf   : > { %v3810_v24 = vpop.eup %3809  ;;  %v2245_v29 = vmul.f32 %v3808_v22, %v2241_v26 }
0x1fe0   : > { %v2246_v31 = vmul.f32 %v3810_v24, %v2242_v28 }
0x2042   : > { %v2250_v23 = vpop.permute.xlu0 %2249 }
0x2043   : > { %v2252_v25 = vpop.permute.xlu1 %2251  ;;  %v2255_v58 = vmul.f32 %v3808_v22, %v2250_v23 }
0x2044   : > { %v2256_v61 = vmul.f32 %v3810_v24, %v2252_v25 }
0x2045   : > { %2259 = vrot.lane.b32.xlu0 %v2255_v58, %s4102_s25 }
0x2046   : > { %2261 = vrot.lane.b32.xlu1 %v2256_v61, %s4102_s25 }
0x20b7   : > { %v2260_v35 = vpop.permute.xlu0 %2259 }
0x20b8   : > { %v2262_v37 = vpop.permute.xlu1 %2261  ;;  %v2265_v38 = vadd.f32 %v2260_v35, %v2245_v29 }
0x20b9   : > { %v2266_v39 = vadd.f32 %v2262_v37, %v2246_v31 }
0x20ba   : > { %3811 = vtanh.f32 %v2265_v38  ;;  %v2381_v15 = vrot.slane %v2265_v38, 7 }
0x20bb   : > { %3813 = vtanh.f32 %v2266_v39  ;;  %v2382_v16 = vrot.slane %v2266_v39, 7 }
0x20c4   : > { %v3812_v40 = vpop.eup %3811 }
0x20c5   : > { %v3814_v42 = vpop.eup %3813  ;;  %2271 = vrot.lane.b32.xlu0 %v3812_v40, %s4103_s23 }
0x20c6   : > { %2273 = vrot.lane.b32.xlu1 %v3814_v42, %s4103_s23 }
0x2137   : > { %v2272_v43 = vpop.permute.xlu0 %2271 }
0x2138   : > { %v2274_v44 = vpop.permute.xlu1 %2273  ;;  %v2277_v46 = vmul.f32 %v3808_v22, %v2272_v43 }
0x2139   : > { %v2278_v47 = vmul.f32 %v3810_v24, %v2274_v44 }
0x213a   : > { %v2281_v48 = vrot.slane %v2277_v46, 3  ;;  %v2865_v49 = vsel %vm1605_vm6, %v2863_v3, %v2277_v46 }
0x213b   : > { %v2282_v50 = vrot.slane %v2278_v47, 2  ;;  %v2866_v53 = vsel %vm1605_vm6, %v2864_v5, %v2278_v47 }
0x213d   : > { %v2283_v13 = vsel %vm600_vm3, %v2282_v50, %v2281_v48 }
0x213e   : > { %2284 = vrot.lane.b32.xlu0 %v2283_v13, %s4102_s25 }
0x21b0   : > { %v2285_v54 = vpop.permute.xlu0 %2284 }
0x21b1   : > { %3382 = vmatmul.mubr.msk.f32.vlgmr.msra.gmra.mrb[14].mxu0 %vm378_vm2, %v2285_v54 }
0x21b2   : > { %3519 = vmatpush3.bf16.msra.mxu0 %v4560_v41  ;;  %3403 = vmatprep.mubr.msk.f32.mxu0 %vm4100_vm1, %v4101_v12 }
0x21b3   : > { %3520 = vmatprep.subr.bf16.mxu0 %v4099_v7 }
0x21b6   : > { %3522 = vmatpush3.bf16.msra.mxu0 %v4563_v45 }
0x2284   : > { %v2354_v55 = vpop.f32.mrb[14].mxu0 }
0x2285   : > { %v2359_v19 = vrot.slane %v2354_v55, 4  ;;  %v2360_v56 = vrot.slane %v2354_v55, 5  ;;  %v3383_v57 = vpop.f32.mrb[15].mxu0 }
0x2287   : > { %v2363_v59 = vadd.f32 %v2359_v19, %v4603_v0  ;;  %v2364_v60 = vadd.f32 %v2360_v56, %v4601_v62 }
0x2289   : > { %3815 = vtanh.f32 %v2363_v59  ;;  %v3107_v2 = vmul.f32 -1.442695, %v2363_v59  ;;  %v3108_v3 = vmul.f32 -1.442695, %v2364_v60 }
0x228a   : > { %3817 = vtanh.f32 %v2364_v60 }
0x228b   : > { %3819 = vpow2.f32 %v3107_v2 }
0x228c   : > { %3821 = vpow2.f32 %v3108_v3 }
0x2293   : > { %v3816_v63 = vpop.eup %3815 }
0x2294   : > { %v3818_v1 = vpop.eup %3817  ;;  %2389 = vrot.lane.b32.xlu1 %v3816_v63, %s4103_s23 }
0x2295   : > { %2391 = vrot.lane.b32.xlu0 %v3818_v1, %s4103_s23  ;;  %v3820_v4 = vpop.eup %3819 }
0x2296   : > { %v3822_v5 = vpop.eup %3821  ;;  %v2371_v6 = vadd.f32 1.0, %v3820_v4 }
0x2297   : > { %v2372_v8 = vadd.f32 1.0, %v3822_v5 }
0x2298   : > { %3823 = vrcp.f32 %v2371_v6 }
0x2299   : > { %3825 = vrcp.f32 %v2372_v8 }
0x22a2   : > { %v3824_v34 = vpop.eup %3823 }
0x22a3   : > { %v3826_v9 = vpop.eup %3825  ;;  %v2385_v17 = vmul.f32 %v3824_v34, %v2381_v15 }
0x22a4   : > { %v2386_v18 = vmul.f32 %v3826_v9, %v2382_v16 }
0x2306   : > { %v2390_v36 = vpop.permute.xlu1 %2389 }
0x2307   : > { %v2392_v10 = vpop.permute.xlu0 %2391  ;;  %v2395_v11 = vmul.f32 %v3824_v34, %v2390_v36 }
0x2308   : > { %v2396_v14 = vmul.f32 %v3826_v9, %v2392_v10 }
0x2309   : > { %2399 = vrot.lane.b32.xlu1 %v2395_v11, %s4102_s25 }
0x230a   : > { %2401 = vrot.lane.b32.xlu0 %v2396_v14, %s4102_s25 }
0x237b   : > { %v2400_v20 = vpop.permute.xlu1 %2399 }
0x237c   : > { %v2402_v21 = vpop.permute.xlu0 %2401  ;;  %v2405_v30 = vadd.f32 %v2400_v20, %v2385_v17 }
0x237d   : > { %v2406_v27 = vadd.f32 %v2402_v21, %v2386_v18 }
0x237e   : > { %3827 = vtanh.f32 %v2405_v30  ;;  %v2521_v56 = vrot.slane %v2405_v30, 7 }
0x237f   : > { %3829 = vtanh.f32 %v2406_v27  ;;  %v2522_v57 = vrot.slane %v2406_v27, 7 }
0x2388   : > { %v3828_v22 = vpop.eup %3827 }
0x2389   : > { %v3830_v23 = vpop.eup %3829  ;;  %2411 = vrot.lane.b32.xlu1 %v3828_v22, %s4103_s23 }
0x238a   : > { %2413 = vrot.lane.b32.xlu0 %v3830_v23, %s4103_s23 }
0x23fb   : > { %v2412_v24 = vpop.permute.xlu1 %2411 }
0x23fc   : > { %v2414_v25 = vpop.permute.xlu0 %2413  ;;  %v2417_v58 = vmul.f32 %v3824_v34, %v2412_v24 }
0x23fd   : > { %v2418_v61 = vmul.f32 %v3826_v9, %v2414_v25 }
0x23fe   : > { %v2421_v26 = vrot.slane %v2417_v58, 4  ;;  %v2867_v28 = vsel %vm1608_vm7, %v2865_v49, %v2417_v58 }
0x23ff   : > { %v2422_v29 = vrot.slane %v2418_v61, 3  ;;  %v2868_v31 = vsel %vm1608_vm7, %v2866_v53, %v2418_v61 }
0x2401   : > { %v2423_v35 = vsel %vm600_vm3, %v2422_v29, %v2421_v26 }
0x2402   : > { %2424 = vrot.lane.b32.xlu1 %v2423_v35, %s4102_s25 }
0x2474   : > { %v2425_v37 = vpop.permute.xlu1 %2424 }
0x2475   : > { %3393 = vmatmul.mubr.msk.f32.vlgmr.msra.gmra.mrb[14].mxu1 %vm378_vm2, %v2425_v37 }
0x2476   : > { %3525 = vmatpush3.bf16.msra.mxu1 %v4560_v41  ;;  %3414 = vmatprep.mubr.msk.f32.mxu1 %vm4100_vm1, %v4101_v12 }
0x2477   : > { %3526 = vmatprep.subr.bf16.mxu1 %v4099_v7 }
0x247a   : > { %3528 = vmatpush3.bf16.msra.mxu1 %v4563_v45 }
0x2548   : > { %v2494_v38 = vpop.f32.mrb[14].mxu1 }
0x2549   : > { %v2499_v39 = vrot.slane %v2494_v38, 3  ;;  %v2500_v40 = vrot.slane %v2494_v38, 4  ;;  %v3394_v42 = vpop.f32.mrb[15].mxu1 }
0x254b   : > { %v2503_v43 = vadd.f32 %v2499_v39, %v4603_v0  ;;  %v2504_v44 = vadd.f32 %v2500_v40, %v4601_v62 }
0x254d   : > { %3831 = vtanh.f32 %v2503_v43  ;;  %v3110_v12 = vmul.f32 -1.442695, %v2503_v43  ;;  %v3111_v7 = vmul.f32 -1.442695, %v2504_v44 }
0x254e   : > { %3833 = vtanh.f32 %v2504_v44 }
0x254f   : > { %3835 = vpow2.f32 %v3110_v12 }
0x2550   : > { %3837 = vpow2.f32 %v3111_v7 }
0x2557   : > { %v3832_v46 = vpop.eup %3831 }
0x2558   : > { %v3834_v47 = vpop.eup %3833  ;;  %2529 = vrot.lane.b32.xlu0 %v3832_v46, %s4103_s23 }
0x2559   : > { %2531 = vrot.lane.b32.xlu1 %v3834_v47, %s4103_s23  ;;  %v3836_v41 = vpop.eup %3835 }
0x255a   : > { %v3838_v45 = vpop.eup %3837  ;;  %v2511_v48 = vadd.f32 1.0, %v3836_v41 }
0x255b   : > { %v2512_v49 = vadd.f32 1.0, %v3838_v45 }
0x255c   : > { %3839 = vrcp.f32 %v2511_v48 }
0x255d   : > { %3841 = vrcp.f32 %v2512_v49 }
0x2566   : > { %v3840_v50 = vpop.eup %3839 }
0x2567   : > { %v3842_v13 = vpop.eup %3841  ;;  %v2525_v59 = vmul.f32 %v3840_v50, %v2521_v56 }
0x2568   : > { %v2526_v60 = vmul.f32 %v3842_v13, %v2522_v57 }
0x25ca   : > { %v2530_v53 = vpop.permute.xlu0 %2529 }
0x25cb   : > { %v2532_v54 = vpop.permute.xlu1 %2531  ;;  %v2535_v55 = vmul.f32 %v3840_v50, %v2530_v53 }
0x25cc   : > { %v2536_v19 = vmul.f32 %v3842_v13, %v2532_v54 }
0x25cd   : > { %2539 = vrot.lane.b32.xlu0 %v2535_v55, %s4102_s25 }
0x25ce   : > { %2541 = vrot.lane.b32.xlu1 %v2536_v19, %s4102_s25 }
0x263f   : > { %v2540_v63 = vpop.permute.xlu0 %2539 }
0x2640   : > { %v2542_v1 = vpop.permute.xlu1 %2541  ;;  %v2545_v2 = vadd.f32 %v2540_v63, %v2525_v59 }
0x2641   : > { %v2546_v3 = vadd.f32 %v2542_v1, %v2526_v60 }
0x2642   : > { %3843 = vtanh.f32 %v2545_v2  ;;  %v2661_v40 = vrot.slane %v2545_v2, 7 }
0x2643   : > { %3845 = vtanh.f32 %v2546_v3  ;;  %v2662_v42 = vrot.slane %v2546_v3, 7 }
0x264c   : > { %v3844_v4 = vpop.eup %3843 }
0x264d   : > { %v3846_v5 = vpop.eup %3845  ;;  %2551 = vrot.lane.b32.xlu0 %v3844_v4, %s4103_s23 }
0x264e   : > { %2553 = vrot.lane.b32.xlu1 %v3846_v5, %s4103_s23 }
0x26bf   : > { %v2552_v6 = vpop.permute.xlu0 %2551 }
0x26c0   : > { %v2554_v8 = vpop.permute.xlu1 %2553  ;;  %v2557_v34 = vmul.f32 %v3840_v50, %v2552_v6 }
0x26c1   : > { %v2558_v36 = vmul.f32 %v3842_v13, %v2554_v8 }
0x26c2   : > { %v2561_v9 = vrot.slane %v2557_v34, 5  ;;  %v2869_v10 = vsel %vm1611_vm8, %v2867_v28, %v2557_v34 }
0x26c3   : > { %v2562_v11 = vrot.slane %v2558_v36, 4  ;;  %v2870_v14 = vsel %vm1611_vm8, %v2868_v31, %v2558_v36 }
0x26c5   : > { %v2563_v15 = vsel %vm600_vm3, %v2562_v11, %v2561_v9 }
0x26c6   : > { %2564 = vrot.lane.b32.xlu0 %v2563_v15, %s4102_s25 }
0x2738   : > { %v2565_v16 = vpop.permute.xlu0 %2564 }
0x2739   : > { %3404 = vmatmul.mubr.msk.f32.vlgmr.msra.gmra.mrb[16].mxu0 %vm378_vm2, %v2565_v16 }
0x280c   : > { %v2634_v17 = vpop.f32.mrb[16].mxu0 }
0x280d   : > { %v2639_v18 = vrot.slane %v2634_v17, 2  ;;  %v2640_v20 = vrot.slane %v2634_v17, 3  ;;  %v3405_v21 = vpop.f32.mrb[17].mxu0 }
0x280f   : > { %v2643_v30 = vadd.f32 %v2639_v18, %v4603_v0  ;;  %v2644_v27 = vadd.f32 %v2640_v20, %v4601_v62 }
0x2811   : > { %3847 = vtanh.f32 %v2643_v30  ;;  %v3113_v24 = vmul.f32 -1.442695, %v2643_v30  ;;  %v3114_v25 = vmul.f32 -1.442695, %v2644_v27 }
0x2812   : > { %3849 = vtanh.f32 %v2644_v27 }
0x2813   : > { %3851 = vpow2.f32 %v3113_v24 }
0x2814   : > { %3853 = vpow2.f32 %v3114_v25 }
0x281b   : > { %v3848_v22 = vpop.eup %3847 }
0x281c   : > { %v3850_v23 = vpop.eup %3849  ;;  %2669 = vrot.lane.b32.xlu1 %v3848_v22, %s4103_s23 }
0x281d   : > { %2671 = vrot.lane.b32.xlu0 %v3850_v23, %s4103_s23  ;;  %v3852_v58 = vpop.eup %3851 }
0x281e   : > { %v3854_v61 = vpop.eup %3853  ;;  %v2651_v26 = vadd.f32 1.0, %v3852_v58  ;;  %v1577_v58 = vrot.slane %v4580_v52, 7 }
0x281f   : > { %v2652_v28 = vadd.f32 1.0, %v3854_v61  ;;  %v1590_v61 = vrot.slane %v4556_v33, 7 }
0x2820   : > { %3855 = vrcp.f32 %v2651_v26 }
0x2821   : > { %3857 = vrcp.f32 %v2652_v28 }
0x282a   : > { %v3856_v29 = vpop.eup %3855 }
0x282b   : > { %v3858_v35 = vpop.eup %3857  ;;  %v2665_v43 = vmul.f32 %v3856_v29, %v2661_v40 }
0x282c   : > { %v2666_v44 = vmul.f32 %v3858_v35, %v2662_v42 }
0x288e   : > { %v2670_v31 = vpop.permute.xlu1 %2669 }
0x288f   : > { %v2672_v37 = vpop.permute.xlu0 %2671  ;;  %v2675_v38 = vmul.f32 %v3856_v29, %v2670_v31 }
0x2890   : > { %v2676_v39 = vmul.f32 %v3858_v35, %v2672_v37 }
0x2891   : > { %2679 = vrot.lane.b32.xlu1 %v2675_v38, %s4102_s25 }
0x2892   : > { %2681 = vrot.lane.b32.xlu0 %v2676_v39, %s4102_s25 }
0x2903   : > { %v2680_v46 = vpop.permute.xlu1 %2679 }
0x2904   : > { %v2682_v47 = vpop.permute.xlu0 %2681  ;;  %v2685_v12 = vadd.f32 %v2680_v46, %v2665_v43 }
0x2905   : > { %v2686_v7 = vadd.f32 %v2682_v47, %v2666_v44 }
0x2906   : > { %3859 = vtanh.f32 %v2685_v12  ;;  %v2801_v17 = vrot.slane %v2685_v12, 7 }
0x2907   : > { %3861 = vtanh.f32 %v2686_v7  ;;  %v2802_v18 = vrot.slane %v2686_v7, 7 }
0x2910   : > { %v3860_v41 = vpop.eup %3859 }
0x2911   : > { %v3862_v45 = vpop.eup %3861  ;;  %2691 = vrot.lane.b32.xlu1 %v3860_v41, %s4103_s23 }
0x2912   : > { %2693 = vrot.lane.b32.xlu0 %v3862_v45, %s4103_s23 }
0x2983   : > { %v2692_v48 = vpop.permute.xlu1 %2691 }
0x2984   : > { %v2694_v49 = vpop.permute.xlu0 %2693  ;;  %v2697_v50 = vmul.f32 %v3856_v29, %v2692_v48 }
0x2985   : > { %v2698_v53 = vmul.f32 %v3858_v35, %v2694_v49 }
0x2986   : > { %v2701_v13 = vrot.slane %v2697_v50, 6  ;;  %v4728_v54 = vsel %vm1614_vm9, %v2869_v10, %v2697_v50 }
0x2987   : > { %v2702_v55 = vrot.slane %v2698_v53, 5  ;;  %v4731_v19 = vsel %vm1614_vm9, %v2870_v14, %v2698_v53 }
0x2989   : > { %v2703_v56 = vsel %vm600_vm3, %v2702_v55, %v2701_v13 }
0x298a   : > { %2704 = vrot.lane.b32.xlu1 %v2703_v56, %s4102_s25 }
0x29fc   : > { %v2705_v57 = vpop.permute.xlu1 %2704 }
0x29fd   : > { %3415 = vmatmul.mubr.msk.f32.vlgmr.msra.gmra.mrb[16].mxu1 %vm378_vm2, %v2705_v57 }
0x2ad0   : > { %v2774_v59 = vpop.f32.mrb[16].mxu1 }
0x2ad1   : > { %v2779_v60 = vrot.slane %v2774_v59, 1  ;;  %v2780_v63 = vrot.slane %v2774_v59, 2  ;;  %v3416_v1 = vpop.f32.mrb[17].mxu1 }
0x2ad3   : > { %v2783_v2 = vadd.f32 %v2779_v60, %v4603_v0  ;;  %v2784_v3 = vadd.f32 %v2780_v63, %v4601_v62 }
0x2ad5   : > { %3863 = vtanh.f32 %v2783_v2  ;;  %v3116_v6 = vmul.f32 -1.442695, %v2783_v2  ;;  %v3117_v8 = vmul.f32 -1.442695, %v2784_v3 }
0x2ad6   : > { %3865 = vtanh.f32 %v2784_v3 }
0x2ad7   : > { %3867 = vpow2.f32 %v3116_v6 }
0x2ad8   : > { %3869 = vpow2.f32 %v3117_v8 }
0x2adf   : > { %v3864_v4 = vpop.eup %3863 }
0x2ae0   : > { %v3866_v5 = vpop.eup %3865  ;;  %2809 = vrot.lane.b32.xlu1 %v3864_v4, %s4103_s23 }
0x2ae1   : > { %2811 = vrot.lane.b32.xlu0 %v3866_v5, %s4103_s23  ;;  %v3868_v34 = vpop.eup %3867 }
0x2ae2   : > { %v3870_v36 = vpop.eup %3869  ;;  %v2791_v9 = vadd.f32 1.0, %v3868_v34 }
0x2ae3   : > { %v2792_v10 = vadd.f32 1.0, %v3870_v36 }
0x2ae4   : > { %3871 = vrcp.f32 %v2791_v9 }
0x2ae5   : > { %3873 = vrcp.f32 %v2792_v10 }
0x2aee   : > { %v3872_v0 = vpop.eup %3871 }
0x2aef   : > { %v3874_v11 = vpop.eup %3873  ;;  %v2805_v20 = vmul.f32 %v3872_v0, %v2801_v17 }
0x2af0   : > { %v2806_v21 = vmul.f32 %v3874_v11, %v2802_v18 }
0x2b52   : > { %v2810_v62 = vpop.permute.xlu1 %2809 }
0x2b53   : > { %v2812_v14 = vpop.permute.xlu0 %2811  ;;  %v2815_v15 = vmul.f32 %v3872_v0, %v2810_v62 }
0x2b54   : > { %v2816_v16 = vmul.f32 %v3874_v11, %v2812_v14 }
0x2b55   : > { %2819 = vrot.lane.b32.xlu1 %v2815_v15, %s4102_s25 }
0x2b56   : > { %2821 = vrot.lane.b32.xlu0 %v2816_v16, %s4102_s25 }
0x2bc7   : > { %v2820_v30 = vpop.permute.xlu1 %2819 }
0x2bc8   : > { %v2822_v27 = vpop.permute.xlu0 %2821  ;;  %v2825_v22 = vadd.f32 %v2820_v30, %v2805_v20 }
0x2bc9   : > { %v2826_v23 = vadd.f32 %v2822_v27, %v2806_v21 }
0x2bca   : > { %3875 = vtanh.f32 %v2825_v22 }
0x2bcb   : > { %3877 = vtanh.f32 %v2826_v23  ;;  %v2852_v26 = vrot.slane %v2826_v23, 7 }
0x2bd4   : > { %v3876_v24 = vpop.eup %3875 }
0x2bd5   : > { %v3878_v25 = vpop.eup %3877  ;;  %2831 = vrot.lane.b32.xlu1 %v3876_v24, %s4103_s23 }
0x2bd6   : > { %2833 = vrot.lane.b32.xlu0 %v3878_v25, %s4103_s23 }
0x2bd9   : > { %1580 = vrot.lane.b32.xlu1 %v1577_v58, %s4102_s25 }
0x2bda   : > { %1578 = vrot.lane.b32.xlu0 %v4578_v51, %s4102_s25 }
0x2bdd   : > { %1593 = vrot.lane.b32.xlu1 %v1590_v61, %s4104_s14 }
0x2bde   : > { %1591 = vrot.lane.b32.xlu0 %v4554_v32, %s4104_s14 }
0x2be1   : > { %2855 = vrot.lane.b32.xlu1 %v2852_v26, %s4104_s14 }
0x2be2   : > { %2853 = vrot.lane.b32.xlu0 %v2825_v22, %s4104_s14 }
0x2c47   : > { %v2832_v28 = vpop.permute.xlu1 %2831 }
0x2c48   : > { %v2834_v29 = vpop.permute.xlu0 %2833  ;;  %v2837_v31 = vmul.f32 %v3872_v0, %v2832_v28 }
0x2c49   : > { %v2838_v35 = vmul.f32 %v3874_v11, %v2834_v29 }
0x2c4a   : > { %2842 = vrot.lane.b32.xlu0 %v2837_v31, %s4102_s25  ;;  %v2873_v32 = vsel %vm1617_vm10, %v4728_v54, %v2837_v31 }
0x2c4b   : > { %v2841_v52 = vrot.slane %v2838_v35, 7  ;;  %v1581_v37 = vpop.permute.xlu1 %1580  ;;  %v2874_v39 = vsel %vm1617_vm10, %v4731_v19, %v2838_v35 }
0x2c4c   : > { %v1579_v51 = vpop.permute.xlu0 %1578  ;;  %1587 = vst.msk [vmem:[#allocation2 + $0x1] sm:$0x1] %vm1586_vm11, %v1581_v37 }
0x2c4d   : > { %1585 = vst.msk [vmem:[#allocation2 - $0x7] sm:$0x80] %vm1584_vm12, %v1579_v51  ;;  %2844 = vrot.lane.b32.xlu1 %v2841_v52, %s4102_s25 }
0x2c4e   : > { %2877 = vrot.lane.b32.xlu0 %v2873_v32, %s4102_s25 }
0x2c4f   : > { %v1594_v33 = vpop.permute.xlu1 %1593 }
0x2c50   : > { %v1592_v38 = vpop.permute.xlu0 %1591  ;;  %1598 = vst.msk [vmem:[#allocation3 + $0x1] sm:$0x1] %vm1586_vm11, %v1594_v33 }
0x2c51   : > { %1597 = vst.msk [vmem:[#allocation3 - $0x7] sm:$0x80] %vm1584_vm12, %v1592_v38  ;;  %2879 = vrot.lane.b32.xlu1 %v2874_v39, %s4102_s25 }
0x2c53   : > { %v2856_v40 = vpop.permute.xlu1 %2855 }
0x2c54   : > { %v2854_v42 = vpop.permute.xlu0 %2853  ;;  %2860 = vst.msk [vmem:[#allocation3 + $0x3] sm:$0x1] %vm1586_vm11, %v2856_v40  ;;  %v2889_v12 = vld [vmem:[#allocation2] sm:$0x3] (!%p3118_p8) }
0x2c55   : > { %2859 = vst.msk [vmem:[#allocation3 - $0x5] sm:$0x80] %vm1584_vm12, %v2854_v42 }
0x2c56   : > { %2892 = vst.msk [vmem:[#allocation11] sm:$0x3] (!%p3118_p8), %vm2891_vm13, %v2889_v12 }
0x2c58   : > { %v2894_v41 = vld [vmem:[#allocation3] sm:$0x3] (!%p3118_p8) }
0x2c59   : > { %2896 = vst.msk [vmem:[#allocation13] sm:$0x3] (!%p3118_p8), %vm2891_vm13, %v2894_v41 }
0x2c5c   : > { %v2895_v45 = vld [vmem:[#allocation3 + $0x2] sm:$0x3] (!%p3118_p8) }
0x2c5d   : > { %2897 = vst.msk [vmem:[#allocation13 + $0x2] sm:$0x3] (!%p3118_p8), %vm2891_vm13, %v2895_v45 }
0x2cbc   : > { %v2843_v43 = vpop.permute.xlu0 %2842 }
0x2cbd   : > { %2848 = vst.msk [vmem:[#allocation2 - $0x5] sm:$0x80] %vm1584_vm12, %v2843_v43 }
0x2cbe   : > { %2888 = sbr.rel (%p3118_p8) target bundleno = 11465 (0x2cc9), region = 64 }
0x2cbf   : > { %v2845_v44 = vpop.permute.xlu1 %2844 }
0x2cc0   : > { %2849 = vst.msk [vmem:[#allocation2 + $0x3] sm:$0x1] %vm1586_vm11, %v2845_v44  ;;  %v2878_v46 = vpop.permute.xlu0 %2877 }
0x2cc1   : > { %2883 = vst.msk [vmem:[%s4346_s19] sm:$0xff] %vm378_vm2, %v2878_v46 }
0x2cc3   : > { %v2880_v47 = vpop.permute.xlu1 %2879 }
0x2cc4   : > { %2884 = vst.msk [vmem:[%s4346_s19 + $0x8] sm:$0xff] %vm378_vm2, %v2880_v47 }
0x2cc7   : > { %v2890_v7 = vld [vmem:[#allocation2 + $0x2] sm:$0x3] }
0x2cc8   : > { %2893 = vst.msk [vmem:[#allocation11 + $0x2] sm:$0x3] %vm2891_vm13, %v2890_v7 }
0x2cc9 PF: > { %s4105_s12 = smov [#allocation11]   ;;  %s3120_s26 = sshll.u32 %s4178_s9, 7 }
0x2cca   : > { %s2924_s15 = sshll.u32 %s4105_s12, 4  ;;  %p4906_p2 = scmp.eq.s32.totalorder %s4178_s9, 1  ;;  %s2925_s15 = int_to_ptr.vmem [resolvable:$true] %s2924_s15 }
0x2ccb   : > { %s3965_s16 = scalar_lea.vmem %s2925_s15, 64  ;;  %p3972_p0 = scmp.lt.s32.totalorder %s2925_s15, %s2925_s15 }
0x2ccc   : > { %p3966_p9 = scmp.ne.s32.totalorder %s2925_s15, %s3965_s16  ;;  %p3973_p5 = scmp.lt.s32.totalorder %s3965_s16, %s3965_s16 }
0x2cce   : > { %p3967_p4 = pnand %p3966_p9, %p4906_p2  ;;  %p3974_p11 = por %p3973_p5, %p3972_p0 }
0x2cd0   : > { %p3968_p7 = pneg %p3967_p4 }
0x2cd2   : > { %p3975_p12 = pnand %p3974_p11, %p3968_p7 }
0x2cd4   : > { %3978 = shalt.err (!%p3975_p12)
}
0x2cd5   : > { %s3979_s22 = scalar_lea.hbm %s4875_s7, 64  ;;  %p4907_p6 = pmov %p4906_p2 }
0x2cd6   : > { %p3980_p1 = scmp.ne.s32.totalorder %s4875_s7, %s3979_s22  ;;  %p3985_p3 = scmp.lt.u32.totalorder %s3979_s22, %s4875_s7 }
0x2cd8   : > { %p3981_p10 = pnand %p3980_p1, %p4907_p6 }
0x2cda   : > { %p3982_p13 = pneg %p3981_p10 }
0x2cdc   : > { %p3987_p8 = pnand %p3985_p3, %p3982_p13 }
0x2cde   : > { %3990 = shalt.err (!%p3987_p8)
}
0x2cdf   : > { %s4106_s10 = smov 2   ;;  %p4908_p9 = pmov %p4906_p2 }
0x2ce0   : > { %s4796_s13 = scalar_lea.hbm %s4874_s6, %s3120_s26  ;;  %s2911_s22 = sshll.u32 %s4346_s19, 4  ;;  %s4799_s22 = int_to_ptr.vmem [resolvable:$true] %s2911_s22 }
0x2ce1   : > { %3541 = dma.vmem_to_hbm [thread:$0]  (%p4908_p9), %s2925_s15, 64, %s4875_s7, [#allocation12], %s4102_s25, %s4102_s25, %s4106_s10  }
0x2ce2   : > { %s2899_s18 = scalar_lea.sflag [#allocation6], %s4332_s20  ;;  %s3991_s24 = scalar_lea.vmem %s4799_s22, 256 }
0x2ce3   : > { %p3992_p2 = scmp.ne.s32.totalorder %s4799_s22, %s3991_s24  ;;  %p4909_p4 = scmp.ne.s32.totalorder %s4891_s17, 0 }
0x2ce4   : > { %s4107_s23 = smov [#allocation10]  }
0x2ce5   : > { %p3993_p7 = pnand %p3992_p2, %p4909_p4  ;;  %s3995_s21 = sshll.u32 %s4107_s23, 4  ;;  %s3996_s21 = int_to_ptr.vmem [resolvable:$false] %s3995_s21 }
0x2ce6   : > { %s3997_s15 = scalar_lea.vmem %s3996_s21, 512  ;;  %p3998_p5 = scmp.lt.s32.totalorder %s4799_s22, %s3996_s21 }
0x2ce7   : > { %p3994_p0 = pneg %p3993_p7  ;;  %p3999_p11 = scmp.lt.s32.totalorder %s3997_s15, %s3991_s24 }
0x2ce9   : > { %p4000_p12 = por %p3999_p11, %p3998_p5 }
0x2ceb   : > { %p4001_p1 = pnand %p4000_p12, %p3994_p0 }
0x2ced   : > { %4004 = shalt.err (!%p4001_p1)
}
0x2cee   : > { %s4005_s19 = scalar_lea.hbm %s4796_s13, 256  ;;  %s4009_s12 = scalar_lea.hbm %s4874_s6, 512 }
0x2cef   : > { %p4006_p6 = scmp.ne.s32.totalorder %s4796_s13, %s4005_s19  ;;  %p4010_p3 = scmp.lt.u32.totalorder %s4796_s13, %s4874_s6 }
0x2cf0   : > { %p4011_p8 = scmp.lt.u32.totalorder %s4009_s12, %s4005_s19  ;;  %p4013_p2 = scmp.lt.u32.totalorder %s4005_s19, %s4796_s13 }
0x2cf1   : > { %p4007_p10 = pnand %p4006_p6, %p4909_p4 }
0x2cf2   : > { %p4012_p9 = por %p4011_p8, %p4010_p3 }
0x2cf3   : > { %p4008_p13 = pneg %p4007_p10 }
0x2cf4   : > { %p4014_p7 = por %p4013_p2, %p4012_p9 }
0x2cf6   : > { %p4015_p0 = pnand %p4014_p7, %p4008_p13 }
0x2cf8   : > { %4018 = shalt.err (!%p4015_p0)
}
0x2cf9   : > { %s4108_s24 = smov 128   ;;  %s4109_s23 = smov 256  }
0x2cfa   : > { %s4110_s21 = smov 8   ;;  %s4111_s15 = smov [#allocation13]  }
0x2cfb   : > { %3539 = dma.vmem_to_hbm [thread:$0]  (%p4909_p4), %s4799_s22, 256, %s4796_s13, %s2899_s18, %s4108_s24, %s4109_s23, %s4110_s21  }
0x2cfc   : > { %s2937_s26 = sshll.u32 %s4111_s15, 4  ;;  %p4910_p11 = scmp.eq.s32.totalorder %s4178_s9, 1  ;;  %s2938_s26 = int_to_ptr.vmem [resolvable:$true] %s2937_s26 }
0x2cfd   : > { %s4019_s14 = scalar_lea.vmem %s2938_s26, 64  ;;  %p4026_p6 = scmp.lt.s32.totalorder %s2938_s26, %s2938_s26 }
0x2cfe   : > { %p4020_p5 = scmp.ne.s32.totalorder %s2938_s26, %s4019_s14  ;;  %p4027_p10 = scmp.lt.s32.totalorder %s4019_s14, %s4019_s14 }
0x2d00   : > { %p4021_p12 = pnand %p4020_p5, %p4910_p11  ;;  %p4028_p13 = por %p4027_p10, %p4026_p6 }
0x2d02   : > { %p4022_p1 = pneg %p4021_p12 }
0x2d04   : > { %p4029_p3 = pnand %p4028_p13, %p4022_p1 }
0x2d06   : > { %4032 = shalt.err (!%p4029_p3)
}
0x2d07   : > { %s4033_s17 = scalar_lea.hbm %s4876_s8, 64  ;;  %p4911_p8 = pmov %p4910_p11 }
0x2d08   : > { %p4034_p4 = scmp.ne.s32.totalorder %s4876_s8, %s4033_s17  ;;  %p4039_p7 = scmp.lt.u32.totalorder %s4033_s17, %s4876_s8 }
0x2d0a   : > { %p4035_p9 = pnand %p4034_p4, %p4911_p8 }
0x2d0c   : > { %p4036_p2 = pneg %p4035_p9 }
0x2d0e   : > { %p4041_p0 = pnand %p4039_p7, %p4036_p2 }
0x2d10   : > { %4044 = shalt.err (!%p4041_p0)
}
0x2d11   : > { %p4912_p5 = pmov %p4911_p8 }
0x2d13   : > { %3543 = dma.vmem_to_hbm [thread:$0]  (%p4912_p5), %s2938_s26, 64, %s4876_s8, [#allocation12], %s4102_s25, %s4102_s25, %s4106_s10  }
0x2d14   : > { %p4913_p11 = pmov %p4912_p5 }
0x2d15   : > { %p4914_p12 = pmov %p4912_p5 }
0x2d16   : > { %4070 = dma.done.wait (%p4913_p11), [#allocation12], 128  }
0x2d17   : > { %4072 = vsyncadd (%p4914_p12), [#allocation12], 4294967168 }
0x2d18 PF: > { %s4915_s24 = sld [smem:[#allocation20_spill]]  ;;  %s2960_s23 = sand.u32 1, %s4079_s27  }
0x2d19   : > { %p4917_p6 = scmp.ge.s32.totalorder %s4091_s30, 2  ;;  %s2961_s21 = scalar_lea.sflag [#allocation6], %s2960_s23 }
0x2d1e   : > { %p4916_p1 = scmp.ne.s32.totalorder %s4915_s24, 0 }
0x2d20   : > { %p3561_p10 = pnand %p4917_p6, %p4916_p1 }
0x2d22   : > { %4074 = dma.done.wait (!%p3561_p10), %s2961_s21, 256  }
0x2d23   : > { %4076 = vsyncadd (!%p3561_p10), %s2961_s21, 4294967040  ;;  %s4918_s30 = sld [smem:[#allocation18_spill]]  ;;  %s4919_s25 = sld [smem:[#allocation19_spill]] }
0x2d24   : > { %s4920_s27 = smov %s4083_s28  ;;  %s4921_s28 = smov %s4087_s29 }
0x2d29   : > { %p24_p13 = scmp.ge.s32.totalorder %s4918_s30, 4   ;;  %s4922_s29 = smov %s4919_s25 }
0x2d2b   :  { %26 = sbr.rel (!%p24_p13) target bundleno = 7 (0x7), region = 126 }
0x2d32   :  { %2966 = vsyncpa [#allocation5], 1 }
0x2d33   :  { %2968 = vsyncpa [#allocation5 + $0x1], 1 }
0x2d34   :  { %2969 = vsyncpa [#allocation8], 1 }
0x2d35   :  { %2970 = vsyncpa [#allocation6], 1 }
0x2d36   :  { %2972 = vsyncpa [#allocation6 + $0x1], 1 }
0x2d37   :  { %2973 = vsyncpa [#allocation12], 1 }

</bundles_post_ra>
